<compile_context>
chip_gen: v5e
topology: v5e:2x2
jax: 0.10.0
libtpu: 0.0.40
codegen_flags: <defaults>
</compile_context>

<pallas_src>
import functools

import jax
import jax.numpy as jnp
from jax import lax
from jax.experimental import pallas as pl
from jax.experimental.pallas import tpu as pltpu


# ----------------------------------------------------------------------------
# Pallas kernel: one grid step == one tile of Bt batch elements.
# ----------------------------------------------------------------------------
def _cca_kernel(
    x_spa_ref,   # (Bt, N, C)
    x_fus_ref,   # (Bt, HD)
    w_spa_ref,   # (C, 4*MID)  fused [s1 | s2 | v1 | v2]
    w_glo_ref,   # (C, MID)
    w_fus_ref,   # (HD, MID)
    w_p1_ref,    # (C, C)      first proj of linear_project (2*mid -> num_dim)
    w_p2_ref,    # (C, C)      second proj of linear_project (num_dim -> 2*mid)
    ln_w_ref,    # (1, C)      LayerNorm weight
    ln_b_ref,    # (1, C)      LayerNorm bias
    o_ref,       # (Bt, C)
    cat_ref,     # VMEM scratch (Bt, C) f32
    *,
    scale: float,
    eps: float,
):
    f32 = jnp.float32
    Bt, N, C = x_spa_ref.shape
    MID = w_glo_ref.shape[1]

    x_spa = x_spa_ref[...]                                    # (Bt, N, C), native dtype
    x_fus = x_fus_ref[...]                                    # (Bt, HD)

    # --- global descriptor: mean over tokens (f32 for stats) -----------------
    x_glo = jnp.mean(x_spa.astype(f32), axis=1)               # (Bt, C)

    # --- fused spatial projection: one big MXU matmul, M = Bt*N rows ---------
    spa = jnp.dot(
        x_spa.reshape(Bt * N, C).astype(w_spa_ref.dtype),
        w_spa_ref[...],
        preferred_element_type=f32,
    )                                                         # (Bt*N, 4*MID)
    spa = spa.reshape(Bt, N, 4 * MID)
    k1 = spa[:, :, 0 * MID:1 * MID]                           # keys path 1
    k2 = spa[:, :, 1 * MID:2 * MID]                           # keys path 2
    v1 = spa[:, :, 2 * MID:3 * MID]                           # values path 1
    v2 = spa[:, :, 3 * MID:4 * MID]                           # values path 2

    # --- query projections (Bt rows in the MXU M dimension) ------------------
    q_sa = jnp.dot(x_glo.astype(w_glo_ref.dtype), w_glo_ref[...],
                   preferred_element_type=f32)                # (Bt, MID)
    q_ca = jnp.dot(x_fus.astype(w_fus_ref.dtype), w_fus_ref[...],
                   preferred_element_type=f32)                # (Bt, MID)

    # --- attention logits: broadcast-mul + lane reduce (no transpose) --------
    att_sa = jnp.sum(q_sa[:, None, :] * k1, axis=-1) * scale  # (Bt, N)
    att_ca = jnp.sum(q_ca[:, None, :] * k2, axis=-1) * scale  # (Bt, N)

    def _softmax_last(a):
        m = jnp.max(a, axis=-1, keepdims=True)
        e = jnp.exp(a - m)
        # One reciprocal per row, then a broadcast multiply (cheaper than N divides).
        return e * (1.0 / jnp.sum(e, axis=-1, keepdims=True))

    att_sa = _softmax_last(att_sa)                            # (Bt, N)
    att_ca = _softmax_last(att_ca)                            # (Bt, N)

    # --- attention-weighted sums over tokens ----------------------------------
    x_1 = jnp.sum(att_sa[:, :, None] * v1, axis=1)            # (Bt, MID)
    x_2 = jnp.sum(att_ca[:, :, None] * v2, axis=1)            # (Bt, MID)

    # --- "concat" via lane-sliced stores into a (Bt, C) scratch + residual ----
    cat_ref[:, 0:MID] = x_1 + x_glo[:, 0:MID]
    cat_ref[:, MID:C] = x_2 + x_glo[:, MID:C]
    x_cat = cat_ref[...]                                      # (Bt, C) f32

    # --- LayerNorm(num_dim) with affine params --------------------------------
    mu = jnp.mean(x_cat, axis=-1, keepdims=True)
    var = jnp.mean((x_cat - mu) ** 2, axis=-1, keepdims=True)
    x_ln = (x_cat - mu) * lax.rsqrt(var + eps)
    x_ln = x_ln * ln_w_ref[...].astype(f32) + ln_b_ref[...].astype(f32)

    # --- linear_project: Linear -> ReLU -> Linear, plus residual --------------
    h = jnp.dot(x_ln.astype(w_p1_ref.dtype), w_p1_ref[...],
                preferred_element_type=f32)                   # (Bt, C)
    h = jnp.maximum(h, 0.0)
    proj = jnp.dot(h.astype(w_p2_ref.dtype), w_p2_ref[...],
                   preferred_element_type=f32)                # (Bt, C)

    o_ref[...] = (proj + x_cat).astype(o_ref.dtype)


# ----------------------------------------------------------------------------
# Wrapper
# ----------------------------------------------------------------------------
def cca_forward(x_spa, x_fusion, params, *, num_dim, eps=1e-5, block_b=128):
    B, N, C = x_spa.shape
    assert C == num_dim
    _, M, HD = x_fusion.shape
    assert M == 1, "module semantics require a length-1 fusion token"
    MID = params["w_glo"].shape[1]
    assert 2 * MID == C, "cat([x1, x2]) + x_glo requires 2*mid_dim == num_dim"
    scale = float((num_dim // 2) ** (-0.5))

    # Batch tile.  Bt in the 8..128 range keeps VMEM well under the 32 MiB
    # scoped default on every generation (incl. v7x's 64 MiB physical) while
    # amortizing the ~0.35 us per-step overhead and filling the MXU rows.
    Bt = int(max(1, min(block_b, B)))
    if Bt < B:
        Bt = max(8, (Bt // 8) * 8)          # keep multi-block tiles sublane-aligned
    num_blocks = -(-B // Bt)
    Bp = num_blocks * Bt

    # Fuse the four spatial projection weights into one (C, 4*MID) matmul.
    w_spa = jnp.concatenate(
        [params["w_s1"], params["w_s2"], params["w_v1"], params["w_v2"]], axis=1
    )

    # Flatten the length-1 fusion token and zero-pad the batch to Bp.
    x_fus2 = x_fusion.reshape(B, HD)
    if Bp != B:
        pad = Bp - B
        x_spa_p = jnp.concatenate(
            [x_spa, jnp.zeros((pad, N, C), x_spa.dtype)], axis=0)
        x_fus_p = jnp.concatenate(
            [x_fus2, jnp.zeros((pad, HD), x_fus2.dtype)], axis=0)
    else:
        x_spa_p, x_fus_p = x_spa, x_fus2

    weights = [w_spa, params["w_glo"], params["w_fus"],
               params["w_p1"], params["w_p2"], params["ln_w"], params["ln_b"]]

    kernel = functools.partial(_cca_kernel, scale=scale, eps=eps)

    const_spec = lambda shape: pl.BlockSpec(shape, lambda b: (0,) * len(shape))
    in_specs = [
        pl.BlockSpec((Bt, N, C), lambda b: (b, 0, 0)),   # x_spa tile
        pl.BlockSpec((Bt, HD), lambda b: (b, 0)),        # x_fusion tile
    ] + [const_spec(w.shape) for w in weights]
    out_spec = pl.BlockSpec((Bt, C), lambda b: (b, 0))   # lane-dense output

    # Advisory cost estimate so XLA can overlap/schedule this small kernel.
    itemsize = x_spa.dtype.itemsize
    flops = (
        2 * Bp * N * C * 4 * MID      # fused spatial projection
        + 2 * Bp * C * MID            # global query projection
        + 2 * Bp * HD * MID           # fusion query projection
        + 8 * Bp * N * MID            # logits + weighted sums
        + 4 * Bp * C * C              # MLP
    )
    transcendentals = 2 * Bp * N + Bp
    bytes_accessed = (
        itemsize * (Bp * N * C + Bp * HD + Bp * C)
        + sum(int(w.size) * w.dtype.itemsize for w in weights)
    )

    out2d = pl.pallas_call(
        kernel,
        out_shape=jax.ShapeDtypeStruct((Bp, C), x_spa.dtype),
        grid_spec=pltpu.PrefetchScalarGridSpec(
            num_scalar_prefetch=0,
            grid=(num_blocks,),
            in_specs=in_specs,
            out_specs=out_spec,
            scratch_shapes=[pltpu.VMEM((Bt, C), jnp.float32)],
        ),
        compiler_params=pltpu.CompilerParams(
            # Batch tiles are fully independent -> let v7x shard them across
            # its two TensorCores; neutral on v5e/v6e.
            dimension_semantics=("parallel",),
        ),
        cost_estimate=pl.CostEstimate(
            flops=flops,
            transcendentals=transcendentals,
            bytes_accessed=bytes_accessed,
        ),
    )(x_spa_p, x_fus_p, *weights)

    return out2d[:B].reshape(B, 1, C)


# ----------------------------------------------------------------------------
# Pure-JAX reference (mirrors the PyTorch forward) for a correctness check.
# ----------------------------------------------------------------------------
def cca_reference(x_spa, x_fusion, params, *, num_dim, eps=1e-5):
    scale = (num_dim // 2) ** (-0.5)
    x_glo = jnp.mean(x_spa, axis=1, keepdims=True)
    x_glo_norm = x_glo @ params["w_glo"]
    x_fus_norm = x_fusion @ params["w_fus"]
    x_s1 = x_spa @ params["w_s1"]
    x_s2 = x_spa @ params["w_s2"]
    att1 = jax.nn.softmax(jnp.einsum("bqm,bkm->bqk", x_glo_norm, x_s1) * scale, axis=-1)
    att2 = jax.nn.softmax(jnp.einsum("bqm,bkm->bqk", x_fus_norm, x_s2) * scale, axis=-1)
    v1 = x_spa @ params["w_v1"]
    v2 = x_spa @ params["w_v2"]
    x1 = jnp.einsum("bqk,bkm->bqm", att1, v1)
    x2 = jnp.einsum("bqk,bkm->bqm", att2, v2)
    x = jnp.concatenate([x1, x2], axis=-1) + x_glo
    mu = jnp.mean(x, axis=-1, keepdims=True)
    var = jnp.mean((x - mu) ** 2, axis=-1, keepdims=True)
    xn = (x - mu) / jnp.sqrt(var + eps) * params["ln_w"][0] + params["ln_b"][0]
    proj = jnp.maximum(xn @ params["w_p1"], 0.0) @ params["w_p2"]
    return proj + x


# ----------------------------------------------------------------------------
# Main
# ----------------------------------------------------------------------------
if __name__ == "__main__":
    # Small, self-consistent shapes (mid_dim = num_dim // 2 as the forward implies).
    # B=16 with block_b=8 exercises the batch-blocked grid (2 grid steps).
    B, N = 16, 16
    NUM_DIM = 256
    MID_DIM = NUM_DIM // 2     # 128
    HEAD_DIM = 128

    key = jax.random.PRNGKey(0)
    ks = jax.random.split(key, 12)
    init = lambda k, shape, fan_in: (
        jax.random.normal(k, shape, dtype=jnp.float32) / jnp.sqrt(float(fan_in))
    )

    # Weights stored as (in_features, out_features) (pre-transposed vs torch).
    # bf16 weights are also supported by the kernel (cast here if desired; the
    # allclose tolerance below would then need loosening).
    params = {
        "w_glo": init(ks[0], (NUM_DIM, MID_DIM), NUM_DIM),
        "w_fus": init(ks[1], (HEAD_DIM, MID_DIM), HEAD_DIM),
        "w_s1":  init(ks[2], (NUM_DIM, MID_DIM), NUM_DIM),
        "w_s2":  init(ks[3], (NUM_DIM, MID_DIM), NUM_DIM),
        "w_v1":  init(ks[4], (NUM_DIM, MID_DIM), NUM_DIM),
        "w_v2":  init(ks[5], (NUM_DIM, MID_DIM), NUM_DIM),
        "w_p1":  init(ks[6], (2 * MID_DIM, NUM_DIM), 2 * MID_DIM),
        "w_p2":  init(ks[7], (NUM_DIM, 2 * MID_DIM), NUM_DIM),
        "ln_w":  jnp.ones((1, NUM_DIM), jnp.float32),
        "ln_b":  jnp.zeros((1, NUM_DIM), jnp.float32),
    }

    x_spa = jax.random.normal(ks[8], (B, N, NUM_DIM), dtype=jnp.float32)
    x_fusion = jax.random.normal(ks[9], (B, 1, HEAD_DIM), dtype=jnp.float32)

    out = cca_forward(x_spa, x_fusion, params, num_dim=NUM_DIM, block_b=8)
    out = jax.block_until_ready(out)

    ref = cca_reference(x_spa, x_fusion, params, num_dim=NUM_DIM)
    ref = jax.block_until_ready(ref)

    assert out.shape == (B, 1, NUM_DIM), out.shape
    assert jnp.allclose(out, ref, rtol=2e-4, atol=2e-4), (
        float(jnp.max(jnp.abs(out - ref)))
    )
    print("KERNEL_OK")
</pallas_src>

<mosaic_0001>
module attributes {stable_mosaic.version = 11 : i64} {
  func.func @_cca_kernel(%arg0: i32, %arg1: memref<8x16x256xf32, #tpu.memory_space<vmem>>, %arg2: memref<8x128xf32, #tpu.memory_space<vmem>>, %arg3: memref<256x512xf32, #tpu.memory_space<vmem>>, %arg4: memref<256x128xf32, #tpu.memory_space<vmem>>, %arg5: memref<128x128xf32, #tpu.memory_space<vmem>>, %arg6: memref<256x256xf32, #tpu.memory_space<vmem>>, %arg7: memref<256x256xf32, #tpu.memory_space<vmem>>, %arg8: memref<1x256xf32, #tpu.memory_space<vmem>>, %arg9: memref<1x256xf32, #tpu.memory_space<vmem>>, %arg10: memref<8x256xf32, #tpu.memory_space<vmem>>, %arg11: memref<8x256xf32, #tpu.memory_space<vmem>>) attributes {dimension_semantics = [#tpu.dimension_semantics<parallel>], iteration_bounds = array<i64: 2>, scalar_prefetch = 0 : i64, scratch_operands = 1 : i64, tpu.core_type = #tpu.core_type<tc>, window_params = [{transform_indices = @transform_0, window_bounds = array<i64: 8, 16, 256>}, {transform_indices = @transform_1, window_bounds = array<i64: 8, 128>}, {pipeline_mode = #tpu.pipeline_mode<synchronous>, transform_indices = @transform_2, window_bounds = array<i64: 256, 512>}, {pipeline_mode = #tpu.pipeline_mode<synchronous>, transform_indices = @transform_3, window_bounds = array<i64: 256, 128>}, {pipeline_mode = #tpu.pipeline_mode<synchronous>, transform_indices = @transform_4, window_bounds = array<i64: 128, 128>}, {pipeline_mode = #tpu.pipeline_mode<synchronous>, transform_indices = @transform_5, window_bounds = array<i64: 256, 256>}, {pipeline_mode = #tpu.pipeline_mode<synchronous>, transform_indices = @transform_6, window_bounds = array<i64: 256, 256>}, {pipeline_mode = #tpu.pipeline_mode<synchronous>, transform_indices = @transform_7, window_bounds = array<i64: 1, 256>}, {pipeline_mode = #tpu.pipeline_mode<synchronous>, transform_indices = @transform_8, window_bounds = array<i64: 1, 256>}, {transform_indices = @transform_9, window_bounds = array<i64: 8, 256>}]} {
    %c0 = arith.constant 0 : index
    %c0_0 = arith.constant 0 : index
    %c0_1 = arith.constant 0 : index
    %0 = vector.load %arg1[%c0, %c0_0, %c0_1] : memref<8x16x256xf32, #tpu.memory_space<vmem>>, vector<8x16x256xf32>
    %c0_2 = arith.constant 0 : index
    %c0_3 = arith.constant 0 : index
    %1 = vector.load %arg2[%c0_2, %c0_3] : memref<8x128xf32, #tpu.memory_space<vmem>>, vector<8x128xf32>
    %cst = arith.constant dense<0.000000e+00> : vector<8x256xf32>
    %2 = vector.multi_reduction <add>, %0, %cst [1] : vector<8x16x256xf32> to vector<8x256xf32>
    %cst_4 = arith.constant 1.600000e+01 : f32
    %3 = vector.broadcast %cst_4 : f32 to vector<8x256xf32>
    %4 = arith.divf %2, %3 : vector<8x256xf32>
    %5 = vector.shape_cast %0 : vector<8x16x256xf32> to vector<128x256xf32>
    %c0_5 = arith.constant 0 : index
    %c0_6 = arith.constant 0 : index
    %6 = vector.load %arg3[%c0_5, %c0_6] : memref<256x512xf32, #tpu.memory_space<vmem>>, vector<256x512xf32>
    %cst_7 = arith.constant dense<0.000000e+00> : vector<128x512xf32>
    %7 = tpu.matmul %5, %6, %cst_7 {dimension_numbers = #tpu.dot_dimension_numbers<[1], [0], [0], [1], [0, 0, 1, 1], [], []>} : vector<128x256xf32>, vector<256x512xf32>, vector<128x512xf32> -> vector<128x512xf32>
    %8 = vector.shape_cast %7 : vector<128x512xf32> to vector<8x16x512xf32>
    %9 = vector.extract_strided_slice %8 {offsets = [0, 0, 0], sizes = [8, 16, 128], strides = [1, 1, 1]} : vector<8x16x512xf32> to vector<8x16x128xf32>
    %10 = vector.extract_strided_slice %8 {offsets = [0, 0, 128], sizes = [8, 16, 128], strides = [1, 1, 1]} : vector<8x16x512xf32> to vector<8x16x128xf32>
    %11 = vector.extract_strided_slice %8 {offsets = [0, 0, 256], sizes = [8, 16, 128], strides = [1, 1, 1]} : vector<8x16x512xf32> to vector<8x16x128xf32>
    %12 = vector.extract_strided_slice %8 {offsets = [0, 0, 384], sizes = [8, 16, 128], strides = [1, 1, 1]} : vector<8x16x512xf32> to vector<8x16x128xf32>
    %c0_8 = arith.constant 0 : index
    %c0_9 = arith.constant 0 : index
    %13 = vector.load %arg4[%c0_8, %c0_9] : memref<256x128xf32, #tpu.memory_space<vmem>>, vector<256x128xf32>
    %cst_10 = arith.constant dense<0.000000e+00> : vector<8x128xf32>
    %14 = tpu.matmul %4, %13, %cst_10 {dimension_numbers = #tpu.dot_dimension_numbers<[1], [0], [0], [1], [0, 0, 1, 1], [], []>} : vector<8x256xf32>, vector<256x128xf32>, vector<8x128xf32> -> vector<8x128xf32>
    %c0_11 = arith.constant 0 : index
    %c0_12 = arith.constant 0 : index
    %15 = vector.load %arg5[%c0_11, %c0_12] : memref<128x128xf32, #tpu.memory_space<vmem>>, vector<128x128xf32>
    %cst_13 = arith.constant dense<0.000000e+00> : vector<8x128xf32>
    %16 = tpu.matmul %1, %15, %cst_13 {dimension_numbers = #tpu.dot_dimension_numbers<[1], [0], [0], [1], [0, 0, 1, 1], [], []>} : vector<8x128xf32>, vector<128x128xf32>, vector<8x128xf32> -> vector<8x128xf32>
    %17 = vector.shape_cast %14 : vector<8x128xf32> to vector<8x1x128xf32>
    %18 = vector.broadcast %17 : vector<8x1x128xf32> to vector<8x16x128xf32>
    %19 = arith.mulf %18, %9 : vector<8x16x128xf32>
    %cst_14 = arith.constant dense<0.000000e+00> : vector<8x16xf32>
    %20 = vector.multi_reduction <add>, %19, %cst_14 [2] : vector<8x16x128xf32> to vector<8x16xf32>
    %cst_15 = arith.constant 0.0883883461 : f32
    %21 = vector.broadcast %cst_15 : f32 to vector<8x16xf32>
    %22 = arith.mulf %20, %21 : vector<8x16xf32>
    %23 = vector.shape_cast %16 : vector<8x128xf32> to vector<8x1x128xf32>
    %24 = vector.broadcast %23 : vector<8x1x128xf32> to vector<8x16x128xf32>
    %25 = arith.mulf %24, %10 : vector<8x16x128xf32>
    %cst_16 = arith.constant dense<0.000000e+00> : vector<8x16xf32>
    %26 = vector.multi_reduction <add>, %25, %cst_16 [2] : vector<8x16x128xf32> to vector<8x16xf32>
    %cst_17 = arith.constant 0.0883883461 : f32
    %27 = vector.broadcast %cst_17 : f32 to vector<8x16xf32>
    %28 = arith.mulf %26, %27 : vector<8x16xf32>
    %cst_18 = arith.constant dense<0xFF800000> : vector<8xf32>
    %29 = vector.multi_reduction <maximumf>, %22, %cst_18 [1] : vector<8x16xf32> to vector<8xf32>
    %30 = vector.shape_cast %29 : vector<8xf32> to vector<8x1xf32>
    %31 = vector.broadcast %30 : vector<8x1xf32> to vector<8x16xf32>
    %32 = arith.subf %22, %31 : vector<8x16xf32>
    %33 = math.exp %32 : vector<8x16xf32>
    %cst_19 = arith.constant dense<0.000000e+00> : vector<8xf32>
    %34 = vector.multi_reduction <add>, %33, %cst_19 [1] : vector<8x16xf32> to vector<8xf32>
    %35 = vector.shape_cast %34 : vector<8xf32> to vector<8x1xf32>
    %cst_20 = arith.constant 1.000000e+00 : f32
    %36 = vector.broadcast %cst_20 : f32 to vector<8x1xf32>
    %37 = arith.divf %36, %35 : vector<8x1xf32>
    %38 = vector.broadcast %37 : vector<8x1xf32> to vector<8x16xf32>
    %39 = arith.mulf %33, %38 : vector<8x16xf32>
    %cst_21 = arith.constant dense<0xFF800000> : vector<8xf32>
    %40 = vector.multi_reduction <maximumf>, %28, %cst_21 [1] : vector<8x16xf32> to vector<8xf32>
    %41 = vector.shape_cast %40 : vector<8xf32> to vector<8x1xf32>
    %42 = vector.broadcast %41 : vector<8x1xf32> to vector<8x16xf32>
    %43 = arith.subf %28, %42 : vector<8x16xf32>
    %44 = math.exp %43 : vector<8x16xf32>
    %cst_22 = arith.constant dense<0.000000e+00> : vector<8xf32>
    %45 = vector.multi_reduction <add>, %44, %cst_22 [1] : vector<8x16xf32> to vector<8xf32>
    %46 = vector.shape_cast %45 : vector<8xf32> to vector<8x1xf32>
    %cst_23 = arith.constant 1.000000e+00 : f32
    %47 = vector.broadcast %cst_23 : f32 to vector<8x1xf32>
    %48 = arith.divf %47, %46 : vector<8x1xf32>
    %49 = vector.broadcast %48 : vector<8x1xf32> to vector<8x16xf32>
    %50 = arith.mulf %44, %49 : vector<8x16xf32>
    %51 = vector.shape_cast %39 : vector<8x16xf32> to vector<8x16x1xf32>
    %52 = vector.broadcast %51 : vector<8x16x1xf32> to vector<8x16x128xf32>
    %53 = arith.mulf %52, %11 : vector<8x16x128xf32>
    %cst_24 = arith.constant dense<0.000000e+00> : vector<8x128xf32>
    %54 = vector.multi_reduction <add>, %53, %cst_24 [1] : vector<8x16x128xf32> to vector<8x128xf32>
    %55 = vector.shape_cast %50 : vector<8x16xf32> to vector<8x16x1xf32>
    %56 = vector.broadcast %55 : vector<8x16x1xf32> to vector<8x16x128xf32>
    %57 = arith.mulf %56, %12 : vector<8x16x128xf32>
    %cst_25 = arith.constant dense<0.000000e+00> : vector<8x128xf32>
    %58 = vector.multi_reduction <add>, %57, %cst_25 [1] : vector<8x16x128xf32> to vector<8x128xf32>
    %59 = vector.extract_strided_slice %4 {offsets = [0, 0], sizes = [8, 128], strides = [1, 1]} : vector<8x256xf32> to vector<8x128xf32>
    %60 = arith.addf %54, %59 : vector<8x128xf32>
    %c0_26 = arith.constant 0 : index
    %c0_27 = arith.constant 0 : index
    %61 = vector.load %arg11[%c0_26, %c0_27] : memref<8x256xf32, #tpu.memory_space<vmem>>, vector<8x128xf32>
    tpu.vector_store %arg11[%c0_26, %c0_27], %60 {strides = array<i32>} : memref<8x256xf32, #tpu.memory_space<vmem>>, vector<8x128xf32>,
    %62 = vector.extract_strided_slice %4 {offsets = [0, 128], sizes = [8, 128], strides = [1, 1]} : vector<8x256xf32> to vector<8x128xf32>
    %63 = arith.addf %58, %62 : vector<8x128xf32>
    %c0_28 = arith.constant 0 : index
    %c128 = arith.constant 128 : index
    %64 = vector.load %arg11[%c0_28, %c128] : memref<8x256xf32, #tpu.memory_space<vmem>>, vector<8x128xf32>
    tpu.vector_store %arg11[%c0_28, %c128], %63 {strides = array<i32>} : memref<8x256xf32, #tpu.memory_space<vmem>>, vector<8x128xf32>,
    %c0_29 = arith.constant 0 : index
    %c0_30 = arith.constant 0 : index
    %65 = vector.load %arg11[%c0_29, %c0_30] : memref<8x256xf32, #tpu.memory_space<vmem>>, vector<8x256xf32>
    %cst_31 = arith.constant dense<0.000000e+00> : vector<8xf32>
    %66 = vector.multi_reduction <add>, %65, %cst_31 [1] : vector<8x256xf32> to vector<8xf32>
    %67 = vector.shape_cast %66 : vector<8xf32> to vector<8x1xf32>
    %cst_32 = arith.constant 2.560000e+02 : f32
    %68 = vector.broadcast %cst_32 : f32 to vector<8x1xf32>
    %69 = arith.divf %67, %68 : vector<8x1xf32>
    %70 = vector.broadcast %69 : vector<8x1xf32> to vector<8x256xf32>
    %71 = arith.subf %65, %70 : vector<8x256xf32>
    %72 = arith.mulf %71, %71 : vector<8x256xf32>
    %cst_33 = arith.constant dense<0.000000e+00> : vector<8xf32>
    %73 = vector.multi_reduction <add>, %72, %cst_33 [1] : vector<8x256xf32> to vector<8xf32>
    %74 = vector.shape_cast %73 : vector<8xf32> to vector<8x1xf32>
    %cst_34 = arith.constant 2.560000e+02 : f32
    %75 = vector.broadcast %cst_34 : f32 to vector<8x1xf32>
    %76 = arith.divf %74, %75 : vector<8x1xf32>
    %77 = vector.broadcast %69 : vector<8x1xf32> to vector<8x256xf32>
    %78 = arith.subf %65, %77 : vector<8x256xf32>
    %cst_35 = arith.constant 9.99999974E-6 : f32
    %79 = vector.broadcast %cst_35 : f32 to vector<8x1xf32>
    %80 = arith.addf %76, %79 : vector<8x1xf32>
    %81 = math.rsqrt %80 : vector<8x1xf32>
    %82 = vector.broadcast %81 : vector<8x1xf32> to vector<8x256xf32>
    %83 = arith.mulf %78, %82 : vector<8x256xf32>
    %c0_36 = arith.constant 0 : index
    %c0_37 = arith.constant 0 : index
    %84 = vector.load %arg8[%c0_36, %c0_37] : memref<1x256xf32, #tpu.memory_space<vmem>>, vector<1x256xf32>
    %85 = vector.broadcast %84 : vector<1x256xf32> to vector<8x256xf32>
    %86 = arith.mulf %83, %85 : vector<8x256xf32>
    %c0_38 = arith.constant 0 : index
    %c0_39 = arith.constant 0 : index
    %87 = vector.load %arg9[%c0_38, %c0_39] : memref<1x256xf32, #tpu.memory_space<vmem>>, vector<1x256xf32>
    %88 = vector.broadcast %87 : vector<1x256xf32> to vector<8x256xf32>
    %89 = arith.addf %86, %88 : vector<8x256xf32>
    %c0_40 = arith.constant 0 : index
    %c0_41 = arith.constant 0 : index
    %90 = vector.load %arg6[%c0_40, %c0_41] : memref<256x256xf32, #tpu.memory_space<vmem>>, vector<256x256xf32>
    %cst_42 = arith.constant dense<0.000000e+00> : vector<8x256xf32>
    %91 = tpu.matmul %89, %90, %cst_42 {dimension_numbers = #tpu.dot_dimension_numbers<[1], [0], [0], [1], [0, 0, 1, 1], [], []>} : vector<8x256xf32>, vector<256x256xf32>, vector<8x256xf32> -> vector<8x256xf32>
    %cst_43 = arith.constant 0.000000e+00 : f32
    %92 = vector.broadcast %cst_43 : f32 to vector<8x256xf32>
    %93 = arith.maximumf %91, %92 : vector<8x256xf32>
    %c0_44 = arith.constant 0 : index
    %c0_45 = arith.constant 0 : index
    %94 = vector.load %arg7[%c0_44, %c0_45] : memref<256x256xf32, #tpu.memory_space<vmem>>, vector<256x256xf32>
    %cst_46 = arith.constant dense<0.000000e+00> : vector<8x256xf32>
    %95 = tpu.matmul %93, %94, %cst_46 {dimension_numbers = #tpu.dot_dimension_numbers<[1], [0], [0], [1], [0, 0, 1, 1], [], []>} : vector<8x256xf32>, vector<256x256xf32>, vector<8x256xf32> -> vector<8x256xf32>
    %96 = arith.addf %95, %65 : vector<8x256xf32>
    %c0_47 = arith.constant 0 : index
    %c0_48 = arith.constant 0 : index
    %97 = vector.load %arg10[%c0_47, %c0_48] : memref<8x256xf32, #tpu.memory_space<vmem>>, vector<8x256xf32>
    tpu.vector_store %arg10[%c0_47, %c0_48], %96 {strides = array<i32>} : memref<8x256xf32, #tpu.memory_space<vmem>>, vector<8x256xf32>,
    return
  }
  func.func @transform_0(%arg0: i32) -> (i32, i32, i32) {
    %c0_i32 = arith.constant 0 : i32
    %c0_i32_0 = arith.constant 0 : i32
    %c0_i32_1 = arith.constant 0 : i32
    return %arg0, %c0_i32, %c0_i32_0 : i32, i32, i32
  }
  func.func @transform_1(%arg0: i32) -> (i32, i32) {
    %c0_i32 = arith.constant 0 : i32
    %c0_i32_0 = arith.constant 0 : i32
    return %arg0, %c0_i32 : i32, i32
  }
  func.func @transform_2(%arg0: i32) -> (i32, i32) {
    %c0_i32 = arith.constant 0 : i32
    %c0_i32_0 = arith.constant 0 : i32
    %c0_i32_1 = arith.constant 0 : i32
    return %c0_i32, %c0_i32_0 : i32, i32
  }
  func.func @transform_3(%arg0: i32) -> (i32, i32) {
    %c0_i32 = arith.constant 0 : i32
    %c0_i32_0 = arith.constant 0 : i32
    %c0_i32_1 = arith.constant 0 : i32
    return %c0_i32, %c0_i32_0 : i32, i32
  }
  func.func @transform_4(%arg0: i32) -> (i32, i32) {
    %c0_i32 = arith.constant 0 : i32
    %c0_i32_0 = arith.constant 0 : i32
    %c0_i32_1 = arith.constant 0 : i32
    return %c0_i32, %c0_i32_0 : i32, i32
  }
  func.func @transform_5(%arg0: i32) -> (i32, i32) {
    %c0_i32 = arith.constant 0 : i32
    %c0_i32_0 = arith.constant 0 : i32
    %c0_i32_1 = arith.constant 0 : i32
    return %c0_i32, %c0_i32_0 : i32, i32
  }
  func.func @transform_6(%arg0: i32) -> (i32, i32) {
    %c0_i32 = arith.constant 0 : i32
    %c0_i32_0 = arith.constant 0 : i32
    %c0_i32_1 = arith.constant 0 : i32
    return %c0_i32, %c0_i32_0 : i32, i32
  }
  func.func @transform_7(%arg0: i32) -> (i32, i32) {
    %c0_i32 = arith.constant 0 : i32
    %c0_i32_0 = arith.constant 0 : i32
    %c0_i32_1 = arith.constant 0 : i32
    return %c0_i32, %c0_i32_0 : i32, i32
  }
  func.func @transform_8(%arg0: i32) -> (i32, i32) {
    %c0_i32 = arith.constant 0 : i32
    %c0_i32_0 = arith.constant 0 : i32
    %c0_i32_1 = arith.constant 0 : i32
    return %c0_i32, %c0_i32_0 : i32, i32
  }
  func.func @transform_9(%arg0: i32) -> (i32, i32) {
    %c0_i32 = arith.constant 0 : i32
    %c0_i32_0 = arith.constant 0 : i32
    return %arg0, %c0_i32 : i32, i32
  }
}

</mosaic_0001>

<bundles_post_ra>
// kernel: tpu_custom_call.1
= control target key start
LH: loop header
LB: loop body
LE: loop exit
PB: predicated region body
PF: predicated region fallthrough
CT: control target
= control target key end

     0   :  { %s4901_s0 = inlined_call_operand.hbm [shape: f32[16,16,256], index: 0, kind: input, shape index: {}]   ;;  %s4902_s1 = inlined_call_operand.hbm [shape: f32[16,128], index: 1, kind: input, shape index: {}]   ;;  %s4903_s2 = inlined_call_operand.hbm [shape: f32[256,512], index: 2, kind: input, shape index: {}]   ;;  %s4904_s3 = inlined_call_operand.hbm [shape: f32[256,128], index: 3, kind: input, shape index: {}]   ;;  %s4905_s4 = inlined_call_operand.hbm [shape: f32[128,128], index: 4, kind: input, shape index: {}]   ;;  %s4906_s5 = inlined_call_operand.hbm [shape: f32[256,256], index: 5, kind: input, shape index: {}]   ;;  %s4907_s6 = inlined_call_operand.hbm [shape: f32[256,256], index: 6, kind: input, shape index: {}]   ;;  %s4908_s7 = inlined_call_operand.vmem [shape: f32[1,256], index: 7, kind: input, shape index: {}]   ;;  %s4909_s8 = inlined_call_operand.vmem [shape: f32[1,256], index: 8, kind: input, shape index: {}]   ;;  %s4910_s9 = inlined_call_operand.hbm [shape: f32[16,256], index: 9, kind: output, shape index: {}]  }
   0x1   :  { %4932 = sst [smem:[#allocation93_spill]] %s4903_s2 }
   0x2   :  { %4933 = sst [smem:[#allocation94_spill]] %s4904_s3 }
   0x3   :  { %4934 = sst [smem:[#allocation95_spill]] %s4905_s4 }
   0x4   :  { %4935 = sst [smem:[#allocation96_spill]] %s4906_s5 }
   0x5   :  { %4936 = sst [smem:[#allocation97_spill]] %s4907_s6 }
   0x6   :  { %14 = vsyncpa [#allocation4], 0 }
   0x7   :  { %16 = vsyncpa [#allocation4 + $0x1], 0 }
   0x8   :  { %17 = vsyncpa [#allocation7], 0 }
   0x9   :  { %19 = vsyncpa [#allocation7 + $0x1], 0 }
   0xa   :  { %20 = vsyncpa [#allocation10], 0 }
   0xb   :  { %21 = vsyncpa [#allocation13], 0 }
   0xc   :  { %22 = vsyncpa [#allocation5], 0 }
   0xd   :  { %24 = vsyncpa [#allocation5 + $0x1], 0  ;;  %s3576_s30 = smov 0   ;;  %s3578_s10 = smov 0  }
   0xe   :  { %s3580_s11 = smov 0   ;;  %s3582_s12 = smov 0  }
   0xf LB: > { %4937 = sst [smem:[#allocation22_spill]] %s3506_s11  ;;  %s3600_s16 = sadd.s32 4294967295, %s3510_s12   ;;  %s3510_s12 = sphi %s3582_s12, %s5093_s12   ;;  %s3506_s11 = sphi %s3580_s11, %s5095_s11   ;;  %s3502_s10 = sphi %s3578_s10, %s5097_s10   ;;  %s3498_s30 = sphi %s3576_s30, %s5096_s30  }
  0x10   : > { %s4938_s2 = sld [smem:[#allocation93_spill]]  ;;  %p3000_p0 = scmp.ge.s32.totalorder %s3510_s12, 1 }
  0x11   : > { %p51_p1 = scmp.eq.s32.totalorder %s3600_s16, 0  ;;  %p260_p2 = scmp.lt.s32.totalorder %s3510_s12, 3 }
  0x12   : > { %s3512_s18 = smov [#allocation8]   ;;  %s4940_s3 = sld [smem:[#allocation94_spill]] }
  0x13   : > { %p3605_p3 = pnand %p3000_p0, %p260_p2  ;;  %s273_s19 = sshll.u32 %s3512_s18, 4  ;;  %s274_s19 = int_to_ptr.vmem [resolvable:$true] %s273_s19 }
  0x14   : > { %s3513_s24 = smov [#allocation9]   ;;  %s3514_s26 = smov 512  }
  0x15   : > { %p3056_p4 = pneg %p3605_p3  ;;  %s287_s25 = sshll.u32 %s3513_s24, 4  ;;  %s288_s25 = int_to_ptr.vmem [resolvable:$true] %s287_s25 }
  0x16   : > { %s271_s15 = sshll.u32 %s4938_s2, 4  ;;  %s3515_s27 = smov 32   ;;  %s272_s15 = int_to_ptr.hbm [resolvable:$true] %s271_s15 }
  0x17   : > { %p3617_p6 = pnand %p3056_p4, %p51_p1  ;;  %s3516_s28 = smov 128  }
  0x18   : > { %s285_s22 = sshll.u32 %s4940_s3, 4  ;;  %s3517_s29 = smov 8   ;;  %s286_s22 = int_to_ptr.hbm [resolvable:$true] %s285_s22 }
  0x19   : > { %3059 = dma.hbm_to_vmem [thread:$0]  (!%p3617_p6), %s272_s15, 16384, %s274_s19, [#allocation7], %s3514_s26, %s3514_s26, %s3515_s27  }
  0x1a   : > { %3062 = dma.hbm_to_vmem [thread:$0]  (!%p3617_p6), %s286_s22, 4096, %s288_s25, [#allocation10], %s3516_s28, %s3516_s28, %s3517_s29  }
  0x1b   : > { %s4942_s5 = sld [smem:[#allocation96_spill]]  ;;  %s3518_s20 = smov [#allocation12]  }
  0x1c   : > { %s315_s21 = sshll.u32 %s3518_s20, 4  ;;  %s4943_s4 = sld [smem:[#allocation95_spill]]  ;;  %s316_s21 = int_to_ptr.vmem [resolvable:$true] %s315_s21 }
  0x1d   : > { %s4911_s19 = smov 256   ;;  %s4912_s26 = smov 16  }
  0x1e   : > { %s3521_s22 = smov [#allocation11]   ;;  %s4944_s6 = sld [smem:[#allocation97_spill]] }
  0x1f   : > { %s301_s25 = sshll.u32 %s3521_s22, 4  ;;  %s3522_s14 = smov [#allocation14]   ;;  %s302_s25 = int_to_ptr.vmem [resolvable:$true] %s301_s25 }
  0x20   : > { %s2999_s20 = sadd.s32 4294967294, %s3510_s12   ;;  %s37_s24 = sadd.s32 1, %s3506_s11 }
  0x21   : > { %s313_s18 = sshll.u32 %s4942_s5, 4  ;;  %p44_p7 = scmp.ne.s32.totalorder %s3506_s11, %s3502_s10  ;;  %s314_s18 = int_to_ptr.hbm [resolvable:$true] %s313_s18 }
  0x22   : > { %s299_s15 = sshll.u32 %s4943_s4, 4  ;;  %p45_p9 = scmp.eq.s32.totalorder %s3510_s12, 0  ;;  %s300_s15 = int_to_ptr.hbm [resolvable:$true] %s299_s15 }
  0x23   : > { %3068 = dma.hbm_to_vmem [thread:$0]  (!%p3617_p6), %s314_s18, 8192, %s316_s21, [#allocation13], %s4911_s19, %s4911_s19, %s4912_s26  }
  0x24   : > { %s327_s13 = sshll.u32 %s4944_s6, 4  ;;  %s329_s18 = sshll.u32 %s3522_s14, 4  ;;  %s328_s13 = int_to_ptr.hbm [resolvable:$true] %s327_s13  ;;  %s330_s18 = int_to_ptr.vmem [resolvable:$true] %s329_s18 }
  0x25   : > { %3065 = dma.hbm_to_vmem [thread:$0]  (!%p3617_p6), %s300_s15, 2048, %s302_s25, [#allocation10], %s3516_s28, %s3516_s28, %s3517_s29  }
  0x26   : > { %3071 = dma.hbm_to_vmem [thread:$0]  (!%p3617_p6), %s328_s13, 8192, %s330_s18, [#allocation13], %s4911_s19, %s4911_s19, %s4912_s26  }
  0x27   : > { %s3648_s21 = sadd.s32 1, %s3510_s12   ;;  %p50_p10 = scmp.ne.s32.totalorder %s3502_s10, %s3498_s30 }
  0x28   : > { %4945 = sst [smem:[#allocation23_spill]] %s3648_s21  ;;  %s34_s22 = ssub.s32 %s3510_s12, %s3648_s21 }
  0x29   : > { %p35_p8 = scmp.eq.s32.totalorder %s34_s22, 0  ;;  %p247_p11 = scmp.eq.s32.totalorder %s3600_s16, 1 }
  0x2a   : > { %p3662_p12 = por %p45_p9, %p44_p7  ;;  %p3668_p13 = por %p51_p1, %p50_p10 }
  0x2b   : > { %s3660_s28 = scalar_select %p35_p8, %s3506_s11, %s37_s24  }
  0x2c   : > { %p3672_p0 = por %p247_p11, %p44_p7  ;;  %p253_p2 = scmp.eq.s32.totalorder %s2999_s20, 1 }
  0x2d   : > { %4946 = sst [smem:[#allocation24_spill]] %s3660_s28  ;;  %p3088_p4 = scmp.lt.s32.totalorder %s3510_s12, 2 }
  0x2e   : > { %s3678_s25 = sand.u32 1, %s3506_s11   ;;  %p3680_p6 = por %p253_p2, %p50_p10 }
  0x2f   : > { %s3007_s2 = sshll.u32 %s3678_s25, 8  ;;  %s3028_s13 = sshll.u32 %s3510_s12, 8 }
  0x30   : > { %s359_s24 = scalar_lea.hbm %s4901_s0, %s3028_s13  ;;  %s353_s19 = scalar_lea.vmem [#allocation3], %s3007_s2 }
  0x31   : > { %s360_s22 = sshll.u32 %s359_s24, 4  ;;  %s362_s26 = sshll.u32 %s353_s19, 4  ;;  %s361_s22 = int_to_ptr.hbm [resolvable:$true] %s360_s22  ;;  %s363_s26 = int_to_ptr.vmem [resolvable:$true] %s362_s26 }
  0x32   : > { %p3691_p7 = pnand %p3088_p4, %p3662_p12  ;;  %s372_s3 = sand.u32 1, %s3510_s12  }
  0x33   : > { %s3011_s4 = sshll.u32 %s3678_s25, 3  ;;  %s350_s5 = scalar_lea.sflag [#allocation4], %s3678_s25 }
  0x34   : > { %s3368_s6 = sshra.s32 %s361_s22, 4  ;;  %p3372_p9 = pneg %p3691_p7  ;;  %s3369_s6 = int_to_ptr.hbm [resolvable:$true] %s3368_s6 }
  0x35   : > { %s3370_s28 = scalar_lea.hbm %s3369_s6, 256  ;;  %s3375_s2 = scalar_lea.hbm %s4901_s0, 512 }
  0x36   : > { %p3371_p8 = scmp.ne.s32.totalorder %s3369_s6, %s3370_s28  ;;  %p3376_p12 = scmp.lt.s32.totalorder %s3369_s6, %s4901_s0 }
  0x37   : > { %p3377_p2 = scmp.lt.s32.totalorder %s3375_s2, %s3370_s28 }
  0x38   : > { %p3373_p10 = pnand %p3372_p9, %p3371_p8 }
  0x39   : > { %p3378_p4 = por %p3377_p2, %p3376_p12 }
  0x3a   : > { %p3374_p11 = pneg %p3373_p10 }
  0x3c   : > { %p3379_p5 = pnand %p3378_p4, %p3374_p11 }
  0x3e   : > { %3382 = shalt.err (!%p3379_p5)
}
  0x3f   : > { %s4952_s25 = smov 16   ;;  %s4953_s18 = smov 256  }
  0x40   : > { %3075 = dma.hbm_to_vmem [thread:$0]  (!%p3691_p7), %s361_s22, 4096, %s363_s26, %s350_s5, %s4953_s18, %s4953_s18, %s4952_s25  }
  0x41   : > { %s3012_s24 = sshll.u32 %s3510_s12, 3  ;;  %s376_s11 = scalar_lea.vmem [#allocation6], %s3011_s4 }
  0x42   : > { %s384_s19 = sshll.u32 %s376_s11, 4  ;;  %s380_s13 = scalar_lea.hbm %s4902_s1, %s3012_s24  ;;  %s385_s19 = int_to_ptr.vmem [resolvable:$true] %s384_s19 }
  0x43   : > { %s382_s6 = sshll.u32 %s380_s13, 4  ;;  %s373_s28 = scalar_lea.sflag [#allocation7], %s372_s3  ;;  %s383_s6 = int_to_ptr.hbm [resolvable:$true] %s382_s6 }
  0x44   : > { %s3398_s2 = sshra.s32 %s383_s6, 4  ;;  %s3405_s4 = scalar_lea.hbm %s4902_s1, 16  ;;  %s3399_s2 = int_to_ptr.hbm [resolvable:$true] %s3398_s2 }
  0x45   : > { %s3400_s14 = scalar_lea.hbm %s3399_s2, 8  ;;  %p3406_p11 = scmp.lt.s32.totalorder %s3399_s2, %s4902_s1 }
  0x46   : > { %p3401_p5 = scmp.ne.s32.totalorder %s3399_s2, %s3400_s14  ;;  %p3407_p12 = scmp.lt.s32.totalorder %s3405_s4, %s3400_s14 }
  0x48   : > { %p3403_p8 = pnand %p3401_p5, %p3372_p9  ;;  %p3408_p2 = por %p3407_p12, %p3406_p11 }
  0x4a   : > { %p3404_p10 = pneg %p3403_p8 }
  0x4c   : > { %p3409_p4 = pnand %p3408_p2, %p3404_p10 }
  0x4e   : > { %3412 = shalt.err (!%p3409_p4)
}
  0x4f   : > { %3078 = dma.hbm_to_vmem [thread:$0]  (!%p3691_p7), %s383_s6, 128, %s385_s19, %s373_s28  }
  0x50   : > { %393 = sbr.rel (%p3605_p3) target bundleno = 1873 (0x751), region = 56 }
  0x55   : > { %s3732_s3 = sand.u32 1, %s3502_s10  }
  0x56   : > { %s3014_s21 = sshll.u32 %s3732_s3, 8  ;;  %s396_s25 = scalar_lea.sflag [#allocation4], %s3732_s3 }
  0x57   : > { %s3736_s18 = scalar_lea.vmem [#allocation3], %s3014_s21 }
  0x58   : > { %3473 = dma.done.wait (%p3668_p13), %s396_s25, 4096  }
  0x59   : > { %3475 = vsyncadd (%p3668_p13), %s396_s25, 4294963200  ;;  %s405_s17 = sand.u32 1, %s3600_s16   ;;  %s3015_s20 = sshll.u32 %s3732_s3, 3 }
  0x5a   : > { %s406_s24 = scalar_lea.sflag [#allocation7], %s405_s17  ;;  %s3744_s19 = scalar_lea.vmem [#allocation6], %s3015_s20 }
  0x5b   : > { %3477 = dma.done.wait (%p3668_p13), %s406_s24, 128  }
  0x5c   : > { %3479 = vsyncadd (%p3668_p13), %s406_s24, 4294967168 }
  0x5d   : > { %3481 = dma.done.wait (%p51_p1), [#allocation7], 16384  }
  0x5e   : > { %3483 = vsyncadd (%p51_p1), [#allocation7], 4294950912 }
  0x5f   : > { %3485 = dma.done.wait (%p51_p1), [#allocation10], 6144  }
  0x60   : > { %3487 = vsyncadd (%p51_p1), [#allocation10], 4294961152 }
  0x61   : > { %3489 = dma.done.wait (%p51_p1), [#allocation13], 16384  }
  0x62   : > { %3491 = vsyncadd (%p51_p1), [#allocation13], 4294950912  ;;  %v704_v0 = vld [vmem:[#allocation8 + $0x1e0] sm:$0xff]  ;;  %v705_v2 = vld [vmem:[#allocation8 + $0x1e8] sm:$0xff]  ;;  %vm1340_vm1 = vcmask 1041409   ;;  %vm1342_vm2 = vcmask 1042434  }
  0x63   : > { %v768_v1 = vld [vmem:[#allocation8 + $0x3e0] sm:$0xff]  ;;  %772 = vmatpush.msra.mxu0 %v704_v0  ;;  %v701_v5 = vld [vmem:[#allocation8 + $0x1c8] sm:$0xff]  ;;  %902 = vmatpush.msra.mxu2 %v705_v2  ;;  %v3763_v55 = vld [vmem:[%s3736_s18] sm:$0xff]  ;;  %vm1344_vm3 = vcmask 1043459   ;;  %vm1346_vm4 = vcmask 1044484   ;;  %vm1348_vm5 = vcmask 1045509  }
  0x64   : > { %837 = vmatpush.msra.mxu1 %v768_v1  ;;  %v700_v3 = vld [vmem:[#allocation8 + $0x1c0] sm:$0xff]  ;;  %v697_v8 = vld [vmem:[#allocation8 + $0x1a8] sm:$0xff]  ;;  %v3766_v56 = vld [vmem:[%s3736_s18 + $0x8] sm:$0xff]  ;;  %vm1350_vm6 = vcmask 1046534   ;;  %vm1352_vm7 = vcmask 1047559   ;;  %vm1636_vm8 = vcmask 130112  }
  0x65   : > { %v764_v4 = vld [vmem:[#allocation8 + $0x3c0] sm:$0xff]  ;;  %773 = vmatpush.msra.mxu0 %v700_v3  ;;  %903 = vmatpush.msra.mxu2 %v701_v5  ;;  %v693_v11 = vld [vmem:[#allocation8 + $0x188] sm:$0xff]  ;;  %v706_v57 = vld [vmem:[#allocation8 + $0x1f0] sm:$0xff]  ;;  %vm1667_vm9 = vcmask 130048   ;;  %s3021_s28 = sshll.u32 %s3732_s3, 4  ;;  %s3029_s2 = sshll.u32 %s3600_s16, 4 }
  0x66   : > { %v696_v6 = vld [vmem:[#allocation8 + $0x1a0] sm:$0xff]  ;;  %838 = vmatpush.msra.mxu1 %v764_v4  ;;  %v689_v14 = vld [vmem:[#allocation8 + $0x168] sm:$0xff]  ;;  %v770_v58 = vld [vmem:[#allocation8 + $0x3f0] sm:$0xff]  ;;  %s2854_s26 = scalar_lea.hbm %s4910_s9, %s3029_s2  ;;  %s474_s4 = scalar_lea.vmem [#allocation15], %s3021_s28 }
  0x67   : > { %v760_v7 = vld [vmem:[#allocation8 + $0x3a0] sm:$0xff]  ;;  %774 = vmatpush.msra.mxu0 %v696_v6  ;;  %904 = vmatpush.msra.mxu2 %v697_v8  ;;  %v685_v17 = vld [vmem:[#allocation8 + $0x148] sm:$0xff]  ;;  %v702_v60 = vld [vmem:[#allocation8 + $0x1d0] sm:$0xff]  ;;  %s2856_s11 = sshll.u32 %s474_s4, 4  ;;  %s2858_s22 = sshll.u32 %s2854_s26, 4  ;;  %s2857_s11 = int_to_ptr.vmem [resolvable:$true] %s2856_s11  ;;  %s2859_s22 = int_to_ptr.hbm [resolvable:$true] %s2858_s22 }
  0x68   : > { %v692_v9 = vld [vmem:[#allocation8 + $0x180] sm:$0xff]  ;;  %839 = vmatpush.msra.mxu1 %v760_v7  ;;  %v681_v20 = vld [vmem:[#allocation8 + $0x128] sm:$0xff]  ;;  %v766_v61 = vld [vmem:[#allocation8 + $0x3d0] sm:$0xff]  ;;  %s2843_s16 = scalar_lea.sflag [#allocation5], %s3732_s3  ;;  %s3442_s21 = sshra.s32 %s2859_s22, 4  ;;  %s3443_s21 = int_to_ptr.hbm [resolvable:$true] %s3442_s21 }
  0x69   : > { %v756_v10 = vld [vmem:[#allocation8 + $0x380] sm:$0xff]  ;;  %775 = vmatpush.msra.mxu0 %v692_v9  ;;  %905 = vmatpush.msra.mxu2 %v693_v11  ;;  %v677_v23 = vld [vmem:[#allocation8 + $0x108] sm:$0xff]  ;;  %v707_v63 = vld [vmem:[#allocation8 + $0x1f8] sm:$0xff]  ;;  %s3444_s25 = scalar_lea.hbm %s3443_s21, 16  ;;  %s3448_s20 = scalar_lea.hbm %s4910_s9, 32 }
  0x6a   : > { %v688_v12 = vld [vmem:[#allocation8 + $0x160] sm:$0xff]  ;;  %840 = vmatpush.msra.mxu1 %v756_v10  ;;  %v673_v26 = vld [vmem:[#allocation8 + $0xe8] sm:$0xff]  ;;  %v698_v0 = vld [vmem:[#allocation8 + $0x1b0] sm:$0xff]  ;;  %p3445_p1 = scmp.ne.s32.totalorder %s3443_s21, %s3444_s25  ;;  %p3449_p7 = scmp.lt.s32.totalorder %s3443_s21, %s4910_s9 }
  0x6b   : > { %v752_v13 = vld [vmem:[#allocation8 + $0x360] sm:$0xff]  ;;  %776 = vmatpush.msra.mxu0 %v688_v12  ;;  %906 = vmatpush.msra.mxu2 %v689_v14  ;;  %v669_v29 = vld [vmem:[#allocation8 + $0xc8] sm:$0xff]  ;;  %v762_v1 = vld [vmem:[#allocation8 + $0x3b0] sm:$0xff]  ;;  %p3450_p9 = scmp.lt.s32.totalorder %s3448_s20, %s3444_s25 }
  0x6c   : > { %v684_v15 = vld [vmem:[#allocation8 + $0x140] sm:$0xff]  ;;  %841 = vmatpush.msra.mxu1 %v752_v13  ;;  %v769_v30 = vld [vmem:[#allocation8 + $0x3e8] sm:$0xff]  ;;  %v758_v4 = vld [vmem:[#allocation8 + $0x390] sm:$0xff]  ;;  %p3446_p3 = pnand %p3445_p1, %p3672_p0 }
  0x6d   : > { %v748_v16 = vld [vmem:[#allocation8 + $0x340] sm:$0xff]  ;;  %777 = vmatpush.msra.mxu0 %v684_v15  ;;  %907 = vmatpush.msra.mxu2 %v685_v17  ;;  %v765_v33 = vld [vmem:[#allocation8 + $0x3c8] sm:$0xff]  ;;  %v694_v6 = vld [vmem:[#allocation8 + $0x190] sm:$0xff]  ;;  %p3451_p5 = por %p3450_p9, %p3449_p7 }
  0x6e   : > { %v680_v18 = vld [vmem:[#allocation8 + $0x120] sm:$0xff]  ;;  %842 = vmatpush.msra.mxu1 %v748_v16  ;;  %967 = vmatpush.msra.mxu3 %v769_v30  ;;  %v665_v34 = vld [vmem:[#allocation8 + $0xa8] sm:$0xff]  ;;  %v754_v8 = vld [vmem:[#allocation8 + $0x370] sm:$0xff]  ;;  %p3447_p13 = pneg %p3446_p3 }
  0x6f   : > { %v744_v19 = vld [vmem:[#allocation8 + $0x320] sm:$0xff]  ;;  %778 = vmatpush.msra.mxu0 %v680_v18  ;;  %908 = vmatpush.msra.mxu2 %v681_v20  ;;  %v761_v35 = vld [vmem:[#allocation8 + $0x3a8] sm:$0xff]  ;;  %v690_v10 = vld [vmem:[#allocation8 + $0x170] sm:$0xff] }
  0x70   : > { %v676_v21 = vld [vmem:[#allocation8 + $0x100] sm:$0xff]  ;;  %843 = vmatpush.msra.mxu1 %v744_v19  ;;  %968 = vmatpush.msra.mxu3 %v765_v33  ;;  %v661_v38 = vld [vmem:[#allocation8 + $0x88] sm:$0xff]  ;;  %v703_v11 = vld [vmem:[#allocation8 + $0x1d8] sm:$0xff]  ;;  %p3452_p8 = pnand %p3451_p5, %p3447_p13 }
  0x71   : > { %v740_v22 = vld [vmem:[#allocation8 + $0x300] sm:$0xff]  ;;  %779 = vmatpush.msra.mxu0 %v676_v21  ;;  %909 = vmatpush.msra.mxu2 %v677_v23  ;;  %v757_v39 = vld [vmem:[#allocation8 + $0x388] sm:$0xff]  ;;  %v750_v12 = vld [vmem:[#allocation8 + $0x350] sm:$0xff] }
  0x72   : > { %v672_v24 = vld [vmem:[#allocation8 + $0xe0] sm:$0xff]  ;;  %844 = vmatpush.msra.mxu1 %v740_v22  ;;  %969 = vmatpush.msra.mxu3 %v761_v35  ;;  %v657_v42 = vld [vmem:[#allocation8 + $0x68] sm:$0xff]  ;;  %v686_v14 = vld [vmem:[#allocation8 + $0x150] sm:$0xff] }
  0x73   : > { %v736_v25 = vld [vmem:[#allocation8 + $0x2e0] sm:$0xff]  ;;  %780 = vmatpush.msra.mxu0 %v672_v24  ;;  %910 = vmatpush.msra.mxu2 %v673_v26  ;;  %v753_v43 = vld [vmem:[#allocation8 + $0x368] sm:$0xff]  ;;  %v3781_v15 = vld [vmem:[%s3736_s18 + $0x20] sm:$0xff] }
  0x74   : > { %v668_v27 = vld [vmem:[#allocation8 + $0xc0] sm:$0xff]  ;;  %845 = vmatpush.msra.mxu1 %v736_v25  ;;  %970 = vmatpush.msra.mxu3 %v757_v39  ;;  %v653_v46 = vld [vmem:[#allocation8 + $0x48] sm:$0xff]  ;;  %v3784_v17 = vld [vmem:[%s3736_s18 + $0x28] sm:$0xff] }
  0x75   : > { %v732_v28 = vld [vmem:[#allocation8 + $0x2c0] sm:$0xff]  ;;  %781 = vmatpush.msra.mxu0 %v668_v27  ;;  %911 = vmatpush.msra.mxu2 %v669_v29  ;;  %v749_v47 = vld [vmem:[#allocation8 + $0x348] sm:$0xff]  ;;  %v682_v20 = vld [vmem:[#allocation8 + $0x130] sm:$0xff] }
  0x76   : > { %v664_v31 = vld [vmem:[#allocation8 + $0xa0] sm:$0xff]  ;;  %846 = vmatpush.msra.mxu1 %v732_v28  ;;  %971 = vmatpush.msra.mxu3 %v753_v43  ;;  %v649_v50 = vld [vmem:[#allocation8 + $0x28] sm:$0xff]  ;;  %v746_v21 = vld [vmem:[#allocation8 + $0x330] sm:$0xff] }
  0x77   : > { %v728_v32 = vld [vmem:[#allocation8 + $0x2a0] sm:$0xff]  ;;  %782 = vmatpush.msra.mxu0 %v664_v31  ;;  %912 = vmatpush.msra.mxu2 %v665_v34  ;;  %v745_v51 = vld [vmem:[#allocation8 + $0x328] sm:$0xff]  ;;  %v699_v22 = vld [vmem:[#allocation8 + $0x1b8] sm:$0xff] }
  0x78   : > { %v660_v36 = vld [vmem:[#allocation8 + $0x80] sm:$0xff]  ;;  %847 = vmatpush.msra.mxu1 %v728_v32  ;;  %972 = vmatpush.msra.mxu3 %v749_v47  ;;  %v645_v54 = vld [vmem:[#allocation8 + $0x8] sm:$0xff]  ;;  %v678_v25 = vld [vmem:[#allocation8 + $0x110] sm:$0xff] }
  0x79   : > { %v724_v37 = vld [vmem:[#allocation8 + $0x280] sm:$0xff]  ;;  %783 = vmatpush.msra.mxu0 %v660_v36  ;;  %913 = vmatpush.msra.mxu2 %v661_v38  ;;  %v741_v59 = vld [vmem:[#allocation8 + $0x308] sm:$0xff]  ;;  %v742_v26 = vld [vmem:[#allocation8 + $0x310] sm:$0xff] }
  0x7a   : > { %v656_v40 = vld [vmem:[#allocation8 + $0x60] sm:$0xff]  ;;  %848 = vmatpush.msra.mxu1 %v724_v37  ;;  %973 = vmatpush.msra.mxu3 %v745_v51  ;;  %v737_v62 = vld [vmem:[#allocation8 + $0x2e8] sm:$0xff]  ;;  %v695_v27 = vld [vmem:[#allocation8 + $0x198] sm:$0xff] }
  0x7b   : > { %v720_v41 = vld [vmem:[#allocation8 + $0x260] sm:$0xff]  ;;  %784 = vmatpush.msra.mxu0 %v656_v40  ;;  %914 = vmatpush.msra.mxu2 %v657_v42  ;;  %v733_v2 = vld [vmem:[#allocation8 + $0x2c8] sm:$0xff]  ;;  %v3800_v28 = vld [vmem:[%s3736_s18 + $0x40] sm:$0xff] }
  0x7c   : > { %v652_v44 = vld [vmem:[#allocation8 + $0x40] sm:$0xff]  ;;  %849 = vmatpush.msra.mxu1 %v720_v41  ;;  %974 = vmatpush.msra.mxu3 %v741_v59  ;;  %v3775_v5 = vld [vmem:[%s3736_s18 + $0x18] sm:$0xff]  ;;  %v3804_v29 = vld [vmem:[%s3736_s18 + $0x48] sm:$0xff] }
  0x7d   : > { %v716_v45 = vld [vmem:[#allocation8 + $0x240] sm:$0xff]  ;;  %785 = vmatpush.msra.mxu0 %v652_v44  ;;  %915 = vmatpush.msra.mxu2 %v653_v46  ;;  %v729_v7 = vld [vmem:[#allocation8 + $0x2a8] sm:$0xff]  ;;  %v674_v30 = vld [vmem:[#allocation8 + $0xf0] sm:$0xff] }
  0x7e   : > { %v648_v48 = vld [vmem:[#allocation8 + $0x20] sm:$0xff]  ;;  %850 = vmatpush.msra.mxu1 %v716_v45  ;;  %975 = vmatpush.msra.mxu3 %v737_v62  ;;  %v725_v9 = vld [vmem:[#allocation8 + $0x288] sm:$0xff]  ;;  %v738_v31 = vld [vmem:[#allocation8 + $0x2f0] sm:$0xff] }
  0x7f   : > { %v712_v49 = vld [vmem:[#allocation8 + $0x220] sm:$0xff]  ;;  %786 = vmatpush.msra.mxu0 %v648_v48  ;;  %916 = vmatpush.msra.mxu2 %v649_v50  ;;  %v721_v13 = vld [vmem:[#allocation8 + $0x268] sm:$0xff]  ;;  %v691_v32 = vld [vmem:[#allocation8 + $0x178] sm:$0xff] }
  0x80   : > { %v644_v52 = vld [vmem:[#allocation8] sm:$0xff]  ;;  %851 = vmatpush.msra.mxu1 %v712_v49  ;;  %976 = vmatpush.msra.mxu3 %v733_v2  ;;  %v717_v16 = vld [vmem:[#allocation8 + $0x248] sm:$0xff]  ;;  %v670_v35 = vld [vmem:[#allocation8 + $0xd0] sm:$0xff] }
  0x81   : > { %v708_v53 = vld [vmem:[#allocation8 + $0x200] sm:$0xff]  ;;  %787 = vmatpush.msra.mxu0 %v644_v52  ;;  %917 = vmatpush.msra.mxu2 %v645_v54  ;;  %v713_v18 = vld [vmem:[#allocation8 + $0x228] sm:$0xff]  ;;  %v734_v36 = vld [vmem:[#allocation8 + $0x2d0] sm:$0xff] }
  0x82   : > { %852 = vmatpush.msra.mxu1 %v708_v53  ;;  %788 = vmatmul.f32.vlgmr.msra.gmra.mxu0 %v3763_v55  ;;  %v3772_v3 = vld [vmem:[%s3736_s18 + $0x10] sm:$0xff]  ;;  %v709_v19 = vld [vmem:[#allocation8 + $0x208] sm:$0xff]  ;;  %v687_v37 = vld [vmem:[#allocation8 + $0x158] sm:$0xff] }
  0x83   : > { %853 = vmatmul.f32.vlgmr.msra.gmra.mxu1 %v3766_v56  ;;  %918 = vmatmul.f32.vlgmr.msra.gmra.mxu2 %v3763_v55  ;;  %v3790_v23 = vld [vmem:[%s3736_s18 + $0x30] sm:$0xff]  ;;  %v3794_v24 = vld [vmem:[%s3736_s18 + $0x38] sm:$0xff]  ;;  %v3820_v38 = vld [vmem:[%s3736_s18 + $0x60] sm:$0xff] }
  0x84   : > { %1032 = vmatpush.msrb.mxu0 %v706_v57  ;;  %1097 = vmatpush.msrb.mxu1 %v770_v58  ;;  %v3810_v33 = vld [vmem:[%s3736_s18 + $0x50] sm:$0xff]  ;;  %v3814_v34 = vld [vmem:[%s3736_s18 + $0x58] sm:$0xff]  ;;  %v3824_v39 = vld [vmem:[%s3736_s18 + $0x68] sm:$0xff] }
  0x85   : > { %1162 = vmatpush.msrb.mxu2 %v707_v63  ;;  %977 = vmatpush.msra.mxu3 %v729_v7  ;;  %v666_v40 = vld [vmem:[#allocation8 + $0xb0] sm:$0xff]  ;;  %v683_v42 = vld [vmem:[#allocation8 + $0x138] sm:$0xff]  ;;  %v3830_v43 = vld [vmem:[%s3736_s18 + $0x70] sm:$0xff] }
  0x86   : > { %1033 = vmatpush.msrb.mxu0 %v702_v60  ;;  %1098 = vmatpush.msrb.mxu1 %v766_v61  ;;  %v730_v41 = vld [vmem:[#allocation8 + $0x2b0] sm:$0xff]  ;;  %v3834_v44 = vld [vmem:[%s3736_s18 + $0x78] sm:$0xff]  ;;  %v679_v47 = vld [vmem:[#allocation8 + $0x118] sm:$0xff] }
  0x87   : > { %1163 = vmatpush.msrb.mxu2 %v703_v11  ;;  %978 = vmatpush.msra.mxu3 %v725_v9  ;;  %v662_v45 = vld [vmem:[#allocation8 + $0x90] sm:$0xff]  ;;  %v3844_v49 = vld [vmem:[%s3736_s18 + $0x88] sm:$0xff]  ;;  %v3850_v53 = vld [vmem:[%s3736_s18 + $0x90] sm:$0xff] }
  0x88   : > { %1034 = vmatpush.msrb.mxu0 %v698_v0  ;;  %1099 = vmatpush.msrb.mxu1 %v762_v1  ;;  %v726_v46 = vld [vmem:[#allocation8 + $0x290] sm:$0xff]  ;;  %v675_v52 = vld [vmem:[#allocation8 + $0xf8] sm:$0xff]  ;;  %v3854_v54 = vld [vmem:[%s3736_s18 + $0x98] sm:$0xff] }
  0x89   : > { %979 = vmatpush.msra.mxu3 %v721_v13  ;;  %1164 = vmatpush.msrb.mxu2 %v699_v22  ;;  %v3840_v48 = vld [vmem:[%s3736_s18 + $0x80] sm:$0xff]  ;;  %v671_v59 = vld [vmem:[#allocation8 + $0xd8] sm:$0xff]  ;;  %v3870_v2 = vld [vmem:[%s3736_s18 + $0xb0] sm:$0xff] }
  0x8a   : > { %791 = vmatmul.f32.gmra.mxu0 %v3772_v3  ;;  %1100 = vmatpush.msrb.mxu1 %v758_v4  ;;  %v658_v50 = vld [vmem:[#allocation8 + $0x70] sm:$0xff]  ;;  %v3864_v61 = vld [vmem:[%s3736_s18 + $0xa8] sm:$0xff]  ;;  %v3874_v4 = vld [vmem:[%s3736_s18 + $0xb8] sm:$0xff] }
  0x8b   : > { %856 = vmatmul.f32.gmra.mxu1 %v3775_v5  ;;  %921 = vmatmul.f32.gmra.mxu2 %v3772_v3  ;;  %v722_v51 = vld [vmem:[#allocation8 + $0x270] sm:$0xff]  ;;  %v667_v0 = vld [vmem:[#allocation8 + $0xb8] sm:$0xff] }
  0x8c   : > { %1035 = vmatpush.msrb.mxu0 %v694_v6  ;;  %1101 = vmatpush.msrb.mxu1 %v754_v8  ;;  %v654_v57 = vld [vmem:[#allocation8 + $0x50] sm:$0xff]  ;;  %v663_v1 = vld [vmem:[#allocation8 + $0x98] sm:$0xff] }
  0x8d   : > { %980 = vmatpush.msra.mxu3 %v717_v16  ;;  %1165 = vmatpush.msrb.mxu2 %v695_v27  ;;  %v718_v58 = vld [vmem:[#allocation8 + $0x250] sm:$0xff]  ;;  %v659_v8 = vld [vmem:[#allocation8 + $0x78] sm:$0xff] }
  0x8e   : > { %1036 = vmatpush.msrb.mxu0 %v690_v10  ;;  %1102 = vmatpush.msrb.mxu1 %v750_v12  ;;  %v3860_v60 = vld [vmem:[%s3736_s18 + $0xa0] sm:$0xff]  ;;  %v655_v9 = vld [vmem:[#allocation8 + $0x58] sm:$0xff] }
  0x8f   : > { %981 = vmatpush.msra.mxu3 %v713_v18  ;;  %1166 = vmatpush.msrb.mxu2 %v691_v32  ;;  %v650_v62 = vld [vmem:[#allocation8 + $0x30] sm:$0xff]  ;;  %v651_v11 = vld [vmem:[#allocation8 + $0x38] sm:$0xff]  ;;  %v3890_v18 = vld [vmem:[%s3736_s18 + $0xd0] sm:$0xff] }
  0x90   : > { %1037 = vmatpush.msrb.mxu0 %v686_v14  ;;  %1103 = vmatpush.msrb.mxu1 %v746_v21  ;;  %v714_v63 = vld [vmem:[#allocation8 + $0x230] sm:$0xff]  ;;  %v3884_v12 = vld [vmem:[%s3736_s18 + $0xc8] sm:$0xff] }
  0x91   : > { %982 = vmatpush.msra.mxu3 %v709_v19  ;;  %1167 = vmatpush.msrb.mxu2 %v687_v37  ;;  %v646_v6 = vld [vmem:[#allocation8 + $0x10] sm:$0xff]  ;;  %v647_v13 = vld [vmem:[#allocation8 + $0x18] sm:$0xff]  ;;  %v3894_v19 = vld [vmem:[%s3736_s18 + $0xd8] sm:$0xff] }
  0x92   : > { %794 = vmatmul.f32.gmra.mxu0 %v3781_v15  ;;  %983 = vmatmul.f32.vlgmr.msra.gmra.mxu3 %v3766_v56  ;;  %v710_v7 = vld [vmem:[#allocation8 + $0x210] sm:$0xff]  ;;  %v1307_v14 = vld [vmem:[#allocation9 + $0x78] sm:$0xff]  ;;  %v1321_v37 = vld [vmem:[#allocation9 + $0xe8] sm:$0xff] }
  0x93   : > { %859 = vmatmul.f32.gmra.mxu1 %v3784_v17  ;;  %924 = vmatmul.f32.gmra.mxu2 %v3781_v15  ;;  %v3880_v10 = vld [vmem:[%s3736_s18 + $0xc0] sm:$0xff]  ;;  %v1323_v16 = vld [vmem:[#allocation9 + $0xf8] sm:$0xff] }
  0x94   : > { %1038 = vmatpush.msrb.mxu0 %v682_v20  ;;  %1104 = vmatpush.msrb.mxu1 %v742_v26  ;;  %v771_v20 = vld [vmem:[#allocation8 + $0x3f8] sm:$0xff]  ;;  %v1306_v22 = vld [vmem:[#allocation9 + $0x70] sm:$0xff] }
  0x95   : > { %1168 = vmatpush.msrb.mxu2 %v683_v42  ;;  %1227 = vmatpush.msrb.mxu3 %v771_v20  ;;  %v767_v21 = vld [vmem:[#allocation8 + $0x3d8] sm:$0xff]  ;;  %v3910_v42 = vld [vmem:[%s3736_s18 + $0xf0] sm:$0xff] }
  0x96   : > { %1039 = vmatpush.msrb.mxu0 %v678_v25  ;;  %1105 = vmatpush.msrb.mxu1 %v738_v31  ;;  %v1322_v25 = vld [vmem:[#allocation9 + $0xf0] sm:$0xff]  ;;  %v763_v26 = vld [vmem:[#allocation8 + $0x3b8] sm:$0xff] }
  0x97   : > { %1169 = vmatpush.msrb.mxu2 %v679_v47  ;;  %1228 = vmatpush.msrb.mxu3 %v767_v21  ;;  %v759_v27 = vld [vmem:[#allocation8 + $0x398] sm:$0xff] }
  0x98   : > { %1040 = vmatpush.msrb.mxu0 %v674_v30  ;;  %1106 = vmatpush.msrb.mxu1 %v734_v36  ;;  %v3900_v30 = vld [vmem:[%s3736_s18 + $0xe0] sm:$0xff]  ;;  %v3904_v31 = vld [vmem:[%s3736_s18 + $0xe8] sm:$0xff]  ;;  %v1305_v36 = vld [vmem:[#allocation9 + $0x68] sm:$0xff] }
  0x99   : > { %1170 = vmatpush.msrb.mxu2 %v675_v52  ;;  %1229 = vmatpush.msrb.mxu3 %v763_v26  ;;  %v755_v32 = vld [vmem:[#allocation8 + $0x378] sm:$0xff]  ;;  %v1301_v26 = vld [vmem:[#allocation9 + $0x48] sm:$0xff] }
  0x9a   : > { %797 = vmatmul.f32.gmra.mxu0 %v3790_v23  ;;  %986 = vmatmul.f32.gmra.mxu3 %v3775_v5  ;;  %v735_v47 = vld [vmem:[#allocation8 + $0x2d8] sm:$0xff] }
  0x9b   : > { %862 = vmatmul.f32.gmra.mxu1 %v3794_v24  ;;  %927 = vmatmul.f32.gmra.mxu2 %v3790_v23  ;;  %v731_v52 = vld [vmem:[#allocation8 + $0x2b8] sm:$0xff] }
  0x9c   : > { %1041 = vmatpush.msrb.mxu0 %v670_v35  ;;  %1107 = vmatpush.msrb.mxu1 %v730_v41  ;;  %v751_v35 = vld [vmem:[#allocation8 + $0x358] sm:$0xff] }
  0x9d   : > { %1171 = vmatpush.msrb.mxu2 %v671_v59  ;;  %1230 = vmatpush.msrb.mxu3 %v759_v27  ;;  %v743_v41 = vld [vmem:[#allocation8 + $0x318] sm:$0xff]  ;;  %v1317_v27 = vld [vmem:[#allocation9 + $0xc8] sm:$0xff] }
  0x9e   : > { %1042 = vmatpush.msrb.mxu0 %v666_v40  ;;  %1108 = vmatpush.msrb.mxu1 %v726_v46  ;;  %v747_v40 = vld [vmem:[#allocation8 + $0x338] sm:$0xff] }
  0x9f   : > { %1172 = vmatpush.msrb.mxu2 %v667_v0  ;;  %1231 = vmatpush.msrb.mxu3 %v755_v32  ;;  %v739_v46 = vld [vmem:[#allocation8 + $0x2f8] sm:$0xff] }
  0xa0   : > { %1043 = vmatpush.msrb.mxu0 %v662_v45  ;;  %1109 = vmatpush.msrb.mxu1 %v722_v51  ;;  %v3914_v45 = vld [vmem:[%s3736_s18 + $0xf8] sm:$0xff]  ;;  %v1320_v51 = vld [vmem:[#allocation9 + $0xe0] sm:$0xff]  ;;  %v1303_v0 = vld [vmem:[#allocation9 + $0x58] sm:$0xff] }
  0xa1   : > { %1173 = vmatpush.msrb.mxu2 %v663_v1  ;;  %1232 = vmatpush.msrb.mxu3 %v751_v35  ;;  %v1319_v1 = vld [vmem:[#allocation9 + $0xd8] sm:$0xff] }
  0xa2   : > { %800 = vmatmul.f32.gmra.mxu0 %v3800_v28  ;;  %989 = vmatmul.f32.gmra.mxu3 %v3784_v17 }
  0xa3   : > { %865 = vmatmul.f32.gmra.mxu1 %v3804_v29  ;;  %930 = vmatmul.f32.gmra.mxu2 %v3800_v28 }
  0xa4   : > { %1044 = vmatpush.msrb.mxu0 %v658_v50  ;;  %1110 = vmatpush.msrb.mxu1 %v718_v58  ;;  %v1304_v50 = vld [vmem:[#allocation9 + $0x60] sm:$0xff] }
  0xa5   : > { %1174 = vmatpush.msrb.mxu2 %v659_v8  ;;  %1233 = vmatpush.msrb.mxu3 %v747_v40  ;;  %v711_v8 = vld [vmem:[#allocation8 + $0x218] sm:$0xff] }
  0xa6   : > { %1045 = vmatpush.msrb.mxu0 %v654_v57  ;;  %1111 = vmatpush.msrb.mxu1 %v714_v63  ;;  %v727_v57 = vld [vmem:[#allocation8 + $0x298] sm:$0xff] }
  0xa7   : > { %1175 = vmatpush.msrb.mxu2 %v655_v9  ;;  %1234 = vmatpush.msrb.mxu3 %v743_v41  ;;  %v719_v63 = vld [vmem:[#allocation8 + $0x258] sm:$0xff] }
  0xa8   : > { %1046 = vmatpush.msrb.mxu0 %v650_v62  ;;  %1112 = vmatpush.msrb.mxu1 %v710_v7  ;;  %v723_v62 = vld [vmem:[#allocation8 + $0x278] sm:$0xff] }
  0xa9   : > { %1176 = vmatpush.msrb.mxu2 %v651_v11  ;;  %1235 = vmatpush.msrb.mxu3 %v739_v46  ;;  %v1300_v46 = vld [vmem:[#allocation9 + $0x40] sm:$0xff] }
  0xaa   : > { %803 = vmatmul.f32.gmra.mxu0 %v3810_v33  ;;  %992 = vmatmul.f32.gmra.mxu3 %v3794_v24 }
  0xab   : > { %868 = vmatmul.f32.gmra.mxu1 %v3814_v34  ;;  %933 = vmatmul.f32.gmra.mxu2 %v3810_v33 }
  0xac   : > { %1047 = vmatpush.msrb.mxu0 %v646_v6  ;;  %1177 = vmatpush.msrb.mxu2 %v647_v13  ;;  %v715_v6 = vld [vmem:[#allocation8 + $0x238] sm:$0xff] }
  0xad   : > { %1383 = vmatpush.msra.mxu1 %v1323_v16  ;;  %1236 = vmatpush.msrb.mxu3 %v735_v47  ;;  %v1418_v13 = vld [vmem:[#allocation11 + $0x78] sm:$0xff]  ;;  %v1318_v16 = vld [vmem:[#allocation9 + $0xd0] sm:$0xff]  ;;  %v1316_v47 = vld [vmem:[#allocation9 + $0xc0] sm:$0xff] }
  0xae   : > { %1363 = vmatpush.msra.mxu0 %v1307_v14  ;;  %1419 = vmatpush.msra.mxu2 %v1418_v13  ;;  %v1302_v14 = vld [vmem:[#allocation9 + $0x50] sm:$0xff]  ;;  %v1414_v13 = vld [vmem:[#allocation11 + $0x58] sm:$0xff] }
  0xaf   : > { %1384 = vmatpush.msra.mxu1 %v1322_v25  ;;  %1237 = vmatpush.msrb.mxu3 %v731_v52  ;;  %v1417_v25 = vld [vmem:[#allocation11 + $0x70] sm:$0xff] }
  0xb0   : > { %1364 = vmatpush.msra.mxu0 %v1306_v22  ;;  %1420 = vmatpush.msra.mxu2 %v1417_v25  ;;  %v1314_v25 = vld [vmem:[#allocation9 + $0xb0] sm:$0xff] }
  0xb1   : > { %1385 = vmatpush.msra.mxu1 %v1321_v37  ;;  %1238 = vmatpush.msrb.mxu3 %v727_v57  ;;  %v1416_v37 = vld [vmem:[#allocation11 + $0x68] sm:$0xff]  ;;  %v1415_v57 = vld [vmem:[#allocation11 + $0x60] sm:$0xff] }
  0xb2   : > { %806 = vmatmul.f32.gmra.mxu0 %v3820_v38  ;;  %995 = vmatmul.f32.gmra.mxu3 %v3804_v29 }
  0xb3   : > { %871 = vmatmul.f32.gmra.mxu1 %v3824_v39  ;;  %936 = vmatmul.f32.gmra.mxu2 %v3820_v38 }
  0xb4   : > { %1365 = vmatpush.msra.mxu0 %v1305_v36  ;;  %1386 = vmatpush.msra.mxu1 %v1320_v51 }
  0xb5   : > { %1239 = vmatpush.msrb.mxu3 %v723_v62  ;;  %1421 = vmatpush.msra.mxu2 %v1416_v37 }
  0xb6   : > { %1366 = vmatpush.msra.mxu0 %v1304_v50  ;;  %1387 = vmatpush.msra.mxu1 %v1319_v1  ;;  %v1315_v1 = vld [vmem:[#allocation9 + $0xb8] sm:$0xff] }
  0xb7   : > { %1240 = vmatpush.msrb.mxu3 %v719_v63  ;;  %1422 = vmatpush.msra.mxu2 %v1415_v57  ;;  %v1313_v57 = vld [vmem:[#allocation9 + $0xa8] sm:$0xff] }
  0xb8   : > { %1367 = vmatpush.msra.mxu0 %v1303_v0  ;;  %1388 = vmatpush.msra.mxu1 %v1318_v16  ;;  %v1299_v0 = vld [vmem:[#allocation9 + $0x38] sm:$0xff] }
  0xb9   : > { %1241 = vmatpush.msrb.mxu3 %v715_v6  ;;  %1423 = vmatpush.msra.mxu2 %v1414_v13  ;;  %v1412_v13 = vld [vmem:[#allocation11 + $0x48] sm:$0xff] }
  0xba   : > { %809 = vmatmul.f32.gmra.mxu0 %v3830_v43  ;;  %998 = vmatmul.f32.gmra.mxu3 %v3814_v34 }
  0xbb   : > { %874 = vmatmul.f32.gmra.mxu1 %v3834_v44  ;;  %939 = vmatmul.f32.gmra.mxu2 %v3830_v43 }
  0xbc   : > { %1242 = vmatpush.msrb.mxu3 %v711_v8  ;;  %1368 = vmatpush.msra.mxu0 %v1302_v14 }
  0xbd   : > { %1389 = vmatpush.msra.mxu1 %v1317_v27 }
  0xbe   : > { %1369 = vmatpush.msra.mxu0 %v1301_v26 }
  0xbf   : > { %1390 = vmatpush.msra.mxu1 %v1316_v47  ;;  %v1297_v47 = vld [vmem:[#allocation9 + $0x28] sm:$0xff] }
  0xc0   : > { %1370 = vmatpush.msra.mxu0 %v1300_v46 }
  0xc1   : > { %1391 = vmatpush.msra.mxu1 %v1315_v1 }
  0xc2   : > { %812 = vmatmul.f32.gmra.mxu0 %v3840_v48  ;;  %1001 = vmatmul.f32.gmra.mxu3 %v3824_v39 }
  0xc3   : > { %877 = vmatmul.f32.gmra.mxu1 %v3844_v49  ;;  %942 = vmatmul.f32.gmra.mxu2 %v3840_v48 }
  0xc4   : > { %1371 = vmatpush.msra.mxu0 %v1299_v0  ;;  %1392 = vmatpush.msra.mxu1 %v1314_v25  ;;  %v1312_v25 = vld [vmem:[#allocation9 + $0xa0] sm:$0xff] }
  0xc6   : > { %1393 = vmatpush.msra.mxu1 %v1313_v57  ;;  %v1411_v57 = vld [vmem:[#allocation11 + $0x40] sm:$0xff] }
  0xc8   : > { %1394 = vmatpush.msra.mxu1 %v1312_v25  ;;  %v509_v25 = vadd.f32 %v3772_v3, %v3763_v55 }
  0xca   : > { %815 = vmatmul.f32.gmra.mxu0 %v3850_v53  ;;  %1004 = vmatmul.f32.gmra.mxu3 %v3834_v44 }
  0xcb   : > { %880 = vmatmul.f32.gmra.mxu1 %v3854_v54  ;;  %945 = vmatmul.f32.gmra.mxu2 %v3850_v53 }
  0xd2   : > { %818 = vmatmul.f32.gmra.mxu0 %v3860_v60  ;;  %1007 = vmatmul.f32.gmra.mxu3 %v3844_v49 }
  0xd3   : > { %883 = vmatmul.f32.gmra.mxu1 %v3864_v61  ;;  %948 = vmatmul.f32.gmra.mxu2 %v3860_v60 }
  0xda   : > { %821 = vmatmul.f32.gmra.mxu0 %v3870_v2  ;;  %1010 = vmatmul.f32.gmra.mxu3 %v3854_v54 }
  0xdb   : > { %886 = vmatmul.f32.gmra.mxu1 %v3874_v4  ;;  %951 = vmatmul.f32.gmra.mxu2 %v3870_v2 }
  0xe2   : > { %824 = vmatmul.f32.gmra.mxu0 %v3880_v10  ;;  %1013 = vmatmul.f32.gmra.mxu3 %v3864_v61 }
  0xe3   : > { %889 = vmatmul.f32.gmra.mxu1 %v3884_v12  ;;  %954 = vmatmul.f32.gmra.mxu2 %v3880_v10 }
  0xea   : > { %827 = vmatmul.f32.gmra.mxu0 %v3890_v18  ;;  %1016 = vmatmul.f32.gmra.mxu3 %v3874_v4 }
  0xeb   : > { %892 = vmatmul.f32.gmra.mxu1 %v3894_v19  ;;  %957 = vmatmul.f32.gmra.mxu2 %v3890_v18 }
  0xf2   : > { %830 = vmatmul.f32.gmra.mxu0 %v3900_v30  ;;  %1019 = vmatmul.f32.gmra.mxu3 %v3884_v12 }
  0xf3   : > { %895 = vmatmul.f32.gmra.mxu1 %v3904_v31  ;;  %960 = vmatmul.f32.gmra.mxu2 %v3900_v30 }
  0xfa   : > { %833 = vmatmul.f32.gmra.mxu0 %v3910_v42  ;;  %1022 = vmatmul.f32.gmra.mxu3 %v3894_v19 }
  0xfb   : > { %898 = vmatmul.f32.gmra.mxu1 %v3914_v45  ;;  %963 = vmatmul.f32.gmra.mxu2 %v3910_v42 }
  0xff   : > { %v3919_v58 = vpop.f32.mrf.mxu0 }
 0x100   : > { %v3922_v59 = vpop.f32.mrf.mxu1 }
 0x102   : > { %1048 = vmatmul.f32.vlgmr.msrb.gmra.mxu0 %v3763_v55  ;;  %1025 = vmatmul.f32.gmra.mxu3 %v3904_v31 }
 0x103   : > { %1113 = vmatmul.f32.vlgmr.msrb.gmra.mxu1 %v3766_v56  ;;  %1178 = vmatmul.f32.vlgmr.msrb.gmra.mxu2 %v3763_v55 }
 0x106   : > { %v919_v7 = vpop.f32.mrf.mxu2 }
 0x107   : > { %v3927_v9 = vpop.f32.mrf.mxu0 }
 0x108   : > { %v3930_v11 = vpop.f32.mrf.mxu1 }
 0x10a   : > { %1051 = vmatmul.f32.gmra.mxu0 %v3772_v3  ;;  %1028 = vmatmul.f32.gmra.mxu3 %v3914_v45 }
 0x10b   : > { %1116 = vmatmul.f32.gmra.mxu1 %v3775_v5  ;;  %1181 = vmatmul.f32.gmra.mxu2 %v3772_v3 }
 0x10e   : > { %v922_v20 = vpop.f32.mrf.mxu2 }
 0x10f   : > { %v3935_v21 = vpop.f32.mrf.mxu0 }
 0x110   : > { %v3938_v22 = vpop.f32.mrf.mxu1 }
 0x112   : > { %1054 = vmatmul.f32.gmra.mxu0 %v3781_v15  ;;  %1243 = vmatmul.f32.vlgmr.msrb.gmra.mxu3 %v3766_v56 }
 0x113   : > { %1119 = vmatmul.f32.gmra.mxu1 %v3784_v17  ;;  %1184 = vmatmul.f32.gmra.mxu2 %v3781_v15 }
 0x115   : > { %v984_v40 = vpop.f32.mrf.mxu3 }
 0x116   : > { %v925_v32 = vpop.f32.mrf.mxu2  ;;  %v3951_v41 = vadd.f32 %v984_v40, %v919_v7  ;;  %v1413_v40 = vld [vmem:[#allocation11 + $0x50] sm:$0xff] }
 0x117   : > { %v3943_v35 = vpop.f32.mrf.mxu0  ;;  %1424 = vmatpush.msra.mxu2 %v1413_v40 }
 0x118   : > { %v3946_v36 = vpop.f32.mrf.mxu1  ;;  %4954 = vst [vmem:[#allocation25_spill] sm:$0xff] %v3951_v41 }
 0x119   : > { %1425 = vmatpush.msra.mxu2 %v1412_v13 }
 0x11a   : > { %1057 = vmatmul.f32.gmra.mxu0 %v3790_v23  ;;  %1246 = vmatmul.f32.gmra.mxu3 %v3775_v5 }
 0x11b   : > { %1122 = vmatmul.f32.gmra.mxu1 %v3794_v24  ;;  %1187 = vmatmul.f32.gmra.mxu2 %v3790_v23 }
 0x11c   : > { %1426 = vmatpush.msra.mxu2 %v1411_v57 }
 0x11d   : > { %v987_v62 = vpop.f32.mrf.mxu3 }
 0x11e   : > { %v928_v50 = vpop.f32.mrf.mxu2  ;;  %v3961_v63 = vadd.f32 %v987_v62, %v922_v20  ;;  %v1298_v20 = vld [vmem:[#allocation9 + $0x30] sm:$0xff] }
 0x11f   : > { %v3953_v51 = vpop.f32.mrf.mxu0  ;;  %1372 = vmatpush.msra.mxu0 %v1298_v20  ;;  %v1296_v20 = vld [vmem:[#allocation9 + $0x20] sm:$0xff] }
 0x120   : > { %v3956_v52 = vpop.f32.mrf.mxu1  ;;  %4955 = vst [vmem:[#allocation26_spill] sm:$0xff] %v3961_v63 }
 0x121   : > { %1373 = vmatpush.msra.mxu0 %v1297_v47 }
 0x122   : > { %1060 = vmatmul.f32.gmra.mxu0 %v3800_v28  ;;  %1249 = vmatmul.f32.gmra.mxu3 %v3784_v17 }
 0x123   : > { %1125 = vmatmul.f32.gmra.mxu1 %v3804_v29  ;;  %1190 = vmatmul.f32.gmra.mxu2 %v3800_v28 }
 0x124   : > { %1374 = vmatpush.msra.mxu0 %v1296_v20  ;;  %v1311_v20 = vld [vmem:[#allocation9 + $0x98] sm:$0xff] }
 0x125   : > { %v990_v14 = vpop.f32.mrf.mxu3  ;;  %1395 = vmatpush.msra.mxu1 %v1311_v20  ;;  %v1294_v20 = vld [vmem:[#allocation9 + $0x10] sm:$0xff] }
 0x126   : > { %v931_v6 = vpop.f32.mrf.mxu2  ;;  %v3971_v16 = vadd.f32 %v990_v14, %v925_v32 }
 0x127   : > { %v3963_v7 = vpop.f32.mrf.mxu0 }
 0x128   : > { %4956 = vst [vmem:[#allocation27_spill] sm:$0xff] %v3963_v7  ;;  %v3966_v8 = vpop.f32.mrf.mxu1 }
 0x129   : > { %4957 = vst [vmem:[#allocation28_spill] sm:$0xff] %v3966_v8 }
 0x12a   : > { %1063 = vmatmul.f32.gmra.mxu0 %v3810_v33  ;;  %4958 = vst [vmem:[#allocation29_spill] sm:$0xff] %v3971_v16  ;;  %1252 = vmatmul.f32.gmra.mxu3 %v3794_v24 }
 0x12b   : > { %1128 = vmatmul.f32.gmra.mxu1 %v3814_v34  ;;  %1193 = vmatmul.f32.gmra.mxu2 %v3810_v33 }
 0x12d   : > { %v993_v46 = vpop.f32.mrf.mxu3 }
 0x12e   : > { %v934_v26 = vpop.f32.mrf.mxu2  ;;  %v3981_v32 = vadd.f32 %v993_v46, %v928_v50 }
 0x12f   : > { %v3973_v27 = vpop.f32.mrf.mxu0 }
 0x130   : > { %4959 = vst [vmem:[#allocation30_spill] sm:$0xff] %v3973_v27  ;;  %v3976_v37 = vpop.f32.mrf.mxu1 }
 0x131   : > { %4960 = vst [vmem:[#allocation31_spill] sm:$0xff] %v3976_v37 }
 0x132   : > { %1066 = vmatmul.f32.gmra.mxu0 %v3820_v38  ;;  %4961 = vst [vmem:[#allocation32_spill] sm:$0xff] %v3981_v32  ;;  %1255 = vmatmul.f32.gmra.mxu3 %v3804_v29  ;;  %v3523_v32 = vmov 16.0  }
 0x133   : > { %1131 = vmatmul.f32.gmra.mxu1 %v3824_v39  ;;  %1196 = vmatmul.f32.gmra.mxu2 %v3820_v38  ;;  %3144 = vrcp.f32 %v3523_v32 }
 0x135   : > { %v996_v14 = vpop.f32.mrf.mxu3 }
 0x136   : > { %v937_v62 = vpop.f32.mrf.mxu2  ;;  %v3991_v50 = vadd.f32 %v996_v14, %v931_v6  ;;  %v1295_v14 = vld [vmem:[#allocation9 + $0x18] sm:$0xff] }
 0x137   : > { %v3983_v0 = vpop.f32.mrf.mxu0  ;;  %1375 = vmatpush.msra.mxu0 %v1295_v14 }
 0x138   : > { %4962 = vst [vmem:[#allocation33_spill] sm:$0xff] %v3983_v0  ;;  %v3986_v1 = vpop.f32.mrf.mxu1 }
 0x139   : > { %4963 = vst [vmem:[#allocation34_spill] sm:$0xff] %v3986_v1  ;;  %v4010_v57 = vpop.eup %3144  ;;  %1376 = vmatpush.msra.mxu0 %v1294_v20  ;;  %v551_v20 = vadd.f32 %v3830_v43, %v3820_v38  ;;  %v565_v38 = vadd.f32 %v3850_v53, %v3840_v48 }
 0x13a   : > { %1069 = vmatmul.f32.gmra.mxu0 %v3830_v43  ;;  %4964 = vst [vmem:[#allocation35_spill] sm:$0xff] %v3991_v50  ;;  %1258 = vmatmul.f32.gmra.mxu3 %v3814_v34  ;;  %v622_v55 = vmul.f32 16.0, %v4010_v57  ;;  %vm626_vm0 = vweird.f32 %v4010_v57 }
 0x13b   : > { %1134 = vmatmul.f32.gmra.mxu1 %v3834_v44  ;;  %1199 = vmatmul.f32.gmra.mxu2 %v3830_v43 }
 0x13d   : > { %v999_v13 = vpop.f32.mrf.mxu3 }
 0x13e   : > { %v940_v40 = vpop.f32.mrf.mxu2  ;;  %v4001_v6 = vadd.f32 %v999_v13, %v934_v26  ;;  %v516_v26 = vadd.f32 %v3775_v5, %v3766_v56  ;;  %v1410_v13 = vld [vmem:[#allocation11 + $0x38] sm:$0xff]  ;;  %v523_v56 = vadd.f32 %v3790_v23, %v3781_v15 }
 0x13f   : > { %v3993_v46 = vpop.f32.mrf.mxu0  ;;  %1427 = vmatpush.msra.mxu2 %v1410_v13  ;;  %v530_v13 = vadd.f32 %v3794_v24, %v3784_v17 }
 0x140   : > { %4965 = vst [vmem:[#allocation36_spill] sm:$0xff] %v3993_v46  ;;  %v3996_v47 = vpop.f32.mrf.mxu1  ;;  %v517_v63 = vrot.slane %v516_v26, 4  ;;  %v524_v23 = vrot.slane %v523_v56, 4 }
 0x141   : > { %4966 = vst [vmem:[#allocation37_spill] sm:$0xff] %v3996_v47  ;;  %v623_v47 = vsub.f32 1.0, %v622_v55  ;;  %v531_v17 = vrot.slane %v530_v13, 4 }
 0x142   : > { %1072 = vmatmul.f32.gmra.mxu0 %v3840_v48  ;;  %4967 = vst [vmem:[#allocation38_spill] sm:$0xff] %v4001_v6  ;;  %1261 = vmatmul.f32.gmra.mxu3 %v3824_v39  ;;  %v510_v6 = vrot.slane %v509_v25, 4  ;;  %v518_v15 = vadd.f32 %v517_v63, %v516_v26  ;;  %v558_v26 = vadd.f32 %v3834_v44, %v3824_v39  ;;  %v1408_v39 = vld [vmem:[#allocation11 + $0x28] sm:$0xff] }
 0x143   : > { %1137 = vmatmul.f32.gmra.mxu1 %v3844_v49  ;;  %1202 = vmatmul.f32.gmra.mxu2 %v3840_v48  ;;  %v624_v55 = vmul.f32 %v4010_v57, %v623_v47  ;;  %v525_v47 = vadd.f32 %v524_v23, %v523_v56  ;;  %v579_v23 = vadd.f32 %v3870_v2, %v3860_v60 }
 0x144   : > { %v511_v5 = vadd.f32 %v510_v6, %v509_v25  ;;  %v1409_v6 = vld [vmem:[#allocation11 + $0x30] sm:$0xff] }
 0x145   : > { %v1002_v14 = vpop.f32.mrf.mxu3  ;;  %1428 = vmatpush.msra.mxu2 %v1409_v6  ;;  %v519_v6 = vrot.slane %v518_v15, 2 }
 0x146   : > { %v4005_v50 = vpop.f32.mrf.mxu2  ;;  %v4020_v3 = vadd.f32 %v1002_v14, %v937_v62  ;;  %v537_v62 = vadd.f32 %v3810_v33, %v3800_v28  ;;  %v512_v25 = vrot.slane %v511_v5, 2  ;;  %v1309_v33 = vld [vmem:[#allocation9 + $0x88] sm:$0xff] }
 0x147   : > { %4968 = vst [vmem:[#allocation39_spill] sm:$0xff] %v4005_v50  ;;  %v4007_v32 = vpop.f32.mrf.mxu0  ;;  %v1310_v50 = vld [vmem:[#allocation9 + $0x90] sm:$0xff]  ;;  %1429 = vmatpush.msra.mxu2 %v1408_v39  ;;  %v520_v48 = vadd.f32 %v519_v6, %v518_v15  ;;  %v1292_v15 = vld [vmem:[#allocation9] sm:$0xff] }
 0x148   : > { %v4012_v16 = vpop.f32.mrf.mxu1  ;;  %4969 = vst [vmem:[#allocation40_spill] sm:$0xff] %v4020_v3  ;;  %1396 = vmatpush.msra.mxu1 %v1310_v50  ;;  %v544_v50 = vadd.f32 %v3814_v34, %v3804_v29  ;;  %v1293_v29 = vld [vmem:[#allocation9 + $0x8] sm:$0xff]  ;;  %v538_v34 = vrot.slane %v537_v62, 4  ;;  %v532_v3 = vadd.f32 %v531_v17, %v530_v13  ;;  %v1407_v17 = vld [vmem:[#allocation11 + $0x20] sm:$0xff] }
 0x149   : > { %1377 = vmatpush.msra.mxu0 %v1293_v29  ;;  %1430 = vmatpush.msra.mxu2 %v1407_v17  ;;  %v593_v17 = vadd.f32 %v3890_v18, %v3880_v10 }
 0x14a   : > { %1075 = vmatmul.f32.gmra.mxu0 %v3850_v53  ;;  %1264 = vmatmul.f32.gmra.mxu3 %v3834_v44  ;;  %v545_v63 = vrot.slane %v544_v50, 4  ;;  %v539_v44 = vadd.f32 %v538_v34, %v537_v62  ;;  %v533_v29 = vrot.slane %v532_v3, 2  ;;  %v1308_v34 = vld [vmem:[#allocation9 + $0x80] sm:$0xff] }
 0x14b   : > { %1140 = vmatmul.f32.gmra.mxu1 %v3854_v54  ;;  %1205 = vmatmul.f32.gmra.mxu2 %v3850_v53  ;;  %v526_v53 = vrot.slane %v525_v47, 2 }
 0x14c   : > { %1397 = vmatpush.msra.mxu1 %v1309_v33  ;;  %v546_v56 = vadd.f32 %v545_v63, %v544_v50  ;;  %v566_v33 = vrot.slane %v565_v38, 4  ;;  %v1406_v63 = vld [vmem:[#allocation11 + $0x18] sm:$0xff]  ;;  %v540_v6 = vrot.slane %v539_v44, 2  ;;  %1378 = vmatpush.msra.mxu0 %v1292_v15  ;;  %v607_v15 = vadd.f32 %v3910_v42, %v3900_v30 }
 0x14d   : > { %v1005_v24 = vpop.f32.mrf.mxu3  ;;  %1431 = vmatpush.msra.mxu2 %v1406_v63 }
 0x14e   : > { %v4026_v41 = vpop.f32.mrf.mxu2  ;;  %v4043_v28 = vadd.f32 %v1005_v24, %v940_v40  ;;  %v625_v40 = vadd.f32 %v4010_v57, %v624_v55  ;;  %v552_v24 = vrot.slane %v551_v20, 4  ;;  %v547_v39 = vrot.slane %v546_v56, 2  ;;  %1398 = vmatpush.msra.mxu1 %v1308_v34  ;;  %v1404_v34 = vld [vmem:[#allocation11 + $0x8] sm:$0xff] }
 0x14f   : > { %4970 = vst [vmem:[#allocation41_spill] sm:$0xff] %v4026_v41  ;;  %v4028_v46 = vpop.f32.mrf.mxu0  ;;  %v513_v41 = vadd.f32 %v512_v25, %v511_v5  ;;  %v559_v5 = vrot.slane %v558_v26, 4  ;;  %v541_v63 = vadd.f32 %v540_v6, %v539_v44  ;;  %v608_v6 = vrot.slane %v607_v15, 4 }
 0x150   : > { %4971 = vst [vmem:[#allocation42_spill] sm:$0xff] %v4028_v46  ;;  %v4035_v14 = vpop.f32.mrf.mxu1  ;;  %v4068_v50 = vsel %vm626_vm0, %v4010_v57, %v625_v40  ;;  %v527_v57 = vadd.f32 %v526_v53, %v525_v47  ;;  %v580_v40 = vrot.slane %v579_v23, 4  ;;  %v614_v47 = vadd.f32 %v3914_v45, %v3904_v31 }
 0x151   : > { %4972 = vst [vmem:[#allocation43_spill] sm:$0xff] %v4035_v14  ;;  %v514_v55 = vrot.slane %v513_v41, 1  ;;  %v609_v7 = vadd.f32 %v608_v6, %v607_v15 }
 0x152   : > { %1078 = vmatmul.f32.gmra.mxu0 %v3860_v60  ;;  %4973 = vst [vmem:[#allocation44_spill] sm:$0xff] %v4043_v28  ;;  %v572_v28 = vadd.f32 %v3854_v54, %v3844_v49  ;;  %1267 = vmatmul.f32.gmra.mxu3 %v3844_v49  ;;  %v586_v49 = vadd.f32 %v3874_v4, %v3864_v61 }
 0x153   : > { %1143 = vmatmul.f32.gmra.mxu1 %v3864_v61  ;;  %1208 = vmatmul.f32.gmra.mxu2 %v3860_v60  ;;  %v553_v60 = vadd.f32 %v552_v24, %v551_v20  ;;  %v600_v20 = vadd.f32 %v3894_v19, %v3884_v12  ;;  %v1405_v24 = vld [vmem:[#allocation11 + $0x10] sm:$0xff] }
 0x154   : > { %v587_v27 = vrot.slane %v586_v49, 4  ;;  %1432 = vmatpush.msra.mxu2 %v1405_v24 }
 0x155   : > { %v4063_v62 = vpop.f32.mrf.mxu3 }
 0x156   : > { %v4049_v43 = vpop.f32.mrf.mxu2  ;;  %4976 = vst [vmem:[#allocation47_spill] sm:$0xff] %v4063_v62  ;;  %v534_v62 = vadd.f32 %v533_v29, %v532_v3  ;;  %v528_v29 = vrot.slane %v527_v57, 1  ;;  %1433 = vmatpush.msra.mxu2 %v1404_v34  ;;  %v588_v8 = vadd.f32 %v587_v27, %v586_v49 }
 0x157   : > { %4974 = vst [vmem:[#allocation45_spill] sm:$0xff] %v4049_v43  ;;  %v822_v37 = vpop.f32.mrf.mxu0  ;;  %v521_v43 = vrot.slane %v520_v48, 1 }
 0x158   : > { %v887_v13 = vpop.f32.mrf.mxu1  ;;  %v535_v1 = vrot.slane %v534_v62, 1  ;;  %v529_v27 = vadd.f32 %v528_v29, %v527_v57 }
 0x159   : > { %v4058_v25 = vadd.f32 %v887_v13, %v822_v37  ;;  %v573_v37 = vrot.slane %v572_v28, 4  ;;  %v560_v13 = vadd.f32 %v559_v5, %v558_v26  ;;  %v554_v26 = vrot.slane %v553_v60, 2 }
 0x15a   : > { %1081 = vmatmul.f32.gmra.mxu0 %v3870_v2  ;;  %1270 = vmatmul.f32.gmra.mxu3 %v3854_v54  ;;  %v522_v46 = vadd.f32 %v521_v43, %v520_v48 }
 0x15b   : > { %4975 = vst [vmem:[#allocation46_spill] sm:$0xff] %v4058_v25  ;;  %1146 = vmatmul.f32.gmra.mxu1 %v3874_v4  ;;  %1211 = vmatmul.f32.gmra.mxu2 %v3870_v2  ;;  %v515_v2 = vadd.f32 %v514_v55, %v513_v41  ;;  %v567_v25 = vadd.f32 %v566_v33, %v565_v38  ;;  %v561_v3 = vrot.slane %v560_v13, 2  ;;  %v594_v38 = vrot.slane %v593_v17, 4 }
 0x15c   : > { %v574_v5 = vadd.f32 %v573_v37, %v572_v28  ;;  %v548_v41 = vadd.f32 %v547_v39, %v546_v56  ;;  %v581_v33 = vadd.f32 %v580_v40, %v579_v23  ;;  %v1403_v37 = vld [vmem:[#allocation11] sm:$0xff]  ;;  %v555_v44 = vadd.f32 %v554_v26, %v553_v60 }
 0x15d   : > { %v568_v0 = vrot.slane %v567_v25, 2  ;;  %v4086_v54 = vpop.f32.mrf.mxu3  ;;  %v615_v39 = vrot.slane %v614_v47, 4  ;;  %v542_v23 = vrot.slane %v541_v63, 1  ;;  %v562_v24 = vadd.f32 %v561_v3, %v560_v13  ;;  %1434 = vmatpush.msra.mxu2 %v1403_v37 }
 0x15e   : > { %v4076_v14 = vpop.f32.mrf.mxu2  ;;  %4979 = vst [vmem:[#allocation50_spill] sm:$0xff] %v4086_v54  ;;  %v575_v56 = vrot.slane %v574_v5, 2  ;;  %v549_v40 = vrot.slane %v548_v41, 1  ;;  %v4091_v43 = vmul.f32 %v4068_v50, %v515_v2  ;;  %v582_v48 = vrot.slane %v581_v33, 2 }
 0x15f   : > { %4977 = vst [vmem:[#allocation48_spill] sm:$0xff] %v4076_v14  ;;  %v825_v53 = vpop.f32.mrf.mxu0  ;;  %v601_v14 = vrot.slane %v600_v20, 4  ;;  %v4094_v60 = vmul.f32 %v4068_v50, %v522_v46  ;;  %v536_v26 = vadd.f32 %v535_v1, %v534_v62  ;;  %v569_v34 = vadd.f32 %v568_v0, %v567_v25 }
 0x160   : > { %v890_v55 = vpop.f32.mrf.mxu1  ;;  %4980 = vst [vmem:[#allocation51_spill] sm:$0xff] %v4091_v43  ;;  %v616_v13 = vadd.f32 %v615_v39, %v614_v47  ;;  %v543_v2 = vadd.f32 %v542_v23, %v541_v63  ;;  %v550_v3 = vadd.f32 %v549_v40, %v548_v41  ;;  %v563_v57 = vrot.slane %v562_v24, 1 }
 0x161   : > { %v4083_v28 = vadd.f32 %v890_v55, %v825_v53  ;;  %v595_v53 = vadd.f32 %v594_v38, %v593_v17  ;;  %v602_v49 = vadd.f32 %v601_v14, %v600_v20  ;;  %4981 = vst [vmem:[#allocation52_spill] sm:$0xff] %v4094_v60  ;;  %v589_v55 = vrot.slane %v588_v8, 2 }
 0x162   : > { %1084 = vmatmul.f32.gmra.mxu0 %v3880_v10  ;;  %1273 = vmatmul.f32.gmra.mxu3 %v3864_v61  ;;  %v4100_v46 = vmul.f32 %v4068_v50, %v529_v27  ;;  %v583_v1 = vadd.f32 %v582_v48, %v581_v33  ;;  %v4105_v62 = vmul.f32 %v4068_v50, %v536_v26  ;;  %v570_v20 = vrot.slane %v569_v34, 1 }
 0x163   : > { %4978 = vst [vmem:[#allocation49_spill] sm:$0xff] %v4083_v28  ;;  %1149 = vmatmul.f32.gmra.mxu1 %v3884_v12  ;;  %1214 = vmatmul.f32.gmra.mxu2 %v3880_v10  ;;  %v556_v10 = vrot.slane %v555_v44, 1  ;;  %v576_v28 = vadd.f32 %v575_v56, %v574_v5  ;;  %v596_v38 = vrot.slane %v595_v53, 2  ;;  %v603_v0 = vrot.slane %v602_v49, 2 }
 0x164   : > { %4982 = vst [vmem:[#allocation53_spill] sm:$0xff] %v4100_v46  ;;  %v590_v5 = vadd.f32 %v589_v55, %v588_v8  ;;  %v610_v63 = vrot.slane %v609_v7, 2  ;;  %v617_v41 = vrot.slane %v616_v13, 2  ;;  %v4113_v29 = vmul.f32 %v4068_v50, %v543_v2 }
 0x165   : > { %4983 = vst [vmem:[#allocation54_spill] sm:$0xff] %v4105_v62  ;;  %v4108_v61 = vpop.f32.mrf.mxu3  ;;  %v557_v15 = vadd.f32 %v556_v10, %v555_v44  ;;  %v577_v47 = vrot.slane %v576_v28, 1  ;;  %v4116_v33 = vmul.f32 %v4068_v50, %v550_v3  ;;  %v564_v8 = vadd.f32 %v563_v57, %v562_v24 }
 0x166   : > { %v4096_v54 = vpop.f32.mrf.mxu2  ;;  %4984 = vst [vmem:[#allocation55_spill] sm:$0xff] %v4113_v29  ;;  %v597_v37 = vadd.f32 %v596_v38, %v595_v53  ;;  %v584_v56 = vrot.slane %v583_v1, 1  ;;  %v604_v6 = vadd.f32 %v603_v0, %v602_v49  ;;  %v1341_v44 = vsel %vm1340_vm1, %v4100_v46, %v4091_v43 }
 0x167   : > { %v828_v17 = vpop.f32.mrf.mxu0  ;;  %4985 = vst [vmem:[#allocation56_spill] sm:$0xff] %v4116_v33  ;;  %v571_v39 = vadd.f32 %v570_v20, %v569_v34  ;;  %v591_v23 = vrot.slane %v590_v5, 1  ;;  %v578_v27 = vadd.f32 %v577_v47, %v576_v28  ;;  %v611_v24 = vadd.f32 %v610_v63, %v609_v7 }
 0x168   : > { %v893_v14 = vpop.f32.mrf.mxu1  ;;  %v4128_v53 = vmul.f32 %v4068_v50, %v557_v15  ;;  %v618_v49 = vadd.f32 %v617_v41, %v616_v13  ;;  %v598_v55 = vrot.slane %v597_v37, 1  ;;  %v1343_v34 = vsel %vm1342_vm2, %v4113_v29, %v1341_v44 }
 0x169   : > { %v4102_v25 = vadd.f32 %v893_v14, %v828_v17  ;;  %v4133_v10 = vmul.f32 %v4068_v50, %v564_v8  ;;  %v585_v28 = vadd.f32 %v584_v56, %v583_v1  ;;  %v605_v2 = vrot.slane %v604_v6, 1 }
 0x16a   : > { %1087 = vmatmul.f32.gmra.mxu0 %v3890_v18  ;;  %1276 = vmatmul.f32.gmra.mxu3 %v3874_v4  ;;  %4986 = vst [vmem:[#allocation57_spill] sm:$0xff] %v4128_v53  ;;  %v4143_v13 = vmul.f32 %v4068_v50, %v571_v39  ;;  %v592_v3 = vadd.f32 %v591_v23, %v590_v5  ;;  %v612_v57 = vrot.slane %v611_v24, 1  ;;  %v619_v0 = vrot.slane %v618_v49, 1 }
 0x16b   : > { %1152 = vmatmul.f32.gmra.mxu1 %v3894_v19  ;;  %1217 = vmatmul.f32.gmra.mxu2 %v3890_v18  ;;  %v1354_v18 = vsel %vm1340_vm1, %v4105_v62, %v4094_v60  ;;  %4987 = vst [vmem:[#allocation58_spill] sm:$0xff] %v4133_v10  ;;  %v1345_v38 = vsel %vm1344_vm3, %v4128_v53, %v1343_v34 }
 0x16c   : > { %v1355_v4 = vsel %vm1342_vm2, %v4116_v33, %v1354_v18  ;;  %4988 = vst [vmem:[#allocation59_spill] sm:$0xff] %v4143_v13  ;;  %v4150_v14 = vmul.f32 %v4068_v50, %v578_v27  ;;  %v599_v1 = vadd.f32 %v598_v55, %v597_v37  ;;  %v4155_v15 = vmul.f32 %v4068_v50, %v585_v28 }
 0x16d   : > { %v4140_v7 = vpop.f32.mrf.mxu3  ;;  %v1356_v20 = vsel %vm1344_vm3, %v4133_v10, %v1355_v4  ;;  %v606_v5 = vadd.f32 %v605_v2, %v604_v6  ;;  %v4162_v63 = vmul.f32 %v4068_v50, %v592_v3  ;;  %v613_v8 = vadd.f32 %v612_v57, %v611_v24  ;;  %v508_v4 = vld [vmem:[%s3744_s19] sm:$0xff] }
 0x16e   : > { %v4121_v40 = vpop.f32.mrf.mxu2  ;;  %4989 = vst [vmem:[#allocation60_spill] sm:$0xff] %v4150_v14  ;;  %v1357_v37 = vsel %vm1346_vm4, %v4150_v14, %v1356_v20  ;;  %v4168_v44 = vmul.f32 %v4068_v50, %v599_v1  ;;  %v620_v6 = vadd.f32 %v619_v0, %v618_v49 }
 0x16f   : > { %v831_v48 = vpop.f32.mrf.mxu0  ;;  %4990 = vst [vmem:[#allocation61_spill] sm:$0xff] %v4155_v15  ;;  %v4175_v18 = vmul.f32 %v4068_v50, %v606_v5 }
 0x170   : > { %v896_v26 = vpop.f32.mrf.mxu1  ;;  %4991 = vst [vmem:[#allocation62_spill] sm:$0xff] %v4162_v63  ;;  %v4190_v49 = vmul.f32 %v4068_v50, %v620_v6 }
 0x171   : > { %v4135_v17 = vadd.f32 %v896_v26, %v831_v48  ;;  %4992 = vst [vmem:[#allocation63_spill] sm:$0xff] %v4168_v44  ;;  %v4185_v48 = vmul.f32 %v4068_v50, %v613_v8 }
 0x172   : > { %1090 = vmatmul.f32.gmra.mxu0 %v3900_v30  ;;  %1279 = vmatmul.f32.gmra.mxu3 %v3884_v12  ;;  %4993 = vst [vmem:[#allocation64_spill] sm:$0xff] %v4175_v18  ;;  %v1358_v12 = vsel %vm1348_vm5, %v4162_v63, %v1357_v37 }
 0x173   : > { %1155 = vmatmul.f32.gmra.mxu1 %v3904_v31  ;;  %1220 = vmatmul.f32.gmra.mxu2 %v3900_v30  ;;  %v1347_v30 = vsel %vm1346_vm4, %v4143_v13, %v1345_v38  ;;  %4994 = vst [vmem:[#allocation65_spill] sm:$0xff] %v4185_v48  ;;  %v1359_v26 = vsel %vm1350_vm6, %v4175_v18, %v1358_v12 }
 0x174   : > { %v1349_v23 = vsel %vm1348_vm5, %v4155_v15, %v1347_v30  ;;  %4995 = vst [vmem:[#allocation66_spill] sm:$0xff] %v4190_v49  ;;  %v1360_v2 = vsel %vm1352_vm7, %v4190_v49, %v1359_v26 }
 0x175   : > { %v4180_v27 = vpop.f32.mrf.mxu3  ;;  %v1351_v24 = vsel %vm1350_vm6, %v4168_v44, %v1349_v23 }
 0x176   : > { %v4157_v47 = vpop.f32.mrf.mxu2  ;;  %v1353_v28 = vsel %vm1352_vm7, %v4185_v48, %v1351_v24 }
 0x177   : > { %v834_v41 = vpop.f32.mrf.mxu0 }
 0x178   : > { %v899_v56 = vpop.f32.mrf.mxu1 }
 0x179   : > { %v4170_v39 = vadd.f32 %v899_v56, %v834_v41 }
 0x17a   : > { %1093 = vmatmul.f32.gmra.mxu0 %v3910_v42  ;;  %1282 = vmatmul.f32.gmra.mxu3 %v3894_v19 }
 0x17b   : > { %1158 = vmatmul.f32.gmra.mxu1 %v3914_v45  ;;  %1223 = vmatmul.f32.gmra.mxu2 %v3910_v42 }
 0x17d   : > { %v4204_v50 = vpop.f32.mrf.mxu3 }
 0x17e   : > { %v4194_v55 = vpop.f32.mrf.mxu2 }
 0x17f   : > { %v1049_v34 = vpop.f32.mrf.mxu0 }
 0x180   : > { %v1114_v42 = vpop.f32.mrf.mxu1 }
 0x181   : > { %v4202_v3 = vadd.f32 %v1114_v42, %v1049_v34 }
 0x182   : > { %1379 = vmatmul.f32.vlgmr.msra.gmra.mxu0 %v1353_v28  ;;  %1285 = vmatmul.f32.gmra.mxu3 %v3904_v31 }
 0x183   : > { %1399 = vmatmul.f32.vlgmr.msra.gmra.mxu1 %v1360_v2  ;;  %1435 = vmatmul.f32.vlgmr.msra.gmra.mxu2 %v508_v4 }
 0x185   : > { %v4209_v19 = vpop.f32.mrf.mxu3 }
 0x186   : > { %v1179_v57 = vpop.f32.mrf.mxu2 }
 0x187   : > { %v1052_v38 = vpop.f32.mrf.mxu0 }
 0x188   : > { %v1117_v1 = vpop.f32.mrf.mxu1 }
 0x189   : > { %v4207_v0 = vadd.f32 %v1117_v1, %v1052_v38 }
 0x18a   : > { %1288 = vmatmul.f32.gmra.mxu3 %v3914_v45 }
 0x18d   : > { %v4214_v8 = vpop.f32.mrf.mxu3 }
 0x18e   : > { %v1182_v20 = vpop.f32.mrf.mxu2 }
 0x18f   : > { %v1055_v5 = vpop.f32.mrf.mxu0 }
 0x190   : > { %v1120_v30 = vpop.f32.mrf.mxu1 }
 0x191   : > { %v4212_v41 = vadd.f32 %v1120_v30, %v1055_v5 }
 0x195   : > { %v1244_v31 = vpop.f32.mrf.mxu3 }
 0x196   : > { %v1185_v37 = vpop.f32.mrf.mxu2  ;;  %v4218_v12 = vadd.f32 %v1244_v31, %v1179_v57 }
 0x197   : > { %v1058_v56 = vpop.f32.mrf.mxu0 }
 0x198   : > { %v1123_v6 = vpop.f32.mrf.mxu1  ;;  %4996 = vst [vmem:[#allocation67_spill] sm:$0xff] %v4218_v12 }
 0x199   : > { %v4216_v23 = vadd.f32 %v1123_v6, %v1058_v56 }
 0x19d   : > { %v1247_v42 = vpop.f32.mrf.mxu3 }
 0x19e   : > { %v1188_v24 = vpop.f32.mrf.mxu2  ;;  %v4222_v45 = vadd.f32 %v1247_v42, %v1182_v20 }
 0x19f   : > { %v1061_v26 = vpop.f32.mrf.mxu0 }
 0x1a0   : > { %v1126_v34 = vpop.f32.mrf.mxu1  ;;  %4998 = vst [vmem:[#allocation69_spill] sm:$0xff] %v4222_v45 }
 0x1a1   : > { %v4220_v28 = vadd.f32 %v1126_v34, %v1061_v26 }
 0x1a3   : > { %4997 = vst [vmem:[#allocation68_spill] sm:$0xff] %v4220_v28 }
 0x1a5   : > { %v1250_v5 = vpop.f32.mrf.mxu3 }
 0x1a6   : > { %v1191_v4 = vpop.f32.mrf.mxu2  ;;  %v4226_v30 = vadd.f32 %v1250_v5, %v1185_v37 }
 0x1a7   : > { %v1064_v2 = vpop.f32.mrf.mxu0 }
 0x1a8   : > { %v1129_v38 = vpop.f32.mrf.mxu1  ;;  %5000 = vst [vmem:[#allocation71_spill] sm:$0xff] %v4226_v30 }
 0x1a9   : > { %v4224_v1 = vadd.f32 %v1129_v38, %v1064_v2 }
 0x1ab   : > { %4999 = vst [vmem:[#allocation70_spill] sm:$0xff] %v4224_v1 }
 0x1ad   : > { %v1253_v49 = vpop.f32.mrf.mxu3 }
 0x1ae   : > { %v1194_v31 = vpop.f32.mrf.mxu2  ;;  %v4230_v48 = vadd.f32 %v1253_v49, %v1188_v24 }
 0x1af   : > { %v1067_v56 = vpop.f32.mrf.mxu0 }
 0x1b0   : > { %v1132_v6 = vpop.f32.mrf.mxu1  ;;  %5002 = vst [vmem:[#allocation73_spill] sm:$0xff] %v4230_v48 }
 0x1b1   : > { %v4228_v57 = vadd.f32 %v1132_v6, %v1067_v56 }
 0x1b3   : > { %5001 = vst [vmem:[#allocation72_spill] sm:$0xff] %v4228_v57 }
 0x1b5   : > { %v1256_v42 = vpop.f32.mrf.mxu3 }
 0x1b6   : > { %v4234_v18 = vadd.f32 %v1256_v42, %v1191_v4  ;;  %v1197_v2 = vpop.f32.mrf.mxu2 }
 0x1b7   : > { %v1070_v26 = vpop.f32.mrf.mxu0 }
 0x1b8   : > { %v1135_v34 = vpop.f32.mrf.mxu1  ;;  %5004 = vst [vmem:[#allocation75_spill] sm:$0xff] %v4234_v18 }
 0x1b9   : > { %v4232_v20 = vadd.f32 %v1135_v34, %v1070_v26 }
 0x1bb   : > { %5003 = vst [vmem:[#allocation74_spill] sm:$0xff] %v4232_v20 }
 0x1bd   : > { %v1259_v5 = vpop.f32.mrf.mxu3 }
 0x1be   : > { %v4238_v63 = vadd.f32 %v1259_v5, %v1194_v31  ;;  %v4240_v56 = vpop.f32.mrf.mxu2 }
 0x1bf   : > { %v1073_v38 = vpop.f32.mrf.mxu0  ;;  %5007 = vst [vmem:[#allocation78_spill] sm:$0xff] %v4240_v56 }
 0x1c0   : > { %v1138_v14 = vpop.f32.mrf.mxu1  ;;  %5006 = vst [vmem:[#allocation77_spill] sm:$0xff] %v4238_v63 }
 0x1c1   : > { %v4236_v37 = vadd.f32 %v1138_v14, %v1073_v38 }
 0x1c3   : > { %5005 = vst [vmem:[#allocation76_spill] sm:$0xff] %v4236_v37 }
 0x1c5   : > { %v1262_v10 = vpop.f32.mrf.mxu3 }
 0x1c6   : > { %v4244_v26 = vadd.f32 %v1262_v10, %v1197_v2  ;;  %v4246_v4 = vpop.f32.mrf.mxu2 }
 0x1c7   : > { %v1076_v6 = vpop.f32.mrf.mxu0  ;;  %5009 = vst [vmem:[#allocation80_spill] sm:$0xff] %v4246_v4 }
 0x1c8   : > { %v1141_v49 = vpop.f32.mrf.mxu1  ;;  %5008 = vst [vmem:[#allocation79_spill] sm:$0xff] %v4244_v26 }
 0x1c9   : > { %v4242_v24 = vadd.f32 %v1141_v49, %v1076_v6 }
 0x1ce   : > { %v4252_v31 = vpop.f32.mrf.mxu2 }
 0x1cf   : > { %v1079_v34 = vpop.f32.mrf.mxu0  ;;  %5012 = vst [vmem:[#allocation83_spill] sm:$0xff] %v4252_v31 }
 0x1d0   : > { %v1144_v42 = vpop.f32.mrf.mxu1 }
 0x1d1   : > { %v4248_v62 = vadd.f32 %v1144_v42, %v1079_v34 }
 0x1d3   : > { %5010 = vst [vmem:[#allocation81_spill] sm:$0xff] %v4248_v62 }
 0x1d6   : > { %v4256_v6 = vpop.f32.mrf.mxu2 }
 0x1d7   : > { %v1082_v14 = vpop.f32.mrf.mxu0  ;;  %5014 = vst [vmem:[#allocation85_spill] sm:$0xff] %v4256_v6 }
 0x1d8   : > { %v1147_v38 = vpop.f32.mrf.mxu1 }
 0x1d9   : > { %v4250_v60 = vadd.f32 %v1147_v38, %v1082_v14 }
 0x1db   : > { %5011 = vst [vmem:[#allocation82_spill] sm:$0xff] %v4250_v60 }
 0x1de   : > { %v4260_v4 = vpop.f32.mrf.mxu2 }
 0x1df   : > { %v1085_v5 = vpop.f32.mrf.mxu0  ;;  %5016 = vst [vmem:[#allocation87_spill] sm:$0xff] %v4260_v4 }
 0x1e0   : > { %v1150_v33 = vpop.f32.mrf.mxu1 }
 0x1e1   : > { %v4254_v56 = vadd.f32 %v1150_v33, %v1085_v5 }
 0x1e3   : > { %5013 = vst [vmem:[#allocation84_spill] sm:$0xff] %v4254_v56 }
 0x1e6   : > { %v4264_v38 = vpop.f32.mrf.mxu2 }
 0x1e7   : > { %v1088_v10 = vpop.f32.mrf.mxu0  ;;  %5018 = vst [vmem:[#allocation89_spill] sm:$0xff] %v4264_v38 }
 0x1e8   : > { %v1153_v2 = vpop.f32.mrf.mxu1 }
 0x1e9   : > { %v4258_v49 = vadd.f32 %v1153_v2, %v1088_v10  ;;  %v855_v10 = vadd.f32 %v3922_v59, %v3919_v58  ;;  %v858_v58 = vadd.f32 %v3930_v11, %v3927_v9 }
 0x1eb   : > { %5015 = vst [vmem:[#allocation86_spill] sm:$0xff] %v4258_v49 }
 0x1ee   : > { %v4268_v6 = vpop.f32.mrf.mxu2 }
 0x1ef   : > { %v1091_v34 = vpop.f32.mrf.mxu0  ;;  %5020 = vst [vmem:[#allocation91_spill] sm:$0xff] %v4268_v6 }
 0x1f0   : > { %v1156_v42 = vpop.f32.mrf.mxu1 }
 0x1f1   : > { %v4262_v26 = vadd.f32 %v1156_v42, %v1091_v34  ;;  %v861_v34 = vadd.f32 %v3938_v22, %v3935_v21  ;;  %v867_v42 = vadd.f32 %v3956_v52, %v3953_v51  ;;  %v864_v21 = vadd.f32 %v3946_v36, %v3943_v35  ;;  %v5026_v35 = vld [vmem:[#allocation42_spill] sm:$0xff]  ;;  %v5027_v36 = vld [vmem:[#allocation43_spill] sm:$0xff] }
 0x1f2   : > { %v882_v22 = vadd.f32 %v4012_v16, %v4007_v32 }
 0x1f3   : > { %5017 = vst [vmem:[#allocation88_spill] sm:$0xff] %v4262_v26 }
 0x1f6   : > { %v4278_v6 = vpop.f32.mrf.mxu2 }
 0x1f7   : > { %v1094_v14 = vpop.f32.mrf.mxu0  ;;  %5021 = vst [vmem:[#allocation92_spill] sm:$0xff] %v4278_v6  ;;  %v885_v6 = vadd.f32 %v5027_v36, %v5026_v35  ;;  %v5034_v36 = vld [vmem:[#allocation25_spill] sm:$0xff] }
 0x1f8   : > { %v1159_v31 = vpop.f32.mrf.mxu1 }
 0x1f9   : > { %v4266_v44 = vadd.f32 %v1159_v31, %v1094_v14 }
 0x1fb   : > { %5019 = vst [vmem:[#allocation90_spill] sm:$0xff] %v4266_v44 }
 0x1fe   : > { %v4290_v32 = vpop.f32.mrf.mxu2 }
 0x1ff   : > { %v1380_v33 = vpop.f32.mrf.mxu0 }
 0x200   : > { %v1400_v5 = vpop.f32.mrf.mxu1 }
 0x201   : > { %v1401_v30 = vadd.f32 %v1400_v5, %v1380_v33 }
 0x203   : > { %v1447_v2 = vperm.slane %v1401_v30, 0  ;;  %v1441_v4 = vrot.slane %v1401_v30, 2  ;;  %v1440_v48 = vrot.slane %v1401_v30, 1  ;;  %v1443_v5 = vrot.slane %v1401_v30, 4 }
 0x205   : > { %v1463_v26 = vmul.f32 %v1447_v2, %v855_v10  ;;  %v1449_v31 = vperm.slane %v1441_v4, 0  ;;  %v1448_v14 = vperm.slane %v1440_v48, 0  ;;  %v1451_v59 = vperm.slane %v1443_v5, 0  ;;  %v5023_v10 = vld [vmem:[#allocation28_spill] sm:$0xff] }
 0x206   : > { %v1464_v51 = vmul.f32 %v1447_v2, %v858_v58  ;;  %v1442_v4 = vrot.slane %v1401_v30, 3  ;;  %v1446_v58 = vrot.slane %v1401_v30, 7 }
 0x207   : > { %1479 = vadd.xlane.f32.xlu0 %v1463_v26  ;;  %v1467_v44 = vmul.f32 %v1449_v31, %v867_v42  ;;  %v1465_v33 = vmul.f32 %v1448_v14, %v861_v34  ;;  %v1472_v52 = vmul.f32 %v1451_v59, %v882_v22  ;;  %v1466_v48 = vmul.f32 %v1448_v14, %v864_v21  ;;  %v5024_v42 = vld [vmem:[#allocation33_spill] sm:$0xff]  ;;  %v5029_v21 = vld [vmem:[#allocation30_spill] sm:$0xff]  ;;  %v5030_v22 = vld [vmem:[#allocation31_spill] sm:$0xff] }
 0x208   : > { %v1444_v26 = vrot.slane %v1401_v30, 5  ;;  %v1450_v34 = vperm.slane %v1442_v4, 0 }
 0x209   : > { %1487 = vadd.xlane.f32.xlu2 %v1467_v44  ;;  %1483 = vadd.xlane.f32.xlu1 %v1465_v33  ;;  %v5022_v44 = vld [vmem:[#allocation27_spill] sm:$0xff]  ;;  %v5025_v33 = vld [vmem:[#allocation34_spill] sm:$0xff] }
 0x20a   : > { %v870_v9 = vadd.f32 %v5023_v10, %v5022_v44  ;;  %v1452_v11 = vperm.slane %v1444_v26, 0  ;;  %v876_v5 = vadd.f32 %v5025_v33, %v5024_v42  ;;  %5028 = vst [vmem:[#allocation27_spill] sm:$0xff] %v4290_v32  ;;  %v5032_v26 = vld [vmem:[#allocation37_spill] sm:$0xff]  ;;  %v1436_v42 = vpop.f32.mrf.mxu2 }
 0x20c   : > { %v1468_v16 = vmul.f32 %v1449_v31, %v870_v9  ;;  %v1473_v2 = vmul.f32 %v1452_v11, %v885_v6  ;;  %v1470_v14 = vmul.f32 %v1450_v34, %v876_v5  ;;  %v1445_v9 = vrot.slane %v1401_v30, 6  ;;  %v5033_v5 = vld [vmem:[#allocation46_spill] sm:$0xff] }
 0x20d   : > { %v1535_v6 = vperm.slane %v1436_v42, 0  ;;  %v1474_v35 = vmul.f32 %v1452_v11, %v5033_v5  ;;  %v5042_v5 = vld [vmem:[#allocation35_spill] sm:$0xff] }
 0x20e   : > { %v1453_v33 = vperm.slane %v1445_v9, 0  ;;  %v5040_v9 = vld [vmem:[#allocation44_spill] sm:$0xff] }
 0x20f   : > { %1481 = vadd.xlane.f32.xlu0 %v1464_v51  ;;  %v873_v51 = vadd.f32 %v5030_v22, %v5029_v21  ;;  %v1529_v21 = vrot.slane %v1436_v42, 2 }
 0x211   : > { %1497 = vadd.xlane.f32.xlu2 %v1472_v52  ;;  %1485 = vadd.xlane.f32.xlu1 %v1466_v48  ;;  %v1454_v52 = vperm.slane %v1446_v58, 0  ;;  %v5031_v48 = vld [vmem:[#allocation36_spill] sm:$0xff]  ;;  %v1469_v44 = vmul.f32 %v1450_v34, %v873_v51  ;;  %v5035_v34 = vld [vmem:[#allocation49_spill] sm:$0xff]  ;;  %v1528_v58 = vrot.slane %v1436_v42, 1  ;;  %v1537_v11 = vperm.slane %v1529_v21, 0 }
 0x212   : > { %v879_v4 = vadd.f32 %v5032_v26, %v5031_v48  ;;  %v5037_v51 = vld [vmem:[#allocation29_spill] sm:$0xff]  ;;  %v1530_v26 = vrot.slane %v1436_v42, 3  ;;  %v5047_v21 = vld [vmem:[#allocation48_spill] sm:$0xff] }
 0x213   : > { %v1478_v10 = vmul.f32 %v1454_v52, %v4170_v39  ;;  %v5036_v39 = vld [vmem:[#allocation26_spill] sm:$0xff]  ;;  %v1536_v22 = vperm.slane %v1528_v58, 0 }
 0x214   : > { %v1471_v31 = vmul.f32 %v1451_v59, %v879_v4  ;;  %v1552_v30 = vmul.f32 %v1535_v6, %v5036_v39  ;;  %v1477_v59 = vmul.f32 %v1454_v52, %v4135_v17  ;;  %v5041_v17 = vld [vmem:[#allocation40_spill] sm:$0xff]  ;;  %v5045_v39 = vld [vmem:[#allocation41_spill] sm:$0xff] }
 0x215   : > { %v1553_v48 = vmul.f32 %v1536_v22, %v5037_v51 }
 0x217   : > { %1489 = vadd.xlane.f32.xlu0 %v1468_v16  ;;  %v1551_v16 = vmul.f32 %v1535_v6, %v5034_v36  ;;  %v1532_v36 = vrot.slane %v1436_v42, 5 }
 0x219   : > { %1499 = vadd.xlane.f32.xlu2 %v1473_v2  ;;  %1493 = vadd.xlane.f32.xlu1 %v1470_v14  ;;  %v1476_v2 = vmul.f32 %v1453_v33, %v4102_v25  ;;  %v1475_v14 = vmul.f32 %v1453_v33, %v5035_v34  ;;  %v5038_v25 = vld [vmem:[#allocation38_spill] sm:$0xff]  ;;  %v1531_v33 = vrot.slane %v1436_v42, 4  ;;  %v5044_v34 = vld [vmem:[#allocation47_spill] sm:$0xff]  ;;  %v1540_v58 = vperm.slane %v1532_v36, 0 }
 0x21a   : > { %v1556_v4 = vmul.f32 %v1537_v11, %v5038_v25 }
 0x21f   : > { %1491 = vadd.xlane.f32.xlu0 %v1469_v44  ;;  %v5039_v44 = vld [vmem:[#allocation32_spill] sm:$0xff] }
 0x221   : > { %1509 = vadd.xlane.f32.xlu2 %v1478_v10  ;;  %1495 = vadd.xlane.f32.xlu1 %v1471_v31  ;;  %v1554_v10 = vmul.f32 %v1536_v22, %v5039_v44  ;;  %v1538_v31 = vperm.slane %v1530_v26, 0  ;;  %v1018_v22 = vadd.f32 %v4140_v7, %v5047_v21  ;;  %v5048_v44 = vld [vmem:[#allocation45_spill] sm:$0xff] }
 0x223   : > { %v1558_v6 = vmul.f32 %v1538_v31, %v5040_v9  ;;  %v1557_v52 = vmul.f32 %v1538_v31, %v5041_v17  ;;  %v1562_v26 = vmul.f32 %v1540_v58, %v1018_v22  ;;  %v1021_v31 = vadd.f32 %v4180_v27, %v4096_v54 }
 0x227   : > { %1501 = vadd.xlane.f32.xlu0 %v1474_v35  ;;  %v1555_v35 = vmul.f32 %v1537_v11, %v5042_v5 }
 0x229   : > { %1567 = vadd.xlane.f32.xlu2 %v1551_v16  ;;  %1505 = vadd.xlane.f32.xlu1 %v1476_v2  ;;  %v1539_v16 = vperm.slane %v1531_v33, 0  ;;  %v5043_v2 = vld [vmem:[#allocation39_spill] sm:$0xff] }
 0x22f   : > { %1503 = vadd.xlane.f32.xlu0 %v1475_v14  ;;  %v1009_v14 = vadd.f32 %v5044_v34, %v5043_v2 }
 0x231   : > { %1569 = vadd.xlane.f32.xlu2 %v1552_v30  ;;  %1507 = vadd.xlane.f32.xlu1 %v1477_v59  ;;  %v5046_v30 = vld [vmem:[#allocation50_spill] sm:$0xff]  ;;  %v1559_v51 = vmul.f32 %v1539_v16, %v1009_v14  ;;  %v1631_v14 = vlaneseq }
 0x232   : > { %v1012_v59 = vadd.f32 %v5046_v30, %v5045_v39 }
 0x234   : > { %v1560_v25 = vmul.f32 %v1539_v16, %v1012_v59 }
 0x237   : > { %1571 = vadd.xlane.f32.xlu0 %v1553_v48  ;;  %v1533_v48 = vrot.slane %v1436_v42, 6 }
 0x239   : > { %1577 = vadd.xlane.f32.xlu2 %v1556_v4  ;;  %1573 = vadd.xlane.f32.xlu1 %v1554_v10  ;;  %v1541_v11 = vperm.slane %v1533_v48, 0  ;;  %v1024_v4 = vadd.f32 %v4204_v50, %v4121_v40  ;;  %v1015_v10 = vadd.f32 %v4108_v61, %v5048_v44  ;;  %v1030_v40 = vadd.f32 %v4214_v8, %v4194_v55 }
 0x23b   : > { %v1564_v9 = vmul.f32 %v1541_v11, %v1024_v4  ;;  %v1563_v7 = vmul.f32 %v1541_v11, %v1021_v31  ;;  %v1561_v33 = vmul.f32 %v1540_v58, %v1015_v10 }
 0x23f   : > { %1581 = vadd.xlane.f32.xlu0 %v1558_v6  ;;  %v1534_v6 = vrot.slane %v1436_v42, 7 }
 0x241   : > { %1579 = vadd.xlane.f32.xlu2 %v1557_v52  ;;  %1575 = vadd.xlane.f32.xlu1 %v1555_v35  ;;  %v1542_v17 = vperm.slane %v1534_v6, 0  ;;  %v1027_v52 = vadd.f32 %v4209_v19, %v4157_v47  ;;  %v4325_v19 = vand.u32 127, %v1631_v14 }
 0x243   : > { %v1565_v50 = vmul.f32 %v1542_v17, %v1027_v52  ;;  %v1566_v61 = vmul.f32 %v1542_v17, %v1030_v40  ;;  %v4330_v8 = vadd.s32 4294967288, %v4325_v19 }
 0x247   : > { %1583 = vadd.xlane.f32.xlu0 %v1559_v51 }
 0x249   : > { %1589 = vadd.xlane.f32.xlu2 %v1562_v26  ;;  %1585 = vadd.xlane.f32.xlu1 %v1560_v25 }
 0x24f   : > { %1593 = vadd.xlane.f32.xlu0 %v1564_v9 }
 0x251   : > { %1591 = vadd.xlane.f32.xlu2 %v1563_v7  ;;  %1587 = vadd.xlane.f32.xlu1 %v1561_v33 }
 0x257   : > { %1595 = vadd.xlane.f32.xlu0 %v1565_v50 }
 0x259   : > { %1597 = vadd.xlane.f32.xlu1 %v1566_v61 }
 0x27a   : > { %v1480_v5 = vpop.xlane.xlu0 %1479 }
 0x27b   : > { %v4342_v48 = vmul.f32 0.088388346, %v1480_v5 }
 0x27c   : > { %v1488_v54 = vpop.xlane.xlu2 %1487  ;;  %v1484_v27 = vpop.xlane.xlu1 %1483 }
 0x27d   : > { %v4334_v59 = vmul.f32 0.088388346, %v1484_v27  ;;  %v4340_v51 = vmul.f32 0.088388346, %v1488_v54  ;;  %v1633_v40 = vperm.slane %v4342_v48, %v4325_v19 }
 0x27f   : > { %v1638_v10 = vperm.slane %v4334_v59, %v4325_v19  ;;  %v1641_v17 = vperm.slane %v4340_v51, %v4325_v19 }
 0x282   : > { %v1482_v42 = vpop.xlane.xlu0 %1481 }
 0x283   : > { %v4336_v21 = vmul.f32 0.088388346, %v1482_v42 }
 0x284   : > { %v1498_v35 = vpop.xlane.xlu2 %1497  ;;  %v1486_v36 = vpop.xlane.xlu1 %1485 }
 0x285   : > { %v4327_v55 = vmul.f32 0.088388346, %v1486_v36  ;;  %v1635_v31 = vperm.slane %v4336_v21, %v4330_v8  ;;  %v4362_v52 = vmul.f32 0.088388346, %v1498_v35 }
 0x287   : > { %v1639_v26 = vperm.slane %v4327_v55, %v4330_v8  ;;  %v1637_v42 = vsel %vm1636_vm8, %v1635_v31, %v1633_v40 }
 0x289   : > { %v1640_v50 = vsel %vm1636_vm8, %v1639_v26, %v1638_v10 }
 0x28a   : > { %v1490_v16 = vpop.xlane.xlu0 %1489 }
 0x28b   : > { %v4332_v30 = vmul.f32 0.088388346, %v1490_v16  ;;  %v1648_v16 = vperm.slane %v4362_v52, %v4330_v8 }
 0x28c   : > { %v1500_v2 = vpop.xlane.xlu2 %1499  ;;  %v1494_v34 = vpop.xlane.xlu1 %1493 }
 0x28d   : > { %v4346_v25 = vmul.f32 0.088388346, %v1494_v34  ;;  %v1642_v4 = vperm.slane %v4332_v30, %v4330_v8  ;;  %v4367_v61 = vmul.f32 0.088388346, %v1500_v2  ;;  %v1659_v2 = vsel %vm1340_vm1, %v1640_v50, %v1637_v42 }
 0x28f   : > { %v1645_v5 = vperm.slane %v4346_v25, %v4330_v8  ;;  %v1643_v54 = vsel %vm1636_vm8, %v1642_v4, %v1641_v17 }
 0x290   : > { %v1660_v14 = vsel %vm1342_vm2, %v1643_v54, %v1659_v2 }
 0x292   : > { %v1492_v58 = vpop.xlane.xlu0 %1491 }
 0x293   : > { %v4338_v22 = vmul.f32 0.088388346, %v1492_v58  ;;  %v1650_v58 = vperm.slane %v4367_v61, %v4325_v19 }
 0x294   : > { %v1510_v39 = vpop.xlane.xlu2 %1509  ;;  %v1496_v47 = vpop.xlane.xlu1 %1495 }
 0x295   : > { %v4350_v44 = vmul.f32 0.088388346, %v1496_v47  ;;  %v1644_v9 = vperm.slane %v4338_v22, %v4325_v19 }
 0x297   : > { %v1647_v27 = vperm.slane %v4350_v44, %v4325_v19  ;;  %v1646_v35 = vsel %vm1636_vm8, %v1645_v5, %v1644_v9 }
 0x298   : > { %v1661_v26 = vsel %vm1344_vm3, %v1646_v35, %v1660_v14 }
 0x299   : > { %v1649_v4 = vsel %vm1636_vm8, %v1648_v16, %v1647_v27 }
 0x29a   : > { %v1502_v11 = vpop.xlane.xlu0 %1501  ;;  %v1662_v5 = vsel %vm1346_vm4, %v1649_v4, %v1661_v26 }
 0x29b   : > { %v4358_v6 = vmul.f32 0.088388346, %v1502_v11  ;;  %v4387_v11 = vmul.f32 0.088388346, %v1510_v39 }
 0x29c   : > { %v1568_v7 = vpop.xlane.xlu2 %1567  ;;  %v1506_v33 = vpop.xlane.xlu1 %1505 }
 0x29d   : > { %v1651_v36 = vperm.slane %v4358_v6, %v4330_v8  ;;  %v4381_v34 = vmul.f32 0.088388346, %v1506_v33  ;;  %v1657_v39 = vperm.slane %v4387_v11, %v4330_v8 }
 0x29f   : > { %v1652_v31 = vsel %vm1636_vm8, %v1651_v36, %v1650_v58  ;;  %v1654_v33 = vperm.slane %v4381_v34, %v4330_v8 }
 0x2a0   : > { %v1663_v42 = vsel %vm1348_vm5, %v1652_v31, %v1662_v5 }
 0x2a2   : > { %v1504_v47 = vpop.xlane.xlu0 %1503 }
 0x2a3   : > { %v4390_v10 = vmul.f32 0.088388346, %v1504_v47 }
 0x2a4   : > { %v1570_v9 = vpop.xlane.xlu2 %1569  ;;  %v1508_v17 = vpop.xlane.xlu1 %1507 }
 0x2a5   : > { %v1653_v40 = vperm.slane %v4390_v10, %v4325_v19  ;;  %v4397_v50 = vmul.f32 0.088388346, %v1508_v17 }
 0x2a7   : > { %v1656_v54 = vperm.slane %v4397_v50, %v4325_v19  ;;  %v1655_v27 = vsel %vm1636_vm8, %v1654_v33, %v1653_v40 }
 0x2a8   : > { %v1664_v35 = vsel %vm1350_vm6, %v1655_v27, %v1663_v42  ;;  %v4414_v27 = vmul.f32 0.088388346, %v1570_v9 }
 0x2a9   : > { %v1658_v36 = vsel %vm1636_vm8, %v1657_v39, %v1656_v54  ;;  %v4418_v54 = vmul.f32 0.088388346, %v1568_v7 }
 0x2aa   : > { %v1572_v16 = vpop.xlane.xlu0 %1571  ;;  %v1665_v2 = vsel %vm1352_vm7, %v1658_v36, %v1664_v35  ;;  %v1900_v9 = vperm.slane %v4414_v27, %v4330_v8 }
 0x2ab   : > { %v1668_v14 = vsel %vm1667_vm9, %v1665_v2, -inf  ;;  %v4416_v39 = vmul.f32 0.088388346, %v1572_v16 }
 0x2ac   : > { %v1578_v58 = vpop.xlane.xlu2 %1577  ;;  %1669 = vmax.xlane.f32.xlu2 %v1668_v14  ;;  %v1574_v47 = vpop.xlane.xlu1 %1573 }
 0x2ad   : > { %v4410_v31 = vmul.f32 0.088388346, %v1574_v47  ;;  %v4420_v42 = vmul.f32 0.088388346, %v1578_v58  ;;  %v1902_v7 = vperm.slane %v4416_v39, %v4325_v19  ;;  %v1899_v58 = vperm.slane %v4418_v54, %v4325_v19 }
 0x2af   : > { %v1903_v35 = vperm.slane %v4410_v31, %v4330_v8 }
 0x2b1   : > { %v1904_v18 = vsel %vm1636_vm8, %v1903_v35, %v1902_v7 }
 0x2b2   : > { %v1582_v26 = vpop.xlane.xlu0 %1581 }
 0x2b3   : > { %v4434_v16 = vmul.f32 0.088388346, %v1582_v26 }
 0x2b4   : > { %v1580_v4 = vpop.xlane.xlu2 %1579  ;;  %v1576_v17 = vpop.xlane.xlu1 %1575 }
 0x2b5   : > { %v4412_v5 = vmul.f32 0.088388346, %v1576_v17  ;;  %v4424_v36 = vmul.f32 0.088388346, %v1580_v4  ;;  %v1906_v4 = vperm.slane %v4420_v42, %v4330_v8  ;;  %v1909_v56 = vperm.slane %v4434_v16, %v4330_v8 }
 0x2b7   : > { %v1905_v2 = vperm.slane %v4412_v5, %v4325_v19  ;;  %v1908_v63 = vperm.slane %v4424_v36, %v4325_v19 }
 0x2b9   : > { %v1907_v26 = vsel %vm1636_vm8, %v1906_v4, %v1905_v2  ;;  %v1910_v2 = vsel %vm1636_vm8, %v1909_v56, %v1908_v63 }
 0x2ba   : > { %v1584_v32 = vpop.xlane.xlu0 %1583 }
 0x2bb   : > { %v4440_v17 = vmul.f32 0.088388346, %v1584_v32  ;;  %v1901_v32 = vsel %vm1636_vm8, %v1900_v9, %v1899_v58 }
 0x2bc   : > { %v1590_v33 = vpop.xlane.xlu2 %1589  ;;  %v1586_v40 = vpop.xlane.xlu1 %1585 }
 0x2bd   : > { %v4428_v14 = vmul.f32 0.088388346, %v1586_v40  ;;  %v4445_v12 = vmul.f32 0.088388346, %v1590_v33  ;;  %v1923_v33 = vsel %vm1340_vm1, %v1904_v18, %v1901_v32  ;;  %v1911_v7 = vperm.slane %v4440_v17, %v4325_v19 }
 0x2bf   : > { %v1912_v45 = vperm.slane %v4428_v14, %v4330_v8  ;;  %v1915_v9 = vperm.slane %v4445_v12, %v4330_v8 }
 0x2c1   : > { %v1913_v58 = vsel %vm1636_vm8, %v1912_v45, %v1911_v7 }
 0x2c2   : > { %v1594_v47 = vpop.xlane.xlu0 %1593 }
 0x2c4   : > { %v1592_v38 = vpop.xlane.xlu2 %1591  ;;  %v1588_v40 = vpop.xlane.xlu1 %1587 }
 0x2c5   : > { %v4447_v15 = vmul.f32 0.088388346, %v1588_v40  ;;  %v4452_v13 = vmul.f32 0.088388346, %v1592_v38  ;;  %v4462_v40 = vmul.f32 0.088388346, %v1594_v47  ;;  %v1924_v38 = vsel %vm1342_vm2, %v1907_v26, %v1923_v33 }
 0x2c6   : > { %v1925_v63 = vsel %vm1344_vm3, %v1910_v2, %v1924_v38  ;;  %v3524_v38 = vmov 0  }
 0x2c7   : > { %v1914_v35 = vperm.slane %v4447_v15, %v4325_v19  ;;  %v1917_v4 = vperm.slane %v4452_v13, %v4325_v19  ;;  %v1918_v47 = vperm.slane %v4462_v40, %v4330_v8  ;;  %v1926_v26 = vsel %vm1346_vm4, %v1913_v58, %v1925_v63  ;;  %3143 = vset.pattern.permute.xlu0 %v3524_v38 }
 0x2c8   : > { %3142 = vset.pattern.permute.xlu2 %v3524_v38  ;;  %3141 = vset.pattern.permute.xlu1 %v3524_v38 }
 0x2c9   : > { %v1916_v18 = vsel %vm1636_vm8, %v1915_v9, %v1914_v35  ;;  %v1919_v45 = vsel %vm1636_vm8, %v1918_v47, %v1917_v4 }
 0x2ca   : > { %v1596_v53 = vpop.xlane.xlu0 %1595  ;;  %v1927_v33 = vsel %vm1348_vm5, %v1916_v18, %v1926_v26 }
 0x2cb   : > { %v4472_v32 = vmul.f32 0.088388346, %v1596_v53  ;;  %v1928_v9 = vsel %vm1350_vm6, %v1919_v45, %v1927_v33 }
 0x2cc   : > { %v1598_v49 = vpop.xlane.xlu1 %1597 }
 0x2cd   : > { %v4477_v56 = vmul.f32 0.088388346, %v1598_v49  ;;  %v1920_v7 = vperm.slane %v4472_v32, %v4325_v19 }
 0x2cf   : > { %v1921_v53 = vperm.slane %v4477_v56, %v4330_v8 }
 0x2d1   : > { %v1922_v35 = vsel %vm1636_vm8, %v1921_v53, %v1920_v7 }
 0x2d2   : > { %v1929_v2 = vsel %vm1352_vm7, %v1922_v35, %v1928_v9 }
 0x2d3   : > { %v1931_v49 = vsel %vm1667_vm9, %v1929_v2, -inf }
 0x2d4   : > { %1932 = vmax.xlane.f32.xlu0 %v1931_v49 }
 0x31f   : > { %v4490_v58 = vpop.xlane.xlu2 %1669 }
 0x320   : > { %v1672_v4 = vperm.slane %v4490_v58, 0  ;;  %v1673_v18 = vperm.slane %v4490_v58, 1  ;;  %v1674_v45 = vperm.slane %v4490_v58, 2 }
 0x322   : > { %v1689_v47 = vsub.f32 %v4336_v21, %v1672_v4  ;;  %v1688_v63 = vsub.f32 %v4342_v48, %v1672_v4  ;;  %v1690_v26 = vsub.f32 %v4334_v59, %v1673_v18  ;;  %v1691_v35 = vsub.f32 %v4327_v55, %v1673_v18 }
 0x323   : > { %v1692_v9 = vsub.f32 %v4340_v51, %v1674_v45  ;;  %v1693_v2 = vsub.f32 %v4332_v30, %v1674_v45  ;;  %v1675_v21 = vperm.slane %v4490_v58, 3  ;;  %v1676_v59 = vperm.slane %v4490_v58, 4 }
 0x324   : > { %v1706_v33 = vmul.f32 1.442695, %v1689_v47  ;;  %v1704_v7 = vmul.f32 1.442695, %v1688_v63  ;;  %v1708_v53 = vmul.f32 1.442695, %v1690_v26 }
 0x325   : > { %v1710_v49 = vmul.f32 1.442695, %v1691_v35  ;;  %v1712_v48 = vmul.f32 1.442695, %v1692_v9  ;;  %v1714_v4 = vmul.f32 1.442695, %v1693_v2  ;;  %v1695_v30 = vsub.f32 %v4346_v25, %v1675_v21 }
 0x326   : > { %3146 = vpow2.f32 %v1706_v33  ;;  %v1697_v51 = vsub.f32 %v4362_v52, %v1676_v59  ;;  %v1694_v18 = vsub.f32 %v4338_v22, %v1675_v21  ;;  %v1677_v45 = vperm.slane %v4490_v58, 5 }
 0x327   : > { %3148 = vpow2.f32 %v1704_v7  ;;  %v1718_v63 = vmul.f32 1.442695, %v1695_v30  ;;  %v1696_v52 = vsub.f32 %v4350_v44, %v1676_v59  ;;  %v1678_v2 = vperm.slane %v4490_v58, 6 }
 0x328   : > { %3150 = vpow2.f32 %v1708_v53  ;;  %v1722_v26 = vmul.f32 1.442695, %v1697_v51  ;;  %v1716_v7 = vmul.f32 1.442695, %v1694_v18  ;;  %v1698_v22 = vsub.f32 %v4367_v61, %v1677_v45 }
 0x329   : > { %3152 = vpow2.f32 %v1710_v49  ;;  %v1699_v35 = vsub.f32 %v4358_v6, %v1677_v45  ;;  %v1720_v9 = vmul.f32 1.442695, %v1696_v52  ;;  %v1679_v21 = vperm.slane %v4490_v58, 7 }
 0x32a   : > { %3154 = vpow2.f32 %v1712_v48  ;;  %v1724_v49 = vmul.f32 1.442695, %v1698_v22  ;;  %v1701_v6 = vsub.f32 %v4381_v34, %v1678_v2  ;;  %v1700_v58 = vsub.f32 %v4390_v10, %v1678_v2 }
 0x32b   : > { %3156 = vpow2.f32 %v1714_v4  ;;  %v1726_v4 = vmul.f32 1.442695, %v1699_v35  ;;  %v1703_v61 = vsub.f32 %v4387_v11, %v1679_v21  ;;  %v1702_v45 = vsub.f32 %v4397_v50, %v1679_v21 }
 0x32c   : > { %v4503_v38 = vpop.eup %3146  ;;  %3158 = vpow2.f32 %v1718_v63  ;;  %v1730_v59 = vmul.f32 1.442695, %v1701_v6  ;;  %v1728_v63 = vmul.f32 1.442695, %v1700_v58 }
 0x32d   : > { %v4505_v47 = vpop.eup %3148  ;;  %1756 = vperm.xlu2 %3142, %v4503_v38   ;;  %3160 = vpow2.f32 %v1722_v26  ;;  %v1734_v51 = vmul.f32 1.442695, %v1703_v61  ;;  %v1732_v52 = vmul.f32 1.442695, %v1702_v45 }
 0x32e   : > { %v4508_v55 = vpop.eup %3150  ;;  %1753 = vperm.xlu1 %3141, %v4505_v47   ;;  %3162 = vpow2.f32 %v1716_v7 }
 0x32f   : > { %1759 = vperm.xlu0 %3143, %v4508_v55   ;;  %v4516_v33 = vpop.eup %3152  ;;  %3164 = vpow2.f32 %v1720_v9 }
 0x330   : > { %v4518_v53 = vpop.eup %3154  ;;  %3166 = vpow2.f32 %v1724_v49 }
 0x331   : > { %v4521_v25 = vpop.eup %3156  ;;  %3168 = vpow2.f32 %v1726_v4 }
 0x332   : > { %v4530_v48 = vpop.eup %3158  ;;  %3170 = vpow2.f32 %v1730_v59 }
 0x333   : > { %v4532_v30 = vpop.eup %3160  ;;  %3172 = vpow2.f32 %v1734_v51 }
 0x334   : > { %v4535_v44 = vpop.eup %3162  ;;  %3174 = vpow2.f32 %v1728_v63 }
 0x335   : > { %1762 = vperm.xlu2 %3142, %v4516_v33   ;;  %v4542_v18 = vpop.eup %3164  ;;  %3176 = vpow2.f32 %v1732_v52 }
 0x336   : > { %1765 = vperm.xlu1 %3141, %v4518_v53   ;;  %v4544_v26 = vpop.eup %3166 }
 0x337   : > { %1768 = vperm.xlu0 %3143, %v4521_v25   ;;  %v4548_v34 = vpop.eup %3168 }
 0x338   : > { %v4559_v9 = vpop.eup %3170 }
 0x339   : > { %v4562_v4 = vpop.eup %3172 }
 0x33a   : > { %v4565_v6 = vpop.eup %3174 }
 0x33b   : > { %v4572_v59 = vpop.eup %3176 }
 0x33d   : > { %1774 = vperm.xlu2 %3142, %v4530_v48  }
 0x33e   : > { %1780 = vperm.xlu1 %3141, %v4532_v30  }
 0x33f   : > { %1771 = vperm.xlu0 %3143, %v4535_v44  }
 0x345   : > { %1777 = vperm.xlu2 %3142, %v4542_v18  }
 0x346   : > { %1783 = vperm.xlu1 %3141, %v4544_v26  }
 0x347   : > { %1786 = vperm.xlu0 %3143, %v4548_v34   ;;  %v4552_v11 = vpop.xlane.xlu0 %1932 }
 0x348   : > { %v1938_v10 = vperm.slane %v4552_v11, 3  ;;  %v1935_v7 = vperm.slane %v4552_v11, 0  ;;  %v1936_v35 = vperm.slane %v4552_v11, 1  ;;  %v1939_v21 = vperm.slane %v4552_v11, 4 }
 0x349   : > { %v1937_v63 = vperm.slane %v4552_v11, 2 }
 0x34a   : > { %v1958_v22 = vsub.f32 %v4434_v16, %v1938_v10  ;;  %v1951_v50 = vsub.f32 %v4418_v54, %v1935_v7  ;;  %v1952_v54 = vsub.f32 %v4414_v27, %v1935_v7  ;;  %v1953_v16 = vsub.f32 %v4416_v39, %v1936_v35 }
 0x34b   : > { %v1959_v61 = vsub.f32 %v4440_v17, %v1939_v21  ;;  %v1954_v27 = vsub.f32 %v4410_v31, %v1936_v35  ;;  %v1956_v39 = vsub.f32 %v4420_v42, %v1937_v63  ;;  %v1955_v42 = vsub.f32 %v4412_v5, %v1937_v63 }
 0x34c   : > { %v1981_v2 = vmul.f32 1.442695, %v1958_v22  ;;  %v1967_v49 = vmul.f32 1.442695, %v1951_v50  ;;  %v1969_v58 = vmul.f32 1.442695, %v1952_v54 }
 0x34d   : > { %1792 = vperm.xlu2 %3142, %v4559_v9   ;;  %v1971_v51 = vmul.f32 1.442695, %v1953_v16  ;;  %v1983_v52 = vmul.f32 1.442695, %v1959_v61  ;;  %v1941_v22 = vperm.slane %v4552_v11, 6  ;;  %v1942_v16 = vperm.slane %v4552_v11, 7 }
 0x34e   : > { %1798 = vperm.xlu1 %3141, %v4562_v4   ;;  %3178 = vpow2.f32 %v1981_v2  ;;  %v1973_v7 = vmul.f32 1.442695, %v1954_v27  ;;  %v1977_v2 = vmul.f32 1.442695, %v1956_v39 }
 0x34f   : > { %1789 = vperm.xlu0 %3143, %v4565_v6   ;;  %3180 = vpow2.f32 %v1967_v49  ;;  %v1964_v17 = vsub.f32 %v4462_v40, %v1941_v22  ;;  %v1957_v40 = vsub.f32 %v4424_v36, %v1938_v10  ;;  %v1965_v35 = vsub.f32 %v4472_v32, %v1942_v16 }
 0x350   : > { %3182 = vpow2.f32 %v1969_v58  ;;  %v1975_v58 = vmul.f32 1.442695, %v1955_v42  ;;  %v1960_v36 = vsub.f32 %v4428_v14, %v1939_v21 }
 0x351   : > { %3184 = vpow2.f32 %v1971_v51  ;;  %v1993_v54 = vmul.f32 1.442695, %v1964_v17  ;;  %v1979_v51 = vmul.f32 1.442695, %v1957_v40  ;;  %v1995_v39 = vmul.f32 1.442695, %v1965_v35 }
 0x352   : > { %3186 = vpow2.f32 %v1983_v52  ;;  %v1940_v52 = vperm.slane %v4552_v11, 5  ;;  %v1985_v11 = vmul.f32 1.442695, %v1960_v36  ;;  %v1966_v35 = vsub.f32 %v4477_v56, %v1942_v16 }
 0x353   : > { %3188 = vpow2.f32 %v1973_v7 }
 0x354   : > { %v4575_v45 = vpop.eup %3178  ;;  %3190 = vpow2.f32 %v1977_v2  ;;  %v1962_v32 = vsub.f32 %v4445_v12, %v1940_v52  ;;  %v1961_v14 = vsub.f32 %v4447_v15, %v1940_v52  ;;  %v1963_v12 = vsub.f32 %v4452_v13, %v1941_v22 }
 0x355   : > { %v4578_v50 = vpop.eup %3180  ;;  %1795 = vperm.xlu2 %3142, %v4572_v59   ;;  %3192 = vpow2.f32 %v1993_v54  ;;  %v1997_v15 = vmul.f32 1.442695, %v1966_v35 }
 0x356   : > { %2016 = vperm.xlu1 %3141, %v4578_v50   ;;  %v4586_v49 = vpop.eup %3182  ;;  %3194 = vpow2.f32 %v1975_v58  ;;  %v1989_v10 = vmul.f32 1.442695, %v1962_v32  ;;  %v1987_v21 = vmul.f32 1.442695, %v1961_v14  ;;  %v1991_v54 = vmul.f32 1.442695, %v1963_v12 }
 0x357   : > { %2037 = vperm.xlu0 %3143, %v4575_v45   ;;  %v4589_v61 = vpop.eup %3184  ;;  %3196 = vpow2.f32 %v1979_v51 }
 0x358   : > { %v4592_v31 = vpop.eup %3186  ;;  %3198 = vpow2.f32 %v1995_v39 }
 0x359   : > { %v4600_v27 = vpop.eup %3188  ;;  %3200 = vpow2.f32 %v1985_v11 }
 0x35a   : > { %v4602_v17 = vpop.eup %3190  ;;  %3202 = vpow2.f32 %v1989_v10 }
 0x35b   : > { %v4605_v5 = vpop.eup %3192  ;;  %3204 = vpow2.f32 %v1987_v21 }
 0x35c   : > { %v4611_v63 = vpop.eup %3194  ;;  %3206 = vpow2.f32 %v1991_v54 }
 0x35d   : > { %2019 = vperm.xlu2 %3142, %v4586_v49   ;;  %v4613_v7 = vpop.eup %3196  ;;  %3208 = vpow2.f32 %v1997_v15 }
 0x35e   : > { %2022 = vperm.xlu1 %3141, %v4589_v61   ;;  %v4616_v2 = vpop.eup %3198 }
 0x35f   : > { %2040 = vperm.xlu0 %3143, %v4592_v31   ;;  %v4622_v42 = vpop.eup %3200 }
 0x360   : > { %v4624_v40 = vpop.eup %3202 }
 0x361   : > { %v4629_v58 = vpop.eup %3204 }
 0x362   : > { %v4631_v51 = vpop.eup %3206 }
 0x363   : > { %v4635_v13 = vpop.eup %3208 }
 0x365   : > { %2025 = vperm.xlu2 %3142, %v4600_v27  }
 0x366   : > { %2031 = vperm.xlu1 %3141, %v4602_v17  }
 0x367   : > { %2055 = vperm.xlu0 %3143, %v4605_v5  }
 0x36d   : > { %2028 = vperm.xlu2 %3142, %v4611_v63  }
 0x36e   : > { %2034 = vperm.xlu1 %3141, %v4613_v7  }
 0x36f   : > { %2058 = vperm.xlu0 %3143, %v4616_v2  }
 0x375   : > { %2043 = vperm.xlu2 %3142, %v4622_v42  }
 0x376   : > { %2049 = vperm.xlu1 %3141, %v4624_v40  }
 0x37d   : > { %2046 = vperm.xlu2 %3142, %v4629_v58  }
 0x37e   : > { %2052 = vperm.xlu1 %3141, %v4631_v51  }
 0x385   : > { %2061 = vperm.xlu2 %3142, %v4635_v13  }
 0x387   : > { %v1757_v22 = vpop.permute.xlu2 %1756 }
 0x388   : > { %v1801_v62 = vperm.slane %v1757_v22, %v4330_v8 }
 0x38f   : > { %v1763_v52 = vpop.permute.xlu2 %1762 }
 0x390   : > { %v1804_v57 = vperm.slane %v1763_v52, %v4330_v8 }
 0x397   : > { %v1775_v39 = vpop.permute.xlu2 %1774 }
 0x398   : > { %v1810_v46 = vperm.slane %v1775_v39, %v4330_v8 }
 0x39f   : > { %v1778_v36 = vpop.permute.xlu2 %1777 }
 0x3a0   : > { %v1754_v56 = vpop.permute.xlu1 %1753 }
 0x3a1   : > { %v1760_v16 = vpop.permute.xlu0 %1759  ;;  %v1800_v35 = vperm.slane %v1754_v56, %v4325_v19 }
 0x3a2   : > { %v1803_v54 = vperm.slane %v1760_v16, %v4325_v19 }
 0x3a3   : > { %v1802_v16 = vsel %vm1636_vm8, %v1801_v62, %v1800_v35 }
 0x3a4   : > { %v1805_v43 = vsel %vm1636_vm8, %v1804_v57, %v1803_v54 }
 0x3a5   : > { %v1824_v37 = vsel %vm1340_vm1, %v1805_v43, %v1802_v16 }
 0x3a7   : > { %v1793_v32 = vpop.permute.xlu2 %1792 }
 0x3a8   : > { %v1766_v11 = vpop.permute.xlu1 %1765 }
 0x3a9   : > { %v1769_v10 = vpop.permute.xlu0 %1768  ;;  %v1806_v60 = vperm.slane %v1766_v11, %v4325_v19 }
 0x3aa   : > { %v1807_v15 = vperm.slane %v1769_v10, %v4330_v8 }
 0x3ac   : > { %v1808_v56 = vsel %vm1636_vm8, %v1807_v15, %v1806_v60 }
 0x3ad   : > { %v1825_v39 = vsel %vm1342_vm2, %v1808_v56, %v1824_v37 }
 0x3af   : > { %v1796_v12 = vpop.permute.xlu2 %1795 }
 0x3b0   : > { %v1781_v14 = vpop.permute.xlu1 %1780  ;;  %v1821_v60 = vperm.slane %v1796_v12, %v4325_v19 }
 0x3b1   : > { %v1772_v21 = vpop.permute.xlu0 %1771  ;;  %v1813_v10 = vperm.slane %v1781_v14, %v4330_v8 }
 0x3b2   : > { %v1809_v20 = vperm.slane %v1772_v21, %v4325_v19  ;;  %v1812_v21 = vperm.slane %v1778_v36, %v4325_v19 }
 0x3b4   : > { %v1811_v11 = vsel %vm1636_vm8, %v1810_v46, %v1809_v20  ;;  %v1814_v62 = vsel %vm1636_vm8, %v1813_v10, %v1812_v21 }
 0x3b5   : > { %v1826_v57 = vsel %vm1344_vm3, %v1811_v11, %v1825_v39 }
 0x3b6   : > { %v1827_v43 = vsel %vm1346_vm4, %v1814_v62, %v1826_v57 }
 0x3b7   : > { %v2020_v28 = vpop.permute.xlu2 %2019 }
 0x3b8   : > { %v1784_v29 = vpop.permute.xlu1 %1783 }
 0x3b9   : > { %v1787_v1 = vpop.permute.xlu0 %1786  ;;  %v1815_v52 = vperm.slane %v1784_v29, %v4325_v19  ;;  %v1819_v29 = vperm.slane %v1793_v32, %v4330_v8 }
 0x3ba   : > { %v1816_v22 = vperm.slane %v1787_v1, %v4330_v8 }
 0x3bc   : > { %v1817_v14 = vsel %vm1636_vm8, %v1816_v22, %v1815_v52 }
 0x3bd   : > { %v1828_v35 = vsel %vm1348_vm5, %v1817_v14, %v1827_v43 }
 0x3bf   : > { %v2026_v15 = vpop.permute.xlu2 %2025 }
 0x3c0   : > { %v1799_v54 = vpop.permute.xlu1 %1798 }
 0x3c1   : > { %v1790_v46 = vpop.permute.xlu0 %1789  ;;  %v1822_v1 = vperm.slane %v1799_v54, %v4330_v8 }
 0x3c2   : > { %v1818_v20 = vperm.slane %v1790_v46, %v4325_v19  ;;  %v2067_v46 = vperm.slane %v2026_v15, %v4330_v8 }
 0x3c3   : > { %v1823_v37 = vsel %vm1636_vm8, %v1822_v1, %v1821_v60 }
 0x3c4   : > { %v1820_v36 = vsel %vm1636_vm8, %v1819_v29, %v1818_v20 }
 0x3c5   : > { %v1829_v12 = vsel %vm1350_vm6, %v1820_v36, %v1828_v35 }
 0x3c6   : > { %v1830_v16 = vsel %vm1352_vm7, %v1823_v37, %v1829_v12  ;;  %v2064_v37 = vperm.slane %v2020_v28, %v4330_v8 }
 0x3c7   : > { %v1832_v56 = vsel %vm1667_vm9, %v1830_v16, 0.0  ;;  %v2029_v32 = vpop.permute.xlu2 %2028 }
 0x3c8   : > { %1833 = vadd.xlane.f32.xlu1 %v1832_v56  ;;  %v2017_v10 = vpop.permute.xlu1 %2016  ;;  %v2069_v43 = vperm.slane %v2029_v32, %v4325_v19 }
 0x3c9   : > { %v2038_v11 = vpop.permute.xlu0 %2037  ;;  %v2063_v1 = vperm.slane %v2017_v10, %v4325_v19 }
 0x3ca   : > { %v2073_v36 = vperm.slane %v2038_v11, %v4330_v8 }
 0x3cb   : > { %v2065_v16 = vsel %vm1636_vm8, %v2064_v37, %v2063_v1 }
 0x3cf   : > { %v2044_v21 = vpop.permute.xlu2 %2043 }
 0x3d0   : > { %v2023_v22 = vpop.permute.xlu1 %2022  ;;  %v2076_v10 = vperm.slane %v2044_v21, %v4330_v8 }
 0x3d1   : > { %v2041_v39 = vpop.permute.xlu0 %2040  ;;  %v2066_v60 = vperm.slane %v2023_v22, %v4325_v19 }
 0x3d2   : > { %v2075_v22 = vperm.slane %v2041_v39, %v4325_v19 }
 0x3d3   : > { %v2068_v35 = vsel %vm1636_vm8, %v2067_v46, %v2066_v60 }
 0x3d4   : > { %v2087_v32 = vsel %vm1340_vm1, %v2068_v35, %v2065_v16  ;;  %v2077_v21 = vsel %vm1636_vm8, %v2076_v10, %v2075_v22 }
 0x3d7   : > { %v2047_v62 = vpop.permute.xlu2 %2046 }
 0x3d8   : > { %v2032_v52 = vpop.permute.xlu1 %2031  ;;  %v2078_v11 = vperm.slane %v2047_v62, %v4325_v19 }
 0x3d9   : > { %v2056_v54 = vpop.permute.xlu0 %2055  ;;  %v2070_v14 = vperm.slane %v2032_v52, %v4330_v8 }
 0x3da   : > { %v2082_v39 = vperm.slane %v2056_v54, %v4330_v8 }
 0x3db   : > { %v2071_v12 = vsel %vm1636_vm8, %v2070_v14, %v2069_v43 }
 0x3df   : > { %v2062_v52 = vpop.permute.xlu2 %2061 }
 0x3e0   : > { %v2035_v57 = vpop.permute.xlu1 %2034  ;;  %v2085_v14 = vperm.slane %v2062_v52, %v4330_v8 }
 0x3e1   : > { %v2072_v29 = vperm.slane %v2035_v57, %v4325_v19  ;;  %v2059_v28 = vpop.permute.xlu0 %2058  ;;  %v2088_v57 = vsel %vm1342_vm2, %v2071_v12, %v2087_v32 }
 0x3e2   : > { %v2084_v46 = vperm.slane %v2059_v28, %v4325_v19 }
 0x3e3   : > { %v2074_v56 = vsel %vm1636_vm8, %v2073_v36, %v2072_v29 }
 0x3e4   : > { %v2089_v60 = vsel %vm1344_vm3, %v2074_v56, %v2088_v57  ;;  %v2086_v36 = vsel %vm1636_vm8, %v2085_v14, %v2084_v46 }
 0x3e5   : > { %v2090_v43 = vsel %vm1346_vm4, %v2077_v21, %v2089_v60 }
 0x3e8   : > { %v2050_v20 = vpop.permute.xlu1 %2049 }
 0x3e9   : > { %v2079_v15 = vperm.slane %v2050_v20, %v4330_v8 }
 0x3eb   : > { %v2080_v1 = vsel %vm1636_vm8, %v2079_v15, %v2078_v11 }
 0x3ec   : > { %v2091_v37 = vsel %vm1348_vm5, %v2080_v1, %v2090_v43 }
 0x3f0   : > { %v2053_v29 = vpop.permute.xlu1 %2052 }
 0x3f1   : > { %v2081_v20 = vperm.slane %v2053_v29, %v4325_v19 }
 0x3f3   : > { %v2083_v62 = vsel %vm1636_vm8, %v2082_v39, %v2081_v20 }
 0x3f4   : > { %v2092_v35 = vsel %vm1350_vm6, %v2083_v62, %v2091_v37 }
 0x3f5   : > { %v2093_v12 = vsel %vm1352_vm7, %v2086_v36, %v2092_v35 }
 0x3f6   : > { %v2095_v16 = vsel %vm1667_vm9, %v2093_v12, 0.0 }
 0x3f7   : > { %2096 = vadd.xlane.f32.xlu0 %v2095_v16 }
 0x43b   : > { %v1834_v56 = vpop.xlane.xlu1 %1833 }
 0x43c   : > { %3210 = vrcp.f32 %v1834_v56  ;;  %v1846_v15 = vand.u32 2147483648, %v1834_v56  ;;  %v1844_v22 = vand.u32 2147483647, %v1834_v56  ;;  %vm1840_vm11 = vweird.f32 %v1834_v56 }
 0x43e   : > { %v1847_v52 = vor.u32 1.1754944e-38, %v1846_v15  ;;  %vm1845_vm13 = vcmp.eq.f32.partialorder %v1844_v22, 8.507059e+37 }
 0x442   : > { %v3211_v8 = vpop.eup %3210 }
 0x443   : > { %v1836_v54 = vmul.f32 %v3211_v8, %v1834_v56  ;;  %vm1841_vm10 = vweird.f32 %v3211_v8 }
 0x444   : > { %vm1842_vm12 = vmor %vm1840_vm11, %vm1841_vm10 }
 0x445   : > { %v1837_v19 = vsub.f32 1.0, %v1836_v54 }
 0x447   : > { %v1838_v10 = vmul.f32 %v3211_v8, %v1837_v19 }
 0x449   : > { %v1839_v32 = vadd.f32 %v3211_v8, %v1838_v10 }
 0x44b   : > { %v1843_v28 = vsel %vm1842_vm12, %v3211_v8, %v1839_v32 }
 0x44c   : > { %v4702_v11 = vsel %vm1845_vm13, %v1847_v52, %v1843_v28 }
 0x44d   : > { %v1855_v57 = vperm.slane %v4702_v11, 4  ;;  %v1854_v60 = vperm.slane %v4702_v11, 3  ;;  %v1851_v14 = vperm.slane %v4702_v11, 0  ;;  %v1856_v21 = vperm.slane %v4702_v11, 5 }
 0x44e   : > { %v1858_v37 = vperm.slane %v4702_v11, 7  ;;  %v1853_v36 = vperm.slane %v4702_v11, 2 }
 0x44f   : > { %v1876_v46 = vmul.f32 %v4532_v30, %v1855_v57  ;;  %v1874_v1 = vmul.f32 %v4530_v48, %v1854_v60  ;;  %v1867_v29 = vmul.f32 %v4505_v47, %v1851_v14  ;;  %v1877_v39 = vmul.f32 %v4544_v26, %v1856_v21 }
 0x450   : > { %v1875_v20 = vmul.f32 %v4542_v18, %v1855_v57  ;;  %v1868_v43 = vmul.f32 %v4503_v38, %v1851_v14  ;;  %v1857_v30 = vperm.slane %v4702_v11, 6  ;;  %v1852_v48 = vperm.slane %v4702_v11, 1 }
 0x451   : > { %2193 = vperm.xlu0 %3143, %v1876_v46   ;;  %2183 = vperm.xlu1 %3141, %v1874_v1   ;;  %v1881_v18 = vmul.f32 %v4572_v59, %v1858_v37  ;;  %v1873_v52 = vmul.f32 %v4535_v44, %v1854_v60  ;;  %v1878_v14 = vmul.f32 %v4548_v34, %v1856_v21 }
 0x452   : > { %2148 = vperm.xlu2 %3142, %v1867_v29   ;;  %v1880_v47 = vmul.f32 %v4559_v9, %v1857_v30  ;;  %v1869_v62 = vmul.f32 %v4508_v55, %v1852_v48  ;;  %v1870_v38 = vmul.f32 %v4516_v33, %v1852_v48  ;;  %v1871_v9 = vmul.f32 %v4518_v53, %v1853_v36 }
 0x453   : > { %v1872_v33 = vmul.f32 %v4521_v25, %v1853_v36  ;;  %v1879_v44 = vmul.f32 %v4565_v6, %v1857_v30 }
 0x459   : > { %2198 = vperm.xlu0 %3143, %v1877_v39   ;;  %2188 = vperm.xlu1 %3141, %v1875_v20  }
 0x45a   : > { %2153 = vperm.xlu2 %3142, %v1868_v43  }
 0x461   : > { %2213 = vperm.xlu1 %3141, %v1880_v47  }
 0x462   : > { %2158 = vperm.xlu2 %3142, %v1869_v62  }
 0x469   : > { %2218 = vperm.xlu1 %3141, %v1881_v18  }
 0x46a   : > { %2163 = vperm.xlu2 %3142, %v1870_v38   ;;  %v2097_v26 = vpop.xlane.xlu0 %2096 }
 0x46b   : > { %3212 = vrcp.f32 %v2097_v26  ;;  %v2109_v16 = vand.u32 2147483648, %v2097_v26  ;;  %v2107_v8 = vand.u32 2147483647, %v2097_v26  ;;  %vm2103_vm15 = vweird.f32 %v2097_v26 }
 0x46d   : > { %v2110_v59 = vor.u32 1.1754944e-38, %v2109_v16  ;;  %vm2108_vm8 = vcmp.eq.f32.partialorder %v2107_v8, 8.507059e+37  ;;  %v5050_v16 = vld [vmem:[#allocation68_spill] sm:$0xff] }
 0x471   : > { %v3213_v35 = vpop.eup %3212 }
 0x472   : > { %v2099_v55 = vmul.f32 %v3213_v35, %v2097_v26  ;;  %2168 = vperm.xlu2 %3142, %v1871_v9   ;;  %vm2104_vm14 = vweird.f32 %v3213_v35 }
 0x473   : > { %vm2105_vm0 = vmor %vm2103_vm15, %vm2104_vm14 }
 0x474   : > { %v2100_v12 = vsub.f32 1.0, %v2099_v55 }
 0x476   : > { %v2101_v56 = vmul.f32 %v3213_v35, %v2100_v12 }
 0x478   : > { %v2102_v54 = vadd.f32 %v3213_v35, %v2101_v56 }
 0x47a   : > { %v2106_v19 = vsel %vm2105_vm0, %v3213_v35, %v2102_v54  ;;  %2173 = vperm.xlu2 %3142, %v1872_v33  }
 0x47b   : > { %v2111_v15 = vsel %vm2108_vm8, %v2110_v59, %v2106_v19 }
 0x47c   : > { %v2115_v10 = vperm.slane %v2111_v15, 1  ;;  %v2114_v53 = vperm.slane %v2111_v15, 0  ;;  %v2116_v28 = vperm.slane %v2111_v15, 2  ;;  %v2117_v46 = vperm.slane %v2111_v15, 3 }
 0x47d   : > { %v2118_v1 = vperm.slane %v2111_v15, 4  ;;  %v2119_v60 = vperm.slane %v2111_v15, 5  ;;  %v2120_v29 = vperm.slane %v2111_v15, 6  ;;  %v2121_v21 = vperm.slane %v2111_v15, 7 }
 0x47e   : > { %v2133_v22 = vmul.f32 %v4600_v27, %v2115_v10  ;;  %v2131_v32 = vmul.f32 %v4586_v49, %v2114_v53  ;;  %v2135_v25 = vmul.f32 %v4602_v17, %v2116_v28  ;;  %v2134_v57 = vmul.f32 %v4611_v63, %v2116_v28 }
 0x47f   : > { %v2136_v27 = vmul.f32 %v4613_v7, %v2117_v46  ;;  %v2139_v49 = vmul.f32 %v4622_v42, %v2118_v1  ;;  %v2141_v17 = vmul.f32 %v4624_v40, %v2119_v60  ;;  %v2140_v63 = vmul.f32 %v4629_v58, %v2119_v60 }
 0x480   : > { %2315 = vperm.xlu0 %3143, %v2133_v22   ;;  %2305 = vperm.xlu1 %3141, %v2131_v32   ;;  %v2130_v34 = vmul.f32 %v4578_v50, %v2114_v53  ;;  %v2142_v7 = vmul.f32 %v4631_v51, %v2120_v29  ;;  %v2145_v42 = vmul.f32 %v4635_v13, %v2121_v21  ;;  %v5052_v22 = vld [vmem:[#allocation53_spill] sm:$0xff] }
 0x481   : > { %v2132_v6 = vmul.f32 %v4589_v61, %v2115_v10  ;;  %v1882_v40 = vmul.f32 %v4562_v4, %v1858_v37  ;;  %v2137_v58 = vmul.f32 %v4575_v45, %v2117_v46  ;;  %v2138_v51 = vmul.f32 %v4592_v31, %v2118_v1  ;;  %v4752_v37 = vpop.f32.mrf.mxu3  ;;  %v5051_v10 = vld [vmem:[#allocation51_spill] sm:$0xff] }
 0x482   : > { %2178 = vperm.xlu2 %3142, %v1873_v52   ;;  %v2143_v61 = vmul.f32 %v4605_v5, %v2120_v29  ;;  %v2144_v45 = vmul.f32 %v4616_v2, %v2121_v21 }
 0x488   : > { %2325 = vperm.xlu0 %3143, %v2135_v25   ;;  %2320 = vperm.xlu1 %3141, %v2134_v57  }
 0x48a   : > { %2203 = vperm.xlu2 %3142, %v1878_v14  }
 0x490   : > { %2330 = vperm.xlu0 %3143, %v2136_v27   ;;  %2345 = vperm.xlu1 %3141, %v2139_v49  }
 0x492   : > { %2208 = vperm.xlu2 %3142, %v1879_v44   ;;  %v5054_v44 = vld [vmem:[#allocation74_spill] sm:$0xff] }
 0x498   : > { %2355 = vperm.xlu0 %3143, %v2141_v17   ;;  %2350 = vperm.xlu1 %3141, %v2140_v63   ;;  %v5055_v63 = vld [vmem:[#allocation72_spill] sm:$0xff] }
 0x49a   : > { %2300 = vperm.xlu2 %3142, %v2130_v34  }
 0x4a0   : > { %2360 = vperm.xlu0 %3143, %v2142_v7   ;;  %2375 = vperm.xlu1 %3141, %v2145_v42  }
 0x4a2   : > { %2310 = vperm.xlu2 %3142, %v2132_v6  }
 0x4a8   : > { %2223 = vperm.xlu0 %3143, %v1882_v40  }
 0x4aa   : > { %2335 = vperm.xlu2 %3142, %v2137_v58  }
 0x4ac   : > { %v2149_v50 = vpop.permute.xlu2 %2148 }
 0x4ad   : > { %v2226_v39 = vmul.f32 %v2149_v50, %v4202_v3 }
 0x4b2   : > { %2340 = vperm.xlu2 %3142, %v2138_v51  }
 0x4b4   : > { %v2154_v13 = vpop.permute.xlu2 %2153 }
 0x4b5   : > { %v2227_v20 = vmul.f32 %v2154_v13, %v4207_v0 }
 0x4b7   : > { %v2242_v43 = vadd.f32 %v2227_v20, %v2226_v39 }
 0x4b9   : > { %v2243_v30 = vrot.slane %v2242_v43, 4 }
 0x4ba   : > { %2365 = vperm.xlu2 %3142, %v2143_v61  }
 0x4bb   : > { %v2244_v48 = vadd.f32 %v2243_v30, %v2242_v43  ;;  %v5056_v43 = vld [vmem:[#allocation81_spill] sm:$0xff] }
 0x4bc   : > { %v2159_v11 = vpop.permute.xlu2 %2158 }
 0x4bd   : > { %v2228_v4 = vmul.f32 %v2159_v11, %v4212_v41  ;;  %v2245_v62 = vrot.slane %v2244_v48, 2  ;;  %v5049_v41 = vld [vmem:[#allocation76_spill] sm:$0xff]  ;;  %v5057_v11 = vld [vmem:[#allocation55_spill] sm:$0xff] }
 0x4bf   : > { %v2246_v18 = vadd.f32 %v2245_v62, %v2244_v48 }
 0x4c1   : > { %v2247_v55 = vrot.slane %v2246_v18, 1 }
 0x4c2   : > { %2370 = vperm.xlu2 %3142, %v2144_v45   ;;  %v5058_v45 = vld [vmem:[#allocation82_spill] sm:$0xff] }
 0x4c3   : > { %v2184_v47 = vpop.permute.xlu1 %2183  ;;  %v2194_v38 = vpop.permute.xlu0 %2193  ;;  %v2248_v33 = vadd.f32 %v2247_v55, %v2246_v18 }
 0x4c4   : > { %v2164_v3 = vpop.permute.xlu2 %2163  ;;  %v2235_v9 = vmul.f32 %v2194_v38, %v4242_v24  ;;  %v5053_v24 = vld [vmem:[#allocation70_spill] sm:$0xff]  ;;  %v2233_v60 = vmul.f32 %v2184_v47, %v5054_v44  ;;  %v5065_v44 = vld [vmem:[#allocation67_spill] sm:$0xff] }
 0x4c5   : > { %v2229_v31 = vmul.f32 %v2164_v3, %v4216_v23  ;;  %v4757_v23 = vpop.f32.mrf.mxu3  ;;  %v2450_v53 = vadd.f32 %v2248_v33, %v5051_v10 }
 0x4c7   : > { %v2249_v0 = vadd.f32 %v2229_v31, %v2228_v4 }
 0x4c9   : > { %v2250_v5 = vrot.slane %v2249_v0, 4 }
 0x4cb   : > { %v2251_v26 = vadd.f32 %v2250_v5, %v2249_v0  ;;  %v2189_v36 = vpop.permute.xlu1 %2188  ;;  %v2199_v58 = vpop.permute.xlu0 %2198 }
 0x4cc   : > { %v2234_v35 = vmul.f32 %v2189_v36, %v5049_v41  ;;  %v2169_v2 = vpop.permute.xlu2 %2168  ;;  %v2236_v61 = vmul.f32 %v2199_v58, %v5056_v43  ;;  %v5059_v41 = vld [vmem:[#allocation86_spill] sm:$0xff]  ;;  %v5068_v43 = vld [vmem:[#allocation73_spill] sm:$0xff] }
 0x4cd   : > { %v2252_v12 = vrot.slane %v2251_v26, 2  ;;  %v2230_v56 = vmul.f32 %v2169_v2, %v5050_v16  ;;  %v4763_v1 = vpop.f32.mrf.mxu3  ;;  %v5060_v2 = vld [vmem:[#allocation57_spill] sm:$0xff]  ;;  %v5061_v16 = vld [vmem:[#allocation84_spill] sm:$0xff] }
 0x4ce   : > { %v2270_v8 = vadd.f32 %v2235_v9, %v2234_v35 }
 0x4cf   : > { %v2253_v54 = vadd.f32 %v2252_v12, %v2251_v26 }
 0x4d0   : > { %v2271_v28 = vrot.slane %v2270_v8, 4 }
 0x4d1   : > { %v2254_v59 = vrot.slane %v2253_v54, 1 }
 0x4d2   : > { %v2272_v46 = vadd.f32 %v2271_v28, %v2270_v8  ;;  %v5062_v8 = vld [vmem:[#allocation59_spill] sm:$0xff] }
 0x4d3   : > { %v2255_v19 = vadd.f32 %v2254_v59, %v2253_v54  ;;  %v2214_v42 = vpop.permute.xlu1 %2213 }
 0x4d4   : > { %v2174_v15 = vpop.permute.xlu2 %2173  ;;  %v2273_v29 = vrot.slane %v2272_v46, 2  ;;  %v2239_v35 = vmul.f32 %v2214_v42, %v5059_v41  ;;  %v5071_v41 = vld [vmem:[#allocation78_spill] sm:$0xff] }
 0x4d5   : > { %v2451_v32 = vadd.f32 %v2255_v19, %v5052_v22  ;;  %v2231_v52 = vmul.f32 %v2174_v15, %v5053_v24  ;;  %v4767_v20 = vpop.f32.mrf.mxu3 }
 0x4d6   : > { %v2274_v50 = vadd.f32 %v2273_v29, %v2272_v46  ;;  %v5064_v46 = vld [vmem:[#allocation61_spill] sm:$0xff] }
 0x4d7   : > { %v2466_v25 = vsel %vm1340_vm1, %v2451_v32, %v2450_v53  ;;  %v2256_v57 = vadd.f32 %v2231_v52, %v2230_v56 }
 0x4d8   : > { %v2275_v47 = vrot.slane %v2274_v50, 1 }
 0x4d9   : > { %v2257_v14 = vrot.slane %v2256_v57, 4 }
 0x4da   : > { %v2276_v38 = vadd.f32 %v2275_v47, %v2274_v50  ;;  %v5066_v50 = vld [vmem:[#allocation77_spill] sm:$0xff]  ;;  %v5070_v47 = vld [vmem:[#allocation63_spill] sm:$0xff] }
 0x4db   : > { %v2258_v27 = vadd.f32 %v2257_v14, %v2256_v57  ;;  %v4773_v5 = vpop.permute.xlu1 %2218 }
 0x4dc   : > { %v2179_v49 = vpop.permute.xlu2 %2178  ;;  %v2454_v54 = vadd.f32 %v2276_v38, %v5062_v8 }
 0x4dd   : > { %v2259_v17 = vrot.slane %v2258_v27, 2  ;;  %v2232_v34 = vmul.f32 %v2179_v49, %v5055_v63  ;;  %v1277_v33 = vpop.f32.mrf.mxu3 }
 0x4df   : > { %v2260_v21 = vadd.f32 %v2259_v17, %v2258_v27  ;;  %v2263_v7 = vadd.f32 %v2233_v60, %v2232_v34 }
 0x4e1   : > { %v2261_v6 = vrot.slane %v2260_v21, 1  ;;  %v2264_v40 = vrot.slane %v2263_v7, 4 }
 0x4e3   : > { %v2262_v39 = vadd.f32 %v2261_v6, %v2260_v21  ;;  %v2265_v51 = vadd.f32 %v2264_v40, %v2263_v7 }
 0x4e4   : > { %v2204_v13 = vpop.permute.xlu2 %2203 }
 0x4e5   : > { %v2452_v30 = vadd.f32 %v2262_v39, %v5057_v11  ;;  %v2266_v4 = vrot.slane %v2265_v51, 2  ;;  %v2237_v48 = vmul.f32 %v2204_v13, %v5058_v45  ;;  %v4785_v29 = vpop.f32.mrf.mxu3  ;;  %v5069_v45 = vld [vmem:[#allocation71_spill] sm:$0xff] }
 0x4e7   : > { %v2267_v3 = vadd.f32 %v2266_v4, %v2265_v51  ;;  %v2277_v62 = vadd.f32 %v2237_v48, %v2236_v61  ;;  %v2467_v31 = vsel %vm1342_vm2, %v2452_v30, %v2466_v25  ;;  %v5063_v25 = vld [vmem:[#allocation69_spill] sm:$0xff]  ;;  %v5067_v51 = vld [vmem:[#allocation75_spill] sm:$0xff] }
 0x4e9   : > { %v2268_v0 = vrot.slane %v2267_v3, 1  ;;  %v2278_v18 = vrot.slane %v2277_v62, 4 }
 0x4eb   : > { %v2269_v26 = vadd.f32 %v2268_v0, %v2267_v3  ;;  %v2279_v36 = vadd.f32 %v2278_v18, %v2277_v62 }
 0x4ec   : > { %v2209_v9 = vpop.permute.xlu2 %2208 }
 0x4ed   : > { %v2453_v55 = vadd.f32 %v2269_v26, %v5060_v2  ;;  %v2280_v12 = vrot.slane %v2279_v36, 2  ;;  %v2238_v56 = vmul.f32 %v2209_v9, %v5061_v16  ;;  %v1283_v2 = vpop.f32.mrf.mxu3  ;;  %v5072_v16 = vld [vmem:[#allocation79_spill] sm:$0xff] }
 0x4ef   : > { %v2281_v59 = vadd.f32 %v2280_v12, %v2279_v36  ;;  %v2284_v19 = vadd.f32 %v2239_v35, %v2238_v56  ;;  %v2468_v15 = vsel %vm1344_vm3, %v2453_v55, %v2467_v31  ;;  %v1266_v35 = vadd.f32 %v4752_v37, %v5071_v41  ;;  %v5074_v37 = vld [vmem:[#allocation83_spill] sm:$0xff] }
 0x4f0   : > { %v2469_v10 = vsel %vm1346_vm4, %v2454_v54, %v2468_v15 }
 0x4f1   : > { %v2282_v53 = vrot.slane %v2281_v59, 1  ;;  %v2285_v22 = vrot.slane %v2284_v19, 4 }
 0x4f2   : > { %v2316_v32 = vpop.permute.xlu0 %2315  ;;  %v2306_v24 = vpop.permute.xlu1 %2305 }
 0x4f3   : > { %v2283_v52 = vadd.f32 %v2282_v53, %v2281_v59  ;;  %v2286_v28 = vadd.f32 %v2285_v22, %v2284_v19  ;;  %v2379_v57 = vmul.f32 %v2306_v24, %v5063_v25  ;;  %v2381_v61 = vmul.f32 %v2316_v32, %v5068_v43  ;;  %v5073_v32 = vld [vmem:[#allocation87_spill] sm:$0xff] }
 0x4f4   : > { %v2301_v14 = vpop.permute.xlu2 %2300  ;;  %v1278_v24 = vadd.f32 %v1277_v33, %v5073_v32 }
 0x4f5   : > { %v2455_v27 = vadd.f32 %v2283_v52, %v5064_v46  ;;  %v2287_v49 = vrot.slane %v2286_v28, 2  ;;  %v2378_v60 = vmul.f32 %v2301_v14, %v5065_v44  ;;  %v1272_v14 = vadd.f32 %v4763_v1, %v5074_v37  ;;  %v5075_v46 = vld [vmem:[#allocation85_spill] sm:$0xff]  ;;  %v5079_v1 = vld [vmem:[#allocation54_spill] sm:$0xff] }
 0x4f7   : > { %v2288_v17 = vadd.f32 %v2287_v49, %v2286_v28  ;;  %v2394_v63 = vadd.f32 %v2379_v57, %v2378_v60  ;;  %v2470_v34 = vsel %vm1348_vm5, %v2455_v27, %v2469_v10  ;;  %v1275_v27 = vadd.f32 %v4767_v20, %v5075_v46  ;;  %v5076_v60 = vld [vmem:[#allocation80_spill] sm:$0xff] }
 0x4f9   : > { %v2289_v21 = vrot.slane %v2288_v17, 1  ;;  %v2395_v7 = vrot.slane %v2394_v63, 4 }
 0x4fa   : > { %v2326_v42 = vpop.permute.xlu0 %2325  ;;  %v2321_v6 = vpop.permute.xlu1 %2320 }
 0x4fb   : > { %v2290_v40 = vadd.f32 %v2289_v21, %v2288_v17  ;;  %v2396_v58 = vadd.f32 %v2395_v7, %v2394_v63  ;;  %v2383_v39 = vmul.f32 %v2326_v42, %v5066_v50  ;;  %v2382_v13 = vmul.f32 %v2321_v6, %v5067_v51  ;;  %v5077_v7 = vld [vmem:[#allocation56_spill] sm:$0xff] }
 0x4fc   : > { %v2311_v11 = vpop.permute.xlu2 %2310  ;;  %v1269_v17 = vadd.f32 %v4757_v23, %v5076_v60  ;;  %v5078_v50 = vld [vmem:[#allocation52_spill] sm:$0xff] }
 0x4fd   : > { %v2397_v30 = vrot.slane %v2396_v58, 2  ;;  %v2408_v4 = vadd.f32 %v2383_v39, %v2382_v13  ;;  %v2380_v48 = vmul.f32 %v2311_v11, %v5069_v45  ;;  %v2456_v3 = vadd.f32 %v2290_v40, %v5070_v47  ;;  %v5080_v45 = vld [vmem:[#allocation89_spill] sm:$0xff] }
 0x4ff   : > { %v2409_v62 = vrot.slane %v2408_v4, 4  ;;  %v2401_v31 = vadd.f32 %v2381_v61, %v2380_v48  ;;  %v4793_v0 = vsel %vm1350_vm6, %v2456_v3, %v2470_v34  ;;  %v2398_v18 = vadd.f32 %v2397_v30, %v2396_v58  ;;  %v1286_v58 = vpop.f32.mrf.mxu3 }
 0x500   : > { %v1281_v48 = vadd.f32 %v4785_v29, %v5080_v45 }
 0x501   : > { %v2410_v38 = vadd.f32 %v2409_v62, %v2408_v4  ;;  %v2402_v26 = vrot.slane %v2401_v31, 4  ;;  %v2399_v54 = vrot.slane %v2398_v18, 1 }
 0x502   : > { %v2331_v36 = vpop.permute.xlu0 %2330  ;;  %v2346_v9 = vpop.permute.xlu1 %2345 }
 0x503   : > { %v2411_v55 = vrot.slane %v2410_v38, 2  ;;  %v2403_v12 = vadd.f32 %v2402_v26, %v2401_v31  ;;  %v2384_v56 = vmul.f32 %v2331_v36, %v5072_v16  ;;  %v2400_v52 = vadd.f32 %v2399_v54, %v2398_v18  ;;  %v5081_v18 = vld [vmem:[#allocation91_spill] sm:$0xff] }
 0x504   : > { %v2336_v8 = vpop.permute.xlu2 %2335  ;;  %v2387_v42 = vmul.f32 %v2346_v9, %v1272_v14 }
 0x505   : > { %v2412_v59 = vadd.f32 %v2411_v55, %v2410_v38  ;;  %v2404_v19 = vrot.slane %v2403_v12, 2  ;;  %v2385_v15 = vmul.f32 %v2336_v8, %v1266_v35  ;;  %v2475_v39 = vadd.f32 %v2400_v52, %v5078_v50  ;;  %v5082_v55 = vld [vmem:[#allocation58_spill] sm:$0xff] }
 0x506   : > { %v1284_v38 = vadd.f32 %v1283_v2, %v5081_v18  ;;  %v5083_v2 = vld [vmem:[#allocation92_spill] sm:$0xff] }
 0x507   : > { %v2413_v10 = vrot.slane %v2412_v59, 1  ;;  %v2405_v53 = vadd.f32 %v2404_v19, %v2403_v12  ;;  %v2415_v22 = vadd.f32 %v2385_v15, %v2384_v56  ;;  %v1289_v54 = vpop.f32.mrf.mxu3  ;;  %v1287_v32 = vadd.f32 %v1286_v58, %v5083_v2 }
 0x509   : > { %v2414_v28 = vadd.f32 %v2413_v10, %v2412_v59  ;;  %v2406_v25 = vrot.slane %v2405_v53, 1  ;;  %v2416_v57 = vrot.slane %v2415_v22, 4 }
 0x50a   : > { %v2356_v49 = vpop.permute.xlu0 %2355  ;;  %v2351_v44 = vpop.permute.xlu1 %2350 }
 0x50b   : > { %v2407_v63 = vadd.f32 %v2406_v25, %v2405_v53  ;;  %v2417_v34 = vadd.f32 %v2416_v57, %v2415_v22  ;;  %v2389_v21 = vmul.f32 %v2356_v49, %v1278_v24  ;;  %v2477_v33 = vadd.f32 %v2414_v28, %v5077_v7  ;;  %v5084_v24 = vld [vmem:[#allocation27_spill] sm:$0xff]  ;;  %v5085_v57 = vld [vmem:[#allocation88_spill] sm:$0xff] }
 0x50c   : > { %v2388_v6 = vmul.f32 %v2351_v44, %v1275_v27  ;;  %v2341_v40 = vpop.permute.xlu2 %2340  ;;  %v1290_v52 = vadd.f32 %v1289_v54, %v5084_v24  ;;  %v2240_v37 = vmul.f32 %v4773_v5, %v5085_v57  ;;  %v5086_v27 = vld [vmem:[#allocation90_spill] sm:$0xff]  ;;  %v2581_v54 = vld [vmem:[#allocation12 + $0xf8] sm:$0xff]  ;;  %v2566_v24 = vld [vmem:[#allocation12 + $0x80] sm:$0xff] }
 0x50d   : > { %v2476_v51 = vadd.f32 %v2407_v63, %v5079_v1  ;;  %v2418_v13 = vrot.slane %v2417_v34, 2  ;;  %v2386_v20 = vmul.f32 %v2341_v40, %v1269_v17  ;;  %v5087_v44 = vld [vmem:[#allocation62_spill] sm:$0xff]  ;;  %2654 = vmatpush.msrb.mxu1 %v2581_v54  ;;  %v2589_v54 = vld [vmem:[#allocation12 + $0x138] sm:$0xff] }
 0x50e   : > { %v2429_v43 = vadd.f32 %v2389_v21, %v2388_v6 }
 0x50f   : > { %v2491_v61 = vsel %vm1340_vm1, %v2476_v51, %v2475_v39  ;;  %v2419_v11 = vadd.f32 %v2418_v13, %v2417_v34  ;;  %v2422_v23 = vadd.f32 %v2387_v42, %v2386_v20  ;;  %v5088_v34 = vld [vmem:[#allocation60_spill] sm:$0xff] }
 0x510   : > { %v2430_v30 = vrot.slane %v2429_v43, 4  ;;  %v2492_v4 = vsel %vm1342_vm2, %v2477_v33, %v2491_v61 }
 0x511   : > { %v2420_v47 = vrot.slane %v2419_v11, 1  ;;  %v2423_v3 = vrot.slane %v2422_v23, 4 }
 0x512   : > { %v2431_v62 = vadd.f32 %v2430_v30, %v2429_v43  ;;  %v2361_v31 = vpop.permute.xlu0 %2360  ;;  %v2376_v53 = vpop.permute.xlu1 %2375 }
 0x513   : > { %v2421_v26 = vadd.f32 %v2420_v47, %v2419_v11  ;;  %v2424_v36 = vadd.f32 %v2423_v3, %v2422_v23  ;;  %v2390_v9 = vmul.f32 %v2361_v31, %v1281_v48  ;;  %v2393_v17 = vmul.f32 %v2376_v53, %v1290_v52  ;;  %v5089_v23 = vld [vmem:[#allocation64_spill] sm:$0xff]  ;;  %v5090_v31 = vld [vmem:[#allocation65_spill] sm:$0xff]  ;;  %v2611_v53 = vld [vmem:[#allocation12 + $0x1e8] sm:$0xff] }
 0x514   : > { %v2432_v41 = vrot.slane %v2431_v62, 2  ;;  %v2366_v35 = vpop.permute.xlu2 %2365 }
 0x515   : > { %v2478_v12 = vadd.f32 %v2421_v26, %v5082_v55  ;;  %v2425_v16 = vrot.slane %v2424_v36, 2  ;;  %v2391_v56 = vmul.f32 %v2366_v35, %v1284_v38  ;;  %v5091_v26 = vld [vmem:[#allocation66_spill] sm:$0xff]  ;;  %v3525_v35 = vmov 256.0   ;;  %v2580_v55 = vld [vmem:[#allocation12 + $0xf0] sm:$0xff] }
 0x516   : > { %v2433_v8 = vadd.f32 %v2432_v41, %v2431_v62  ;;  %3214 = vrcp.f32 %v3525_v35  ;;  %2614 = vmatpush.msra.mxu3 %v2580_v55  ;;  %v2590_v35 = vld [vmem:[#allocation12 + $0x140] sm:$0xff] }
 0x517   : > { %v2426_v59 = vadd.f32 %v2425_v16, %v2424_v36  ;;  %v2436_v19 = vadd.f32 %v2391_v56, %v2390_v9  ;;  %v2493_v29 = vsel %vm1344_vm3, %v2478_v12, %v2492_v4  ;;  %v2578_v12 = vld [vmem:[#allocation12 + $0xe0] sm:$0xff]  ;;  %v2576_v56 = vld [vmem:[#allocation12 + $0xd0] sm:$0xff] }
 0x518   : > { %v2434_v15 = vrot.slane %v2433_v8, 1  ;;  %2615 = vmatpush.msra.mxu3 %v2578_v12  ;;  %v2550_v55 = vld [vmem:[#allocation12] sm:$0xff]  ;;  %v2559_v12 = vld [vmem:[#allocation12 + $0x48] sm:$0xff] }
 0x519   : > { %v2427_v10 = vrot.slane %v2426_v59, 1  ;;  %v2437_v22 = vrot.slane %v2436_v19, 4 }
 0x51a   : > { %v2435_v28 = vadd.f32 %v2434_v15, %v2433_v8  ;;  %v2224_v25 = vpop.permute.xlu0 %2223  ;;  %v2574_v8 = vld [vmem:[#allocation12 + $0xc0] sm:$0xff]  ;;  %2616 = vmatpush.msra.mxu3 %v2576_v56  ;;  %v2579_v15 = vld [vmem:[#allocation12 + $0xe8] sm:$0xff]  ;;  %v2588_v56 = vld [vmem:[#allocation12 + $0x130] sm:$0xff] }
 0x51b   : > { %v2428_v14 = vadd.f32 %v2427_v10, %v2426_v59  ;;  %v2438_v46 = vadd.f32 %v2437_v22, %v2436_v19  ;;  %v2241_v49 = vmul.f32 %v2224_v25, %v5086_v27  ;;  %v2613_v19 = vld [vmem:[#allocation12 + $0x1f8] sm:$0xff]  ;;  %v2572_v10 = vld [vmem:[#allocation12 + $0xb0] sm:$0xff]  ;;  %v2570_v22 = vld [vmem:[#allocation12 + $0xa0] sm:$0xff]  ;;  %2655 = vmatpush.msrb.mxu1 %v2579_v15 }
 0x51c   : > { %v2480_v60 = vadd.f32 %v2435_v28, %v5087_v44  ;;  %v2371_v63 = vpop.permute.xlu2 %2370  ;;  %v3215_v16 = vpop.eup %3214  ;;  %2674 = vmatpush.msrb.mxu2 %v2613_v19  ;;  %2617 = vmatpush.msra.mxu3 %v2574_v8  ;;  %v2564_v28 = vld [vmem:[#allocation12 + $0x70] sm:$0xff]  ;;  %v2562_v25 = vld [vmem:[#allocation12 + $0x60] sm:$0xff]  ;;  %v2587_v15 = vld [vmem:[#allocation12 + $0x128] sm:$0xff] }
 0x51d   : > { %v2479_v21 = vadd.f32 %v2428_v14, %v5088_v34  ;;  %v2439_v7 = vrot.slane %v2438_v46, 2  ;;  %v2291_v33 = vadd.f32 %v2241_v49, %v2240_v37  ;;  %v2392_v42 = vmul.f32 %v2371_v63, %v1287_v32  ;;  %v2568_v32 = vld [vmem:[#allocation12 + $0x90] sm:$0xff]  ;;  %v2558_v14 = vld [vmem:[#allocation12 + $0x40] sm:$0xff] }
 0x51e   : > { %v2506_v59 = vmul.f32 256.0, %v3215_v16  ;;  %2675 = vmatpush.msrb.mxu2 %v2611_v53  ;;  %2618 = vmatpush.msra.mxu3 %v2572_v10  ;;  %vm2510_vm1 = vweird.f32 %v3215_v16  ;;  %v2560_v37 = vld [vmem:[#allocation12 + $0x50] sm:$0xff]  ;;  %v2586_v19 = vld [vmem:[#allocation12 + $0x120] sm:$0xff] }
 0x51f   : > { %v2440_v6 = vadd.f32 %v2439_v7, %v2438_v46  ;;  %v2292_v40 = vrot.slane %v2291_v33, 4  ;;  %v2443_v58 = vadd.f32 %v2393_v17, %v2392_v42  ;;  %v2494_v50 = vsel %vm1346_vm4, %v2479_v21, %v2493_v29  ;;  %v2610_v29 = vld [vmem:[#allocation12 + $0x1e0] sm:$0xff]  ;;  %v2556_v27 = vld [vmem:[#allocation12 + $0x30] sm:$0xff]  ;;  %v2609_v42 = vld [vmem:[#allocation12 + $0x1d8] sm:$0xff] }
 0x520   : > { %v2495_v5 = vsel %vm1348_vm5, %v2480_v60, %v2494_v50  ;;  %v2507_v2 = vsub.f32 1.0, %v2506_v59  ;;  %2619 = vmatpush.msra.mxu3 %v2570_v22  ;;  %v2608_v7 = vld [vmem:[#allocation12 + $0x1d0] sm:$0xff]  ;;  %2676 = vmatpush.msrb.mxu2 %v2609_v42 }
 0x521   : > { %v2441_v39 = vrot.slane %v2440_v6, 1  ;;  %v2293_v1 = vadd.f32 %v2292_v40, %v2291_v33  ;;  %v2444_v51 = vrot.slane %v2443_v58, 4  ;;  %v2577_v33 = vld [vmem:[#allocation12 + $0xd8] sm:$0xff]  ;;  %v2575_v40 = vld [vmem:[#allocation12 + $0xc8] sm:$0xff]  ;;  %v2604_v50 = vld [vmem:[#allocation12 + $0x1b0] sm:$0xff] }
 0x522   : > { %v2508_v52 = vmul.f32 %v3215_v16, %v2507_v2  ;;  %2620 = vmatpush.msra.mxu3 %v2568_v32  ;;  %2656 = vmatpush.msrb.mxu1 %v2577_v33  ;;  %v2726_v10 = vld [vmem:[#allocation14 + $0xf0] sm:$0xff]  ;;  %v2553_v2 = vld [vmem:[#allocation12 + $0x18] sm:$0xff] }
 0x523   : > { %v2442_v13 = vadd.f32 %v2441_v39, %v2440_v6  ;;  %v2294_v20 = vrot.slane %v2293_v1, 2  ;;  %v2445_v43 = vadd.f32 %v2444_v51, %v2443_v58  ;;  %v2606_v6 = vld [vmem:[#allocation12 + $0x1c0] sm:$0xff]  ;;  %v2607_v58 = vld [vmem:[#allocation12 + $0x1c8] sm:$0xff]  ;;  %v2605_v39 = vld [vmem:[#allocation12 + $0x1b8] sm:$0xff] }
 0x524   : > { %2621 = vmatpush.msra.mxu3 %v2566_v24  ;;  %v2509_v57 = vadd.f32 %v3215_v16, %v2508_v52  ;;  %2657 = vmatpush.msrb.mxu1 %v2575_v40  ;;  %v2571_v51 = vld [vmem:[#allocation12 + $0xa8] sm:$0xff]  ;;  %v2584_v22 = vld [vmem:[#allocation12 + $0x110] sm:$0xff]  ;;  %v2585_v32 = vld [vmem:[#allocation12 + $0x118] sm:$0xff] }
 0x525   : > { %v2295_v61 = vadd.f32 %v2294_v20, %v2293_v1  ;;  %v2446_v11 = vrot.slane %v2445_v43, 2  ;;  %v2481_v30 = vadd.f32 %v2442_v13, %v5089_v23  ;;  %2677 = vmatpush.msrb.mxu2 %v2607_v58  ;;  %v2602_v1 = vld [vmem:[#allocation12 + $0x1a0] sm:$0xff]  ;;  %v2603_v13 = vld [vmem:[#allocation12 + $0x1a8] sm:$0xff]  ;;  %v2600_v20 = vld [vmem:[#allocation12 + $0x190] sm:$0xff] }
 0x526   : > { %2622 = vmatpush.msra.mxu3 %v2564_v28  ;;  %v4837_v46 = vsel %vm2510_vm1, %v3215_v16, %v2509_v57  ;;  %v2567_v23 = vld [vmem:[#allocation12 + $0x88] sm:$0xff]  ;;  %v2724_v24 = vld [vmem:[#allocation14 + $0xe0] sm:$0xff]  ;;  %v2722_v28 = vld [vmem:[#allocation14 + $0xd0] sm:$0xff] }
 0x527   : > { %v2296_v4 = vrot.slane %v2295_v61, 1  ;;  %v2447_v45 = vadd.f32 %v2446_v11, %v2445_v43  ;;  %v2496_v48 = vsel %vm1350_vm6, %v2481_v30, %v2495_v5  ;;  %v2573_v5 = vld [vmem:[#allocation12 + $0xb8] sm:$0xff]  ;;  %2678 = vmatpush.msrb.mxu2 %v2605_v39  ;;  %v2598_v11 = vld [vmem:[#allocation12 + $0x180] sm:$0xff]  ;;  %v2599_v30 = vld [vmem:[#allocation12 + $0x188] sm:$0xff] }
 0x528   : > { %2623 = vmatpush.msra.mxu3 %v2562_v25  ;;  %2658 = vmatpush.msrb.mxu1 %v2573_v5  ;;  %v2569_v43 = vld [vmem:[#allocation12 + $0x98] sm:$0xff]  ;;  %v2591_v16 = vld [vmem:[#allocation12 + $0x148] sm:$0xff]  ;;  %v2582_v52 = vld [vmem:[#allocation12 + $0x100] sm:$0xff] }
 0x529   : > { %v2297_v47 = vadd.f32 %v2296_v4, %v2295_v61  ;;  %v2448_v3 = vrot.slane %v2447_v45, 1  ;;  %2679 = vmatpush.msrb.mxu2 %v2603_v13  ;;  %v2601_v61 = vld [vmem:[#allocation12 + $0x198] sm:$0xff]  ;;  %v2554_v4 = vld [vmem:[#allocation12 + $0x20] sm:$0xff]  ;;  %v2551_v25 = vld [vmem:[#allocation12 + $0x8] sm:$0xff] }
 0x52a   : > { %2624 = vmatpush.msra.mxu3 %v2560_v37  ;;  %2659 = vmatpush.msrb.mxu1 %v2571_v51  ;;  %v2583_v57 = vld [vmem:[#allocation12 + $0x108] sm:$0xff]  ;;  %v2758_v37 = vld [vmem:[#allocation14 + $0x1f0] sm:$0xff]  ;;  %v2723_v33 = vld [vmem:[#allocation14 + $0xd8] sm:$0xff] }
 0x52b   : > { %v2449_v62 = vadd.f32 %v2448_v3, %v2447_v45  ;;  %v2457_v18 = vadd.f32 %v2297_v47, %v5090_v31  ;;  %2680 = vmatpush.msrb.mxu2 %v2601_v61  ;;  %v2552_v45 = vld [vmem:[#allocation12 + $0x10] sm:$0xff]  ;;  %v2565_v47 = vld [vmem:[#allocation12 + $0x78] sm:$0xff]  ;;  %v2563_v31 = vld [vmem:[#allocation12 + $0x68] sm:$0xff] }
 0x52c   : > { %2625 = vmatpush.msra.mxu3 %v2558_v14  ;;  %2660 = vmatpush.msrb.mxu1 %v2569_v43  ;;  %v2597_v3 = vld [vmem:[#allocation12 + $0x178] sm:$0xff]  ;;  %v2716_v40 = vld [vmem:[#allocation14 + $0xa0] sm:$0xff]  ;;  %v2753_v39 = vld [vmem:[#allocation14 + $0x1c8] sm:$0xff] }
 0x52d   : > { %v4829_v38 = vsel %vm1352_vm7, %v2457_v18, %v4793_v0  ;;  %v2482_v36 = vadd.f32 %v2449_v62, %v5091_v26  ;;  %v2612_v0 = vld [vmem:[#allocation12 + $0x1f0] sm:$0xff]  ;;  %2681 = vmatpush.msrb.mxu2 %v2599_v30  ;;  %v2594_v62 = vld [vmem:[#allocation12 + $0x160] sm:$0xff]  ;;  %v2595_v18 = vld [vmem:[#allocation12 + $0x168] sm:$0xff] }
 0x52e   : > { %2634 = vmatpush.msrb.mxu0 %v2612_v0  ;;  %2626 = vmatpush.msra.mxu3 %v2556_v27  ;;  %v2592_v26 = vld [vmem:[#allocation12 + $0x150] sm:$0xff]  ;;  %v2557_v0 = vld [vmem:[#allocation12 + $0x38] sm:$0xff]  ;;  %v2720_v27 = vld [vmem:[#allocation14 + $0xc0] sm:$0xff] }
 0x52f   : > { %v4833_v9 = vsel %vm1352_vm7, %v2482_v36, %v2496_v48  ;;  %2661 = vmatpush.msrb.mxu1 %v2567_v23  ;;  %v2596_v48 = vld [vmem:[#allocation12 + $0x170] sm:$0xff]  ;;  %2682 = vmatpush.msrb.mxu2 %v2597_v3  ;;  %v2561_v36 = vld [vmem:[#allocation12 + $0x58] sm:$0xff]  ;;  %v2752_v58 = vld [vmem:[#allocation14 + $0x1c0] sm:$0xff] }
 0x530   : > { %v2502_v41 = vadd.f32 %v4833_v9, %v4829_v38  ;;  %2635 = vmatpush.msrb.mxu0 %v2610_v29  ;;  %2627 = vmatpush.msra.mxu3 %v2554_v4  ;;  %v2555_v29 = vld [vmem:[#allocation12 + $0x28] sm:$0xff]  ;;  %v2727_v14 = vld [vmem:[#allocation14 + $0xf8] sm:$0xff]  ;;  %v2750_v51 = vld [vmem:[#allocation14 + $0x1b0] sm:$0xff] }
 0x531   : > { %2662 = vmatpush.msrb.mxu1 %v2565_v47  ;;  %2683 = vmatpush.msrb.mxu2 %v2595_v18  ;;  %v2719_v13 = vld [vmem:[#allocation14 + $0xb8] sm:$0xff]  ;;  %v2712_v61 = vld [vmem:[#allocation14 + $0x80] sm:$0xff]  ;;  %v2717_v23 = vld [vmem:[#allocation14 + $0xa8] sm:$0xff] }
 0x532   : > { %2503 = vadd.xlane.f32.xlu0 %v2502_v41  ;;  %2636 = vmatpush.msrb.mxu0 %v2608_v7  ;;  %v2593_v41 = vld [vmem:[#allocation12 + $0x158] sm:$0xff]  ;;  %v2754_v7 = vld [vmem:[#allocation14 + $0x1d0] sm:$0xff] }
 0x533   : > { %2628 = vmatpush.msra.mxu3 %v2552_v45  ;;  %2663 = vmatpush.msrb.mxu1 %v2563_v31  ;;  %v2751_v43 = vld [vmem:[#allocation14 + $0x1b8] sm:$0xff]  ;;  %v2534_v30 = vld [vmem:[%s4908_s7] sm:$0x3]  ;;  %v2749_v45 = vld [vmem:[#allocation14 + $0x1a8] sm:$0xff] }
 0x534   : > { %2637 = vmatpush.msrb.mxu0 %v2606_v6  ;;  %2684 = vmatpush.msrb.mxu2 %v2593_v41  ;;  %v2755_v6 = vld [vmem:[#allocation14 + $0x1d8] sm:$0xff]  ;;  %v2746_v47 = vld [vmem:[#allocation14 + $0x190] sm:$0xff]  ;;  %v2537_v41 = vperm.slane %v2534_v30, 1 }
 0x535   : > { %2629 = vmatpush.msra.mxu3 %v2550_v55  ;;  %2664 = vmatpush.msrb.mxu1 %v2561_v36  ;;  %v2715_v3 = vld [vmem:[#allocation14 + $0x98] sm:$0xff]  ;;  %v2542_v31 = vld [vmem:[%s4909_s8] sm:$0x3]  ;;  %v2536_v36 = vperm.slane %v2534_v30, 0  ;;  %v2713_v55 = vld [vmem:[#allocation14 + $0x88] sm:$0xff] }
 0x536   : > { %2638 = vmatpush.msrb.mxu0 %v2604_v50  ;;  %2685 = vmatpush.msrb.mxu2 %v2591_v16  ;;  %v2721_v50 = vld [vmem:[#allocation14 + $0xc8] sm:$0xff]  ;;  %v2747_v18 = vld [vmem:[#allocation14 + $0x198] sm:$0xff] }
 0x537   : > { %2665 = vmatpush.msrb.mxu1 %v2559_v12  ;;  %2760 = vmatpush.msrb.mxu3 %v2726_v10  ;;  %v2745_v16 = vld [vmem:[#allocation14 + $0x188] sm:$0xff] }
 0x538   : > { %2639 = vmatpush.msrb.mxu0 %v2602_v1  ;;  %2686 = vmatpush.msrb.mxu2 %v2589_v54  ;;  %v2714_v1 = vld [vmem:[#allocation14 + $0x90] sm:$0xff]  ;;  %v2545_v54 = vperm.slane %v2542_v31, 1 }
 0x539   : > { %2666 = vmatpush.msrb.mxu1 %v2557_v0  ;;  %2761 = vmatpush.msrb.mxu3 %v2724_v24  ;;  %v2544_v0 = vperm.slane %v2542_v31, 0  ;;  %v2738_v24 = vld [vmem:[#allocation14 + $0x150] sm:$0xff] }
 0x53a   : > { %2640 = vmatpush.msrb.mxu0 %v2600_v20  ;;  %2687 = vmatpush.msrb.mxu2 %v2587_v15 }
 0x53b   : > { %2667 = vmatpush.msrb.mxu1 %v2555_v29  ;;  %2762 = vmatpush.msrb.mxu3 %v2722_v28  ;;  %v2743_v29 = vld [vmem:[#allocation14 + $0x178] sm:$0xff] }
 0x53c   : > { %2641 = vmatpush.msrb.mxu0 %v2598_v11  ;;  %2688 = vmatpush.msrb.mxu2 %v2585_v32  ;;  %v2748_v11 = vld [vmem:[#allocation14 + $0x1a0] sm:$0xff]  ;;  %v2706_v32 = vld [vmem:[#allocation14 + $0x50] sm:$0xff]  ;;  %v2739_v28 = vld [vmem:[#allocation14 + $0x158] sm:$0xff] }
 0x53d   : > { %2668 = vmatpush.msrb.mxu1 %v2553_v2  ;;  %2763 = vmatpush.msrb.mxu3 %v2720_v27  ;;  %v2734_v27 = vld [vmem:[#allocation14 + $0x130] sm:$0xff] }
 0x53e   : > { %2642 = vmatpush.msrb.mxu0 %v2596_v48  ;;  %2689 = vmatpush.msrb.mxu2 %v2583_v57  ;;  %v2710_v48 = vld [vmem:[#allocation14 + $0x70] sm:$0xff]  ;;  %v2736_v57 = vld [vmem:[#allocation14 + $0x140] sm:$0xff] }
 0x53f   : > { %2669 = vmatpush.msrb.mxu1 %v2551_v25  ;;  %v2704_v25 = vld [vmem:[#allocation14 + $0x40] sm:$0xff] }
 0x540   : > { %2643 = vmatpush.msrb.mxu0 %v2594_v62 }
 0x541   : > { %2800 = vmatpush.msra.mxu1 %v2727_v14  ;;  %v2737_v14 = vld [vmem:[#allocation14 + $0x148] sm:$0xff] }
 0x542   : > { %2644 = vmatpush.msrb.mxu0 %v2592_v26  ;;  %v2708_v26 = vld [vmem:[#allocation14 + $0x60] sm:$0xff] }
 0x544   : > { %2645 = vmatpush.msrb.mxu0 %v2590_v35  ;;  %v2744_v35 = vld [vmem:[#allocation14 + $0x180] sm:$0xff] }
 0x546   : > { %2646 = vmatpush.msrb.mxu0 %v2588_v56 }
 0x548   : > { %2647 = vmatpush.msrb.mxu0 %v2586_v19  ;;  %v2711_v19 = vld [vmem:[#allocation14 + $0x78] sm:$0xff] }
 0x54a   : > { %2648 = vmatpush.msrb.mxu0 %v2584_v22  ;;  %v2709_v22 = vld [vmem:[#allocation14 + $0x68] sm:$0xff] }
 0x54c   : > { %2649 = vmatpush.msrb.mxu0 %v2582_v52  ;;  %v2707_v52 = vld [vmem:[#allocation14 + $0x58] sm:$0xff] }
 0x54e   : > { %2780 = vmatpush.msra.mxu0 %v2758_v37  ;;  %v2705_v37 = vld [vmem:[#allocation14 + $0x48] sm:$0xff] }
 0x5a5   : > { %v2504_v49 = vpop.xlane.xlu0 %2503 }
 0x5a6   : > { %v2512_v44 = vmul.f32 %v4837_v46, %v2504_v49  ;;  %v2756_v49 = vld [vmem:[#allocation14 + $0x1e0] sm:$0xff] }
 0x5a7   : > { %2781 = vmatpush.msra.mxu0 %v2756_v49  ;;  %v2703_v49 = vld [vmem:[#allocation14 + $0x38] sm:$0xff] }
 0x5a8   : > { %v4841_v60 = vsub.f32 %v4829_v38, %v2512_v44  ;;  %v4844_v17 = vsub.f32 %v4833_v9, %v2512_v44  ;;  %v2725_v44 = vld [vmem:[#allocation14 + $0xe8] sm:$0xff] }
 0x5a9   : > { %2801 = vmatpush.msra.mxu1 %v2725_v44  ;;  %2782 = vmatpush.msra.mxu0 %v2754_v7  ;;  %v2735_v44 = vld [vmem:[#allocation14 + $0x138] sm:$0xff]  ;;  %v2733_v7 = vld [vmem:[#allocation14 + $0x128] sm:$0xff] }
 0x5aa   : > { %v2515_v63 = vmul.f32 %v4841_v60, %v4841_v60  ;;  %v2516_v34 = vmul.f32 %v4844_v17, %v4844_v17 }
 0x5ab   : > { %2802 = vmatpush.msra.mxu1 %v2723_v33  ;;  %2783 = vmatpush.msra.mxu0 %v2752_v58  ;;  %v2698_v33 = vld [vmem:[#allocation14 + $0x10] sm:$0xff]  ;;  %v2696_v58 = vld [vmem:[#allocation14] sm:$0xff] }
 0x5ac   : > { %v2517_v21 = vadd.f32 %v2516_v34, %v2515_v63  ;;  %v2757_v63 = vld [vmem:[#allocation14 + $0x1e8] sm:$0xff]  ;;  %v2718_v34 = vld [vmem:[#allocation14 + $0xb0] sm:$0xff] }
 0x5ad   : > { %2764 = vmatpush.msrb.mxu3 %v2718_v34  ;;  %2803 = vmatpush.msra.mxu1 %v2721_v50  ;;  %v2732_v34 = vld [vmem:[#allocation14 + $0x120] sm:$0xff] }
 0x5ae   : > { %2518 = vadd.xlane.f32.xlu2 %v2517_v21  ;;  %2784 = vmatpush.msra.mxu0 %v2750_v51  ;;  %v2728_v50 = vld [vmem:[#allocation14 + $0x100] sm:$0xff] }
 0x5af   : > { %2765 = vmatpush.msrb.mxu3 %v2716_v40  ;;  %2804 = vmatpush.msra.mxu1 %v2719_v13  ;;  %v2731_v40 = vld [vmem:[#allocation14 + $0x118] sm:$0xff] }
 0x5b0   : > { %2785 = vmatpush.msra.mxu0 %v2748_v11 }
 0x5b1   : > { %2766 = vmatpush.msrb.mxu3 %v2714_v1  ;;  %2805 = vmatpush.msra.mxu1 %v2717_v23 }
 0x5b2   : > { %2786 = vmatpush.msra.mxu0 %v2746_v47 }
 0x5b3   : > { %2767 = vmatpush.msrb.mxu3 %v2712_v61  ;;  %2806 = vmatpush.msra.mxu1 %v2715_v3 }
 0x5b4   : > { %2787 = vmatpush.msra.mxu0 %v2744_v35 }
 0x5b5   : > { %2768 = vmatpush.msrb.mxu3 %v2710_v48  ;;  %2807 = vmatpush.msra.mxu1 %v2713_v55 }
 0x5b7   : > { %2769 = vmatpush.msrb.mxu3 %v2708_v26  ;;  %2808 = vmatpush.msra.mxu1 %v2711_v19 }
 0x5b9   : > { %2809 = vmatpush.msra.mxu1 %v2709_v22  ;;  %2770 = vmatpush.msrb.mxu3 %v2706_v32 }
 0x5bb   : > { %2810 = vmatpush.msra.mxu1 %v2707_v52  ;;  %2771 = vmatpush.msrb.mxu3 %v2704_v25 }
 0x5bd   : > { %2811 = vmatpush.msra.mxu1 %v2705_v37 }
 0x5bf   : > { %2812 = vmatpush.msra.mxu1 %v2703_v49 }
 0x621   : > { %v2519_v8 = vpop.xlane.xlu2 %2518 }
 0x622   : > { %v2520_v59 = vmul.f32 %v2519_v8, %v4837_v46  ;;  %v2759_v46 = vld [vmem:[#allocation14 + $0x1f8] sm:$0xff] }
 0x623   : > { %2820 = vmatpush.msra.mxu2 %v2759_v46  ;;  %v2702_v46 = vld [vmem:[#allocation14 + $0x30] sm:$0xff] }
 0x624   : > { %v4851_v53 = vadd.f32 1e-05, %v2520_v59  ;;  %v2742_v59 = vld [vmem:[#allocation14 + $0x170] sm:$0xff]  ;;  %2772 = vmatpush.msrb.mxu3 %v2702_v46 }
 0x625   : > { %2821 = vmatpush.msra.mxu2 %v2757_v63  ;;  %2788 = vmatpush.msra.mxu0 %v2742_v59  ;;  %v2700_v63 = vld [vmem:[#allocation14 + $0x20] sm:$0xff] }
 0x626   : > { %3216 = vrsqrt.f32 %v4851_v53  ;;  %vm2528_vm3 = vweird.f32 %v4851_v53  ;;  %2773 = vmatpush.msrb.mxu3 %v2700_v63 }
 0x627   : > { %2822 = vmatpush.msra.mxu2 %v2755_v6  ;;  %v2699_v6 = vld [vmem:[#allocation14 + $0x18] sm:$0xff] }
 0x628   : > { %2774 = vmatpush.msrb.mxu3 %v2698_v33 }
 0x629   : > { %2823 = vmatpush.msra.mxu2 %v2753_v39  ;;  %v2729_v39 = vld [vmem:[#allocation14 + $0x108] sm:$0xff] }
 0x62a   : > { %2775 = vmatpush.msrb.mxu3 %v2696_v58 }
 0x62b   : > { %2824 = vmatpush.msra.mxu2 %v2751_v43 }
 0x62c   : > { %v3217_v21 = vpop.eup %3216 }
 0x62d   : > { %v2523_v42 = vmul.f32 %v3217_v21, %v4851_v53  ;;  %vm2529_vm2 = vweird.f32 %v3217_v21  ;;  %2825 = vmatpush.msra.mxu2 %v2749_v45  ;;  %v2740_v53 = vld [vmem:[#allocation14 + $0x160] sm:$0xff] }
 0x62e   : > { %vm2530_vm4 = vmor %vm2528_vm3, %vm2529_vm2  ;;  %2789 = vmatpush.msra.mxu0 %v2740_v53 }
 0x62f   : > { %v2524_v5 = vmul.f32 %v3217_v21, %v2523_v42  ;;  %2826 = vmatpush.msra.mxu2 %v2747_v18  ;;  %v2730_v42 = vld [vmem:[#allocation14 + $0x110] sm:$0xff] }
 0x630   : > { %2790 = vmatpush.msra.mxu0 %v2738_v24 }
 0x631   : > { %v2525_v20 = vmul.f32 0.5, %v2524_v5  ;;  %2827 = vmatpush.msra.mxu2 %v2745_v16  ;;  %v2697_v5 = vld [vmem:[#allocation14 + $0x8] sm:$0xff] }
 0x632   : > { %2791 = vmatpush.msra.mxu0 %v2736_v57 }
 0x633   : > { %v2526_v4 = vsub.f32 1.5, %v2525_v20  ;;  %2828 = vmatpush.msra.mxu2 %v2743_v29 }
 0x634   : > { %2792 = vmatpush.msra.mxu0 %v2734_v27 }
 0x635   : > { %v2527_v62 = vmul.f32 %v3217_v21, %v2526_v4 }
 0x636   : > { %2793 = vmatpush.msra.mxu0 %v2732_v34 }
 0x637   : > { %v2531_v12 = vsel %vm2530_vm4, %v3217_v21, %v2527_v62  ;;  %v2701_v21 = vld [vmem:[#allocation14 + $0x28] sm:$0xff] }
 0x638   : > { %v2532_v56 = vmul.f32 %v2531_v12, %v4841_v60  ;;  %v2533_v8 = vmul.f32 %v2531_v12, %v4844_v17  ;;  %v2741_v17 = vld [vmem:[#allocation14 + $0x168] sm:$0xff]  ;;  %2813 = vmatpush.msra.mxu1 %v2701_v21  ;;  %2794 = vmatpush.msra.mxu0 %v2730_v42 }
 0x639   : > { %2829 = vmatpush.msra.mxu2 %v2741_v17 }
 0x63a   : > { %v2540_v15 = vmul.f32 %v2536_v36, %v2532_v56  ;;  %v2541_v10 = vmul.f32 %v2537_v41, %v2533_v8  ;;  %2814 = vmatpush.msra.mxu1 %v2699_v6  ;;  %2795 = vmatpush.msra.mxu0 %v2728_v50 }
 0x63b   : > { %2830 = vmatpush.msra.mxu2 %v2739_v28 }
 0x63c   : > { %v2548_v2 = vadd.f32 %v2544_v0, %v2540_v15  ;;  %v2549_v60 = vadd.f32 %v2545_v54, %v2541_v10  ;;  %2815 = vmatpush.msra.mxu1 %v2697_v5 }
 0x63d   : > { %2831 = vmatpush.msra.mxu2 %v2737_v14 }
 0x63e   : > { %2630 = vmatmul.f32.vlgmr.msra.gmra.mxu3 %v2548_v2  ;;  %2650 = vmatmul.f32.vlgmr.msrb.gmra.mxu0 %v2549_v60 }
 0x63f   : > { %2670 = vmatmul.f32.vlgmr.msrb.gmra.mxu1 %v2548_v2  ;;  %2690 = vmatmul.f32.vlgmr.msrb.gmra.mxu2 %v2549_v60 }
 0x640   : > { %2832 = vmatpush.msra.mxu2 %v2735_v44 }
 0x642   : > { %2833 = vmatpush.msra.mxu2 %v2733_v7 }
 0x644   : > { %2834 = vmatpush.msra.mxu2 %v2731_v40 }
 0x646   : > { %2835 = vmatpush.msra.mxu2 %v2729_v39 }
 0x6bb   : > { %v2651_v1 = vpop.f32.mrf.mxu0 }
 0x6bc   : > { %v2671_v13 = vpop.f32.mrf.mxu1 }
 0x6c1   : > { %v2631_v51 = vpop.f32.mrf.mxu3 }
 0x6c2   : > { %v2652_v20 = vadd.f32 %v2651_v1, %v2631_v51  ;;  %v2691_v43 = vpop.f32.mrf.mxu2 }
 0x6c3   : > { %v2692_v61 = vadd.f32 %v2691_v43, %v2671_v13 }
 0x6c4   : > { %v2694_v11 = vmax.f32 %v2652_v20, 0.0 }
 0x6c5   : > { %v2695_v23 = vmax.f32 %v2692_v61, 0.0 }
 0x6c6   : > { %2776 = vmatmul.f32.vlgmr.msrb.gmra.mxu3 %v2694_v11  ;;  %2816 = vmatmul.f32.vlgmr.msra.gmra.mxu1 %v2694_v11 }
 0x6c7   : > { %2796 = vmatmul.f32.vlgmr.msra.gmra.mxu0 %v2695_v23  ;;  %2836 = vmatmul.f32.vlgmr.msra.gmra.mxu2 %v2695_v23 }
 0x743   : > { %v2817_v30 = vpop.f32.mrf.mxu1 }
 0x744   : > { %v2818_v4 = vadd.f32 %v2817_v30, %v4833_v9  ;;  %v2797_v3 = vpop.f32.mrf.mxu0 }
 0x749   : > { %v2777_v45 = vpop.f32.mrf.mxu3 }
 0x74a   : > { %v2778_v48 = vadd.f32 %v2777_v45, %v4829_v38  ;;  %v2837_v47 = vpop.f32.mrf.mxu2 }
 0x74b   : > { %v2838_v62 = vadd.f32 %v2837_v47, %v2818_v4 }
 0x74c   : > { %v2798_v31 = vadd.f32 %v2797_v3, %v2778_v48 }
 0x74d   : > { %2841 = vst [vmem:[%s474_s4 + $0x8] sm:$0xff] %v2838_v62 }
 0x74e   : > { %2840 = vst [vmem:[%s474_s4] sm:$0xff] %v2798_v31 }
 0x74f   : > { %3455 = shalt.err (!%p3452_p8)
}
 0x750   : > { %3054 = dma.vmem_to_hbm [thread:$0]  (%p3672_p0), %s2857_s11, 256, %s2859_s22, %s2843_s16  }
 0x751 PF: > { %s2870_s3 = sand.u32 1, %s3498_s30   ;;  %p5092_p10 = scmp.ge.s32.totalorder %s3510_s12, 2 }
 0x752   : > { %s2871_s29 = scalar_lea.sflag [#allocation5], %s2870_s3 }
 0x753   : > { %p3080_p11 = pnand %p5092_p10, %p3680_p6 }
 0x755   : > { %p3081_p12 = pneg %p3080_p11 }
 0x757   : > { %3493 = dma.done.wait (%p3081_p12), %s2871_s29, 256  }
 0x758   : > { %3495 = vsyncadd (%p3081_p12), %s2871_s29, 4294967040  ;;  %s5093_s12 = sld [smem:[#allocation23_spill]]  ;;  %s5096_s30 = smov %s3502_s10 }
 0x759   : > { %s5094_s23 = sld [smem:[#allocation22_spill]] }
 0x75a   : > { %s5095_s11 = sld [smem:[#allocation24_spill]] }
 0x75e   : > { %p27_p2 = scmp.ge.s32.totalorder %s5093_s12, 4  }
 0x75f   : > { %s5097_s10 = smov %s5094_s23 }
 0x760   :  { %29 = sbr.rel (!%p27_p2) target bundleno = 15 (0xf), region = 134 }
 0x765   :  { %2877 = vsyncpa [#allocation4], 1 }
 0x766   :  { %2879 = vsyncpa [#allocation4 + $0x1], 1 }
 0x767   :  { %2880 = vsyncpa [#allocation7], 1 }
 0x768   :  { %2882 = vsyncpa [#allocation7 + $0x1], 1 }
 0x769   :  { %2883 = vsyncpa [#allocation10], 1 }
 0x76a   :  { %2884 = vsyncpa [#allocation13], 1 }
 0x76b   :  { %2885 = vsyncpa [#allocation5], 1 }
 0x76c   :  { %2887 = vsyncpa [#allocation5 + $0x1], 1 }

</bundles_post_ra>
